<compile_context>
chip_gen: v7x
topology: tpu7x:2x2x1
jax: 0.10.0
libtpu: 0.0.40
codegen_flags: <defaults>
</compile_context>

<pallas_src>
import functools

import jax
import jax.numpy as jnp
from jax.experimental import pallas as pl
from jax.experimental.pallas import tpu as pltpu


def _round_up(x, m):
    return ((x + m - 1) // m) * m


def _pick_tile(dim, candidates):
    for c in candidates:
        if dim % c == 0:
            return c
    return dim


def _pick_time_block(t_pad, requested):
    """Largest multiple of 8 that divides t_pad and is <= requested (>= 8)."""
    best, t = 8, 8
    while t <= min(requested, t_pad):
        if t_pad % t == 0:
            best = t
        t += 8
    return best


def _pick_proj_time_tile(t_pad, b_pad, target_rows=256, cap_rows=2048):
    """Smallest multiple-of-8 divisor tt of t_pad with tt*b_pad >= target_rows
    (MXU-friendly M tile); falls back to the largest divisor under cap_rows."""
    best, t = 8, 8
    while t <= t_pad:
        if t_pad % t == 0 and t * b_pad <= cap_rows:
            best = t
            if t * b_pad >= target_rows:
                break
        t += 8
    return best


# -----------------------------------------------------------------------------
# Kernel 1: hoisted input-to-gate pre-GEMM   xg = X @ W_ih + (b_ih + b_hh)
# Fully parallel -> megacore-shardable on v7x; keeps the bias add out of the
# serial per-step loop.
# -----------------------------------------------------------------------------
def _xgate_kernel(x_ref, w_ref, b_ref, out_ref):
    out_ref[...] = (
        jnp.dot(x_ref[...], w_ref[...], preferred_element_type=jnp.float32)
        + b_ref[...]
    )


def input_gates_pallas(x_flat, w_ih4, b4):
    """(M, Ep) bf16 @ (Ep, 4Hp) bf16 + (1, 4Hp) f32 -> (M, 4Hp) f32."""
    M, Ep = x_flat.shape
    H4 = w_ih4.shape[-1]
    tm = _pick_tile(M, (512, 256, 128, 64, 32, 16, 8))
    tn = _pick_tile(H4, (512, 256, 128))

    grid_spec = pltpu.PrefetchScalarGridSpec(
        num_scalar_prefetch=0,
        # Outer axis = gate columns, inner axis = rows: the (Ep, tn) weight
        # block stays resident across the inner M loop (fewer HBM re-reads).
        grid=(H4 // tn, M // tm),
        in_specs=[
            pl.BlockSpec((tm, Ep), lambda i, j: (j, 0)),
            pl.BlockSpec((Ep, tn), lambda i, j: (0, i)),
            pl.BlockSpec((1, tn), lambda i, j: (0, i)),
        ],
        out_specs=pl.BlockSpec((tm, tn), lambda i, j: (j, i)),
    )
    return pl.pallas_call(
        _xgate_kernel,
        out_shape=jax.ShapeDtypeStruct((M, H4), jnp.float32),
        grid_spec=grid_spec,
        compiler_params=pltpu.CompilerParams(
            dimension_semantics=("parallel", "parallel")),
    )(x_flat, w_ih4, b4)


# -----------------------------------------------------------------------------
# Kernel 2: LSTM recurrence — only h @ W_hh + gate nonlinearities per step.
# -----------------------------------------------------------------------------
def _lstm_recurrent_kernel(xg_ref, whh_ref, h_out_ref, h_sc, c_sc):
    """xg_ref   : (T_BLK, B, 4H) f32   precomputed x@W_ih + bias (gates i|f|g|o)
       whh_ref  : (H, 4H)        bf16  fused hidden->gate weights
       h_out_ref: (T_BLK, B, H)  bf16  hidden states (input to projection)
       h_sc     : (B, H)         bf16  h carry (exact value fed to the MXU)
       c_sc     : (B, H)         f32   c carry
    """
    H = c_sc.shape[-1]

    @pl.when(pl.program_id(0) == 0)
    def _():
        h_sc[...] = jnp.zeros_like(h_sc)
        c_sc[...] = jnp.zeros_like(c_sc)

    whh = whh_ref[...]
    # Carry state in registers across the (static, unrolled) timestep block;
    # scratch is only touched once per grid step.
    h = h_sc[...]
    c = c_sc[...]
    for t in range(xg_ref.shape[0]):          # recurrence is inherently serial
        gates = xg_ref[t] + jnp.dot(h, whh, preferred_element_type=jnp.float32)
        i_g = jax.nn.sigmoid(gates[:, 0 * H:1 * H])      # lane-aligned slices
        f_g = jax.nn.sigmoid(gates[:, 1 * H:2 * H])
        g_g = jnp.tanh(gates[:, 2 * H:3 * H])
        o_g = jax.nn.sigmoid(gates[:, 3 * H:4 * H])
        c = f_g * c + i_g * g_g
        h = (o_g * jnp.tanh(c)).astype(jnp.bfloat16)     # single cast, reused
        h_out_ref[t] = h
    h_sc[...] = h
    c_sc[...] = c


def lstm_recurrence_pallas(xg, w_hh4, *, t_blk, whh_buffers=1):
    """xg: (Tp, Bp, 4Hp) f32 -> hidden states (Tp, Bp, Hp) bf16."""
    T, B, H4 = xg.shape
    H = H4 // 4
    assert T % t_blk == 0

    whh_kwargs = {}
    if whh_buffers is not None:
        # Grid-invariant weight: single-buffer it to halve VMEM residency.
        whh_kwargs = dict(pipeline_mode=pl.Buffered(whh_buffers))

    grid_spec = pltpu.PrefetchScalarGridSpec(
        num_scalar_prefetch=0,
        grid=(T // t_blk,),
        in_specs=[
            pl.BlockSpec((t_blk, B, H4), lambda t: (t, 0, 0)),     # xg block
            pl.BlockSpec((H, H4), lambda t: (0, 0), **whh_kwargs),  # fused W_hh
        ],
        out_specs=pl.BlockSpec((t_blk, B, H), lambda t: (t, 0, 0)),
        scratch_shapes=[
            pltpu.VMEM((B, H), jnp.bfloat16),   # h carry (matmul LHS dtype)
            pltpu.VMEM((B, H), jnp.float32),    # c carry
        ],
    )
    return pl.pallas_call(
        _lstm_recurrent_kernel,
        out_shape=jax.ShapeDtypeStruct((T, B, H), jnp.bfloat16),
        grid_spec=grid_spec,
        # Time axis carries h/c state through scratch -> must stay "arbitrary".
        compiler_params=pltpu.CompilerParams(
            dimension_semantics=("arbitrary",),
            vmem_limit_bytes=48 * 1024 * 1024),
    )(xg, w_hh4)


# -----------------------------------------------------------------------------
# Kernel 3: vocab projection, weight-resident tiling, logits emitted in
# (B, T, V) layout directly (no post-kernel XLA transpose).
# -----------------------------------------------------------------------------
def _projection_kernel(h_ref, w_ref, b_ref, out_ref):
    """h_ref : (tt, Bp, Hp) bf16, w_ref: (Hp, tn) bf16, b_ref: (1, tn) f32
       out_ref: (Bp, tt, tn) f32 (batch-major tile)."""
    tt, bp, hp = h_ref.shape
    acc = (
        jnp.dot(h_ref[...].reshape(tt * bp, hp), w_ref[...],
                preferred_element_type=jnp.float32)
        + b_ref[...]
    )                                                     # (tt*Bp, tn) f32
    # Cheap VMEM tile transpose (lane dim untouched) -> batch-major output.
    out_ref[...] = jnp.transpose(acc.reshape(tt, bp, -1), (1, 0, 2))


def vocab_projection_pallas(h_all, w_lin_t, b_lin):
    """h_all (Tp, Bp, Hp) bf16 -> logits (Bp, Tp, Vp) f32."""
    Tp, Bp, Hp = h_all.shape
    Vp = w_lin_t.shape[-1]
    tt = _pick_proj_time_tile(Tp, Bp)           # M tile = tt*Bp rows
    tn = _pick_tile(Vp, (512, 256, 128))

    grid_spec = pltpu.PrefetchScalarGridSpec(
        num_scalar_prefetch=0,
        # Outer axis = vocab tiles, inner axis = time tiles: the large (Hp, tn)
        # weight block stays resident across the inner loop.
        grid=(Vp // tn, Tp // tt),
        in_specs=[
            pl.BlockSpec((tt, Bp, Hp), lambda i, j: (j, 0, 0)),
            pl.BlockSpec((Hp, tn), lambda i, j: (0, i)),
            pl.BlockSpec((1, tn), lambda i, j: (0, i)),
        ],
        out_specs=pl.BlockSpec((Bp, tt, tn), lambda i, j: (0, j, i)),
    )
    return pl.pallas_call(
        _projection_kernel,
        out_shape=jax.ShapeDtypeStruct((Bp, Tp, Vp), jnp.float32),
        grid_spec=grid_spec,
        compiler_params=pltpu.CompilerParams(
            dimension_semantics=("parallel", "parallel")),
    )(h_all, w_lin_t, b_lin)


# -----------------------------------------------------------------------------
# Parameters: PyTorch-layout init + packing (fuse gates, pad E/H/V, cast bf16)
# -----------------------------------------------------------------------------
def init_params(key, embed_size, hidden_size, vocab_size):
    """Deterministic synthetic parameters in PyTorch layout."""
    k_emb, k_ih, k_hh, k_bih, k_bhh, k_lin = jax.random.split(key, 6)
    bound = 1.0 / jnp.sqrt(hidden_size)
    embed = jax.random.normal(k_emb, (vocab_size, embed_size), jnp.float32)
    w_ih = jax.random.uniform(k_ih, (4 * hidden_size, embed_size), jnp.float32,
                              -bound, bound)
    w_hh = jax.random.uniform(k_hh, (4 * hidden_size, hidden_size), jnp.float32,
                              -bound, bound)
    b_ih = jax.random.uniform(k_bih, (4 * hidden_size,), jnp.float32, -bound, bound)
    b_hh = jax.random.uniform(k_bhh, (4 * hidden_size,), jnp.float32, -bound, bound)
    # init_weights(): linear.weight ~ U(-1, 1), linear.bias = 0
    w_lin = jax.random.uniform(k_lin, (vocab_size, hidden_size), jnp.float32, -1.0, 1.0)
    b_lin = jnp.zeros((vocab_size,), jnp.float32)
    return dict(embed=embed, w_ih=w_ih, w_hh=w_hh, b_ih=b_ih, b_hh=b_hh,
                w_lin=w_lin, b_lin=b_lin)


def pack_params(params, embed_size, hidden_size, vocab_size):
    """Fuse per-gate weights into (Ep,4Hp)/(Hp,4Hp), pad E/H/V to multiples of
    128, cast MXU operands to bf16 (biases stay f32)."""
    H, E, V = hidden_size, embed_size, vocab_size
    Hp = _round_up(H, 128)
    Ep = _round_up(E, 128)
    Vp = _round_up(V, 128)

    def fuse(w, in_dim, in_pad):
        # w: (4H, in_dim) torch layout, gate order i|f|g|o.
        w = w.reshape(4, H, in_dim)
        w = jnp.pad(w, ((0, 0), (0, Hp - H), (0, in_pad)))
        return jnp.transpose(w, (2, 0, 1)).reshape(in_dim + in_pad, 4 * Hp)

    w_ih4 = fuse(params["w_ih"], E, Ep - E).astype(jnp.bfloat16)     # (Ep, 4Hp)
    w_hh4 = fuse(params["w_hh"], H, Hp - H).astype(jnp.bfloat16)     # (Hp, 4Hp)
    b4 = (params["b_ih"] + params["b_hh"]).reshape(4, H)
    b4 = jnp.pad(b4, ((0, 0), (0, Hp - H))).reshape(1, 4 * Hp)       # (1, 4Hp) f32

    w_lin_t = jnp.pad(params["w_lin"], ((0, Vp - V), (0, Hp - H))).T
    w_lin_t = w_lin_t.astype(jnp.bfloat16)                           # (Hp, Vp)
    b_lin = jnp.pad(params["b_lin"], (0, Vp - V)).reshape(1, Vp)     # (1, Vp) f32

    return dict(embed=params["embed"], w_ih4=w_ih4, w_hh4=w_hh4, b4=b4,
                w_lin_t=w_lin_t, b_lin=b_lin)


# -----------------------------------------------------------------------------
# Forward: mirrors DecoderRNN.forward(features, captions)
# -----------------------------------------------------------------------------
def decoder_rnn_forward(packed, features, captions, *, t_blk=16, whh_buffers=1):
    """features: (B, E) f32, captions: (B, S) int32 -> logits (B, S, vocab) f32."""
    B, E = features.shape
    T = captions.shape[1]                      # 1 feature step + (S-1) tokens
    Ep = packed["w_ih4"].shape[0]
    Hp = packed["w_hh4"].shape[0]
    V = packed["embed"].shape[0]

    # Glue: embedding gather + prepend the image feature, then go time-major.
    tok = captions[:, :-1]
    embeds = jnp.take(packed["embed"], tok, axis=0)                    # (B, S-1, E)
    embeds = jnp.concatenate([features[:, None, :], embeds], axis=1)   # (B, T, E)
    x = jnp.transpose(embeds, (1, 0, 2))                               # (T, B, E)

    # Pad to hardware-friendly shapes: B -> x8, T -> time-block multiple, E -> x128.
    Bp = _round_up(B, 8)
    Tp = _round_up(T, 8)
    blk = _pick_time_block(Tp, t_blk)
    x = jnp.pad(x, ((0, Tp - T), (0, Bp - B), (0, Ep - E))).astype(jnp.bfloat16)

    # Kernel 1 (parallel): hoisted X @ W_ih + fused bias over all timesteps.
    xg = input_gates_pallas(x.reshape(Tp * Bp, Ep), packed["w_ih4"], packed["b4"])
    xg = xg.reshape(Tp, Bp, 4 * Hp)

    # Kernel 2 (serial): only the h/c recurrence.
    h_all = lstm_recurrence_pallas(xg, packed["w_hh4"], t_blk=blk,
                                   whh_buffers=whh_buffers)            # (Tp, Bp, Hp)

    # Kernel 3 (parallel): vocab projection, emitted directly as (B, T, V).
    logits = vocab_projection_pallas(h_all, packed["w_lin_t"], packed["b_lin"])
    return logits[:B, :T, :V]


# -----------------------------------------------------------------------------
# Pure-JAX reference with identical numerics (fused bf16 weights, f32 accum)
# -----------------------------------------------------------------------------
def _reference_forward(packed, features, captions):
    B, E = features.shape
    Ep = packed["w_ih4"].shape[0]
    Hp = packed["w_hh4"].shape[0]
    V = packed["embed"].shape[0]

    tok = captions[:, :-1]
    embeds = jnp.take(packed["embed"], tok, axis=0)
    embeds = jnp.concatenate([features[:, None, :], embeds], axis=1)
    x_t = jnp.transpose(embeds, (1, 0, 2))                             # (T, B, E)
    x_t = jnp.pad(x_t, ((0, 0), (0, 0), (0, Ep - E))).astype(jnp.bfloat16)

    wih, whh, b = packed["w_ih4"], packed["w_hh4"], packed["b4"]
    xg = jnp.dot(x_t, wih, preferred_element_type=jnp.float32) + b     # (T, B, 4Hp)

    def step(carry, xg_t):
        h, c = carry
        gates = xg_t + jnp.dot(h, whh, preferred_element_type=jnp.float32)
        i = jax.nn.sigmoid(gates[:, :Hp])
        f = jax.nn.sigmoid(gates[:, Hp:2 * Hp])
        g = jnp.tanh(gates[:, 2 * Hp:3 * Hp])
        o = jax.nn.sigmoid(gates[:, 3 * Hp:])
        c = f * c + i * g
        h = (o * jnp.tanh(c)).astype(jnp.bfloat16)
        return (h, c), h

    init = (jnp.zeros((B, Hp), jnp.bfloat16), jnp.zeros((B, Hp), jnp.float32))
    _, hs = jax.lax.scan(step, init, xg)                               # (T, B, Hp)
    logits = (jnp.dot(hs, packed["w_lin_t"], preferred_element_type=jnp.float32)
              + packed["b_lin"])[..., :V]
    return jnp.transpose(logits, (1, 0, 2))                            # (B, T, V)


if __name__ == "__main__":
    embed_size, hidden_size, vocab_size = 16, 32, 64
    batch, seq = 2, 8      # captions of length 8 -> T = 1 + 7 = 8 timesteps

    key = jax.random.PRNGKey(0)
    k_params, k_feat, k_cap = jax.random.split(key, 3)
    params = init_params(k_params, embed_size, hidden_size, vocab_size)
    packed = pack_params(params, embed_size, hidden_size, vocab_size)

    features = jax.random.normal(k_feat, (batch, embed_size), jnp.float32)
    captions = jax.random.randint(k_cap, (batch, seq), 0, vocab_size, jnp.int32)

    def run(whh_buffers):
        fwd = jax.jit(functools.partial(decoder_rnn_forward, packed,
                                        whh_buffers=whh_buffers))
        out = fwd(features, captions)
        jax.block_until_ready(out)
        return out

    try:
        out = run(1)      # single-buffered grid-invariant W_hh (VMEM saver)
    except Exception:
        # Fallback if this JAX build rejects single-buffer pipeline_mode.
        out = run(None)

    ref = _reference_forward(packed, features, captions)
    assert out.shape == (batch, seq, vocab_size)
    assert jnp.allclose(out, ref, atol=1e-2, rtol=1e-2), \
        float(jnp.max(jnp.abs(out - ref)))

    print("KERNEL_OK")
</pallas_src>

<mosaic_0001>
module attributes {stable_mosaic.version = 11 : i64} {
  func.func @_xgate_kernel(%arg0: i32, %arg1: i32, %arg2: memref<64x128xbf16, #tpu.memory_space<vmem>>, %arg3: memref<128x512xbf16, #tpu.memory_space<vmem>>, %arg4: memref<1x512xf32, #tpu.memory_space<vmem>>, %arg5: memref<64x512xf32, #tpu.memory_space<vmem>>) attributes {dimension_semantics = [#tpu.dimension_semantics<parallel>, #tpu.dimension_semantics<parallel>], iteration_bounds = array<i64: 1, 1>, scalar_prefetch = 0 : i64, scratch_operands = 0 : i64, tpu.core_type = #tpu.core_type<tc>, window_params = [{transform_indices = @transform_0, window_bounds = array<i64: 64, 128>}, {transform_indices = @transform_1, window_bounds = array<i64: 128, 512>}, {transform_indices = @transform_2, window_bounds = array<i64: 1, 512>}, {transform_indices = @transform_3, window_bounds = array<i64: 64, 512>}]} {
    %c0 = arith.constant 0 : index
    %c0_0 = arith.constant 0 : index
    %0 = vector.load %arg2[%c0, %c0_0] : memref<64x128xbf16, #tpu.memory_space<vmem>>, vector<64x128xbf16>
    %c0_1 = arith.constant 0 : index
    %c0_2 = arith.constant 0 : index
    %1 = vector.load %arg3[%c0_1, %c0_2] : memref<128x512xbf16, #tpu.memory_space<vmem>>, vector<128x512xbf16>
    %cst = arith.constant dense<0.000000e+00> : vector<64x512xf32>
    %2 = tpu.matmul %0, %1, %cst {dimension_numbers = #tpu.dot_dimension_numbers<[1], [0], [0], [1], [0, 0, 1, 1], [], []>} : vector<64x128xbf16>, vector<128x512xbf16>, vector<64x512xf32> -> vector<64x512xf32>
    %c0_3 = arith.constant 0 : index
    %c0_4 = arith.constant 0 : index
    %3 = vector.load %arg4[%c0_3, %c0_4] : memref<1x512xf32, #tpu.memory_space<vmem>>, vector<1x512xf32>
    %4 = vector.broadcast %3 : vector<1x512xf32> to vector<64x512xf32>
    %5 = arith.addf %2, %4 : vector<64x512xf32>
    %c0_5 = arith.constant 0 : index
    %c0_6 = arith.constant 0 : index
    %6 = vector.load %arg5[%c0_5, %c0_6] : memref<64x512xf32, #tpu.memory_space<vmem>>, vector<64x512xf32>
    tpu.vector_store %arg5[%c0_5, %c0_6], %5 {strides = array<i32>} : memref<64x512xf32, #tpu.memory_space<vmem>>, vector<64x512xf32>,
    return
  }
  func.func @transform_0(%arg0: i32, %arg1: i32) -> (i32, i32) {
    %c0_i32 = arith.constant 0 : i32
    %c0_i32_0 = arith.constant 0 : i32
    return %arg1, %c0_i32 : i32, i32
  }
  func.func @transform_1(%arg0: i32, %arg1: i32) -> (i32, i32) {
    %c0_i32 = arith.constant 0 : i32
    %c0_i32_0 = arith.constant 0 : i32
    return %c0_i32, %arg0 : i32, i32
  }
  func.func @transform_2(%arg0: i32, %arg1: i32) -> (i32, i32) {
    %c0_i32 = arith.constant 0 : i32
    %c0_i32_0 = arith.constant 0 : i32
    return %c0_i32, %arg0 : i32, i32
  }
  func.func @transform_3(%arg0: i32, %arg1: i32) -> (i32, i32) {
    %c0_i32 = arith.constant 0 : i32
    return %arg1, %arg0 : i32, i32
  }
}

module attributes {stable_mosaic.version = 11 : i64} {
  func.func @_lstm_recurrent_kernel(%arg0: i32, %arg1: memref<8x8x512xf32, #tpu.memory_space<vmem>>, %arg2: memref<128x512xbf16, #tpu.memory_space<vmem>>, %arg3: memref<8x8x128xbf16, #tpu.memory_space<vmem>>, %arg4: memref<8x128xbf16, #tpu.memory_space<vmem>>, %arg5: memref<8x128xf32, #tpu.memory_space<vmem>>) attributes {dimension_semantics = [#tpu.dimension_semantics<arbitrary>], iteration_bounds = array<i64: 1>, scalar_prefetch = 0 : i64, scratch_operands = 2 : i64, tpu.core_type = #tpu.core_type<tc>, window_params = [{transform_indices = @transform_0, window_bounds = array<i64: 8, 8, 512>}, {pipeline_mode = #tpu.pipeline_mode<synchronous>, transform_indices = @transform_1, window_bounds = array<i64: 128, 512>}, {transform_indices = @transform_2, window_bounds = array<i64: 8, 8, 128>}]} {
    %c0_i32 = arith.constant 0 : i32
    %0 = arith.cmpi eq, %arg0, %c0_i32 : i32
    %1 = arith.extui %0 : i1 to i32
    %c0_i32_0 = arith.constant 0 : i32
    %2 = arith.cmpi ne, %1, %c0_i32_0 : i32
    scf.if %2 {
      %cst_82 = arith.constant 0.000000e+00 : bf16
      %272 = vector.broadcast %cst_82 : bf16 to vector<8x128xbf16>
      %c0_83 = arith.constant 0 : index
      %c0_84 = arith.constant 0 : index
      %273 = vector.load %arg4[%c0_83, %c0_84] : memref<8x128xbf16, #tpu.memory_space<vmem>>, vector<8x128xbf16>
      tpu.vector_store %arg4[%c0_83, %c0_84], %272 {strides = array<i32>} : memref<8x128xbf16, #tpu.memory_space<vmem>>, vector<8x128xbf16>,
      %cst_85 = arith.constant 0.000000e+00 : f32
      %274 = vector.broadcast %cst_85 : f32 to vector<8x128xf32>
      %c0_86 = arith.constant 0 : index
      %c0_87 = arith.constant 0 : index
      %275 = vector.load %arg5[%c0_86, %c0_87] : memref<8x128xf32, #tpu.memory_space<vmem>>, vector<8x128xf32>
      tpu.vector_store %arg5[%c0_86, %c0_87], %274 {strides = array<i32>} : memref<8x128xf32, #tpu.memory_space<vmem>>, vector<8x128xf32>,
    } else {
    }
    %c0 = arith.constant 0 : index
    %c0_1 = arith.constant 0 : index
    %3 = vector.load %arg2[%c0, %c0_1] : memref<128x512xbf16, #tpu.memory_space<vmem>>, vector<128x512xbf16>
    %c0_2 = arith.constant 0 : index
    %c0_3 = arith.constant 0 : index
    %4 = vector.load %arg4[%c0_2, %c0_3] : memref<8x128xbf16, #tpu.memory_space<vmem>>, vector<8x128xbf16>
    %c0_4 = arith.constant 0 : index
    %c0_5 = arith.constant 0 : index
    %5 = vector.load %arg5[%c0_4, %c0_5] : memref<8x128xf32, #tpu.memory_space<vmem>>, vector<8x128xf32>
    %c0_6 = arith.constant 0 : index
    %c0_7 = arith.constant 0 : index
    %c0_8 = arith.constant 0 : index
    %6 = vector.load %arg1[%c0_6, %c0_7, %c0_8] : memref<8x8x512xf32, #tpu.memory_space<vmem>>, vector<1x8x512xf32>
    %7 = vector.shape_cast %6 : vector<1x8x512xf32> to vector<8x512xf32>
    %cst = arith.constant dense<0.000000e+00> : vector<8x512xf32>
    %8 = tpu.matmul %4, %3, %cst {dimension_numbers = #tpu.dot_dimension_numbers<[1], [0], [0], [1], [0, 0, 1, 1], [], []>} : vector<8x128xbf16>, vector<128x512xbf16>, vector<8x512xf32> -> vector<8x512xf32>
    %9 = arith.addf %7, %8 : vector<8x512xf32>
    %10 = vector.extract_strided_slice %9 {offsets = [0, 0], sizes = [8, 128], strides = [1, 1]} : vector<8x512xf32> to vector<8x128xf32>
    %11 = arith.negf %10 : vector<8x128xf32>
    %12 = math.exp %11 : vector<8x128xf32>
    %cst_9 = arith.constant 1.000000e+00 : f32
    %13 = vector.broadcast %cst_9 : f32 to vector<8x128xf32>
    %14 = arith.addf %13, %12 : vector<8x128xf32>
    %15 = arith.divf %13, %14 : vector<8x128xf32>
    %16 = vector.extract_strided_slice %9 {offsets = [0, 128], sizes = [8, 128], strides = [1, 1]} : vector<8x512xf32> to vector<8x128xf32>
    %17 = arith.negf %16 : vector<8x128xf32>
    %18 = math.exp %17 : vector<8x128xf32>
    %cst_10 = arith.constant 1.000000e+00 : f32
    %19 = vector.broadcast %cst_10 : f32 to vector<8x128xf32>
    %20 = arith.addf %19, %18 : vector<8x128xf32>
    %21 = arith.divf %19, %20 : vector<8x128xf32>
    %22 = vector.extract_strided_slice %9 {offsets = [0, 256], sizes = [8, 128], strides = [1, 1]} : vector<8x512xf32> to vector<8x128xf32>
    %23 = math.tanh %22 : vector<8x128xf32>
    %24 = vector.extract_strided_slice %9 {offsets = [0, 384], sizes = [8, 128], strides = [1, 1]} : vector<8x512xf32> to vector<8x128xf32>
    %25 = arith.negf %24 : vector<8x128xf32>
    %26 = math.exp %25 : vector<8x128xf32>
    %cst_11 = arith.constant 1.000000e+00 : f32
    %27 = vector.broadcast %cst_11 : f32 to vector<8x128xf32>
    %28 = arith.addf %27, %26 : vector<8x128xf32>
    %29 = arith.divf %27, %28 : vector<8x128xf32>
    %30 = arith.mulf %21, %5 : vector<8x128xf32>
    %31 = arith.mulf %15, %23 : vector<8x128xf32>
    %32 = arith.addf %30, %31 : vector<8x128xf32>
    %33 = math.tanh %32 : vector<8x128xf32>
    %34 = arith.mulf %29, %33 : vector<8x128xf32>
    %35 = arith.truncf %34 : vector<8x128xf32> to vector<8x128xbf16>
    %c0_12 = arith.constant 0 : index
    %c0_13 = arith.constant 0 : index
    %c0_14 = arith.constant 0 : index
    %36 = vector.load %arg3[%c0_12, %c0_13, %c0_14] : memref<8x8x128xbf16, #tpu.memory_space<vmem>>, vector<1x8x128xbf16>
    %37 = vector.shape_cast %36 : vector<1x8x128xbf16> to vector<8x128xbf16>
    %38 = vector.shape_cast %35 : vector<8x128xbf16> to vector<1x8x128xbf16>
    tpu.vector_store %arg3[%c0_12, %c0_13, %c0_14], %38 {strides = array<i32>} : memref<8x8x128xbf16, #tpu.memory_space<vmem>>, vector<1x8x128xbf16>,
    %c1 = arith.constant 1 : index
    %c0_15 = arith.constant 0 : index
    %c0_16 = arith.constant 0 : index
    %39 = vector.load %arg1[%c1, %c0_15, %c0_16] : memref<8x8x512xf32, #tpu.memory_space<vmem>>, vector<1x8x512xf32>
    %40 = vector.shape_cast %39 : vector<1x8x512xf32> to vector<8x512xf32>
    %cst_17 = arith.constant dense<0.000000e+00> : vector<8x512xf32>
    %41 = tpu.matmul %35, %3, %cst_17 {dimension_numbers = #tpu.dot_dimension_numbers<[1], [0], [0], [1], [0, 0, 1, 1], [], []>} : vector<8x128xbf16>, vector<128x512xbf16>, vector<8x512xf32> -> vector<8x512xf32>
    %42 = arith.addf %40, %41 : vector<8x512xf32>
    %43 = vector.extract_strided_slice %42 {offsets = [0, 0], sizes = [8, 128], strides = [1, 1]} : vector<8x512xf32> to vector<8x128xf32>
    %44 = arith.negf %43 : vector<8x128xf32>
    %45 = math.exp %44 : vector<8x128xf32>
    %cst_18 = arith.constant 1.000000e+00 : f32
    %46 = vector.broadcast %cst_18 : f32 to vector<8x128xf32>
    %47 = arith.addf %46, %45 : vector<8x128xf32>
    %48 = arith.divf %46, %47 : vector<8x128xf32>
    %49 = vector.extract_strided_slice %42 {offsets = [0, 128], sizes = [8, 128], strides = [1, 1]} : vector<8x512xf32> to vector<8x128xf32>
    %50 = arith.negf %49 : vector<8x128xf32>
    %51 = math.exp %50 : vector<8x128xf32>
    %cst_19 = arith.constant 1.000000e+00 : f32
    %52 = vector.broadcast %cst_19 : f32 to vector<8x128xf32>
    %53 = arith.addf %52, %51 : vector<8x128xf32>
    %54 = arith.divf %52, %53 : vector<8x128xf32>
    %55 = vector.extract_strided_slice %42 {offsets = [0, 256], sizes = [8, 128], strides = [1, 1]} : vector<8x512xf32> to vector<8x128xf32>
    %56 = math.tanh %55 : vector<8x128xf32>
    %57 = vector.extract_strided_slice %42 {offsets = [0, 384], sizes = [8, 128], strides = [1, 1]} : vector<8x512xf32> to vector<8x128xf32>
    %58 = arith.negf %57 : vector<8x128xf32>
    %59 = math.exp %58 : vector<8x128xf32>
    %cst_20 = arith.constant 1.000000e+00 : f32
    %60 = vector.broadcast %cst_20 : f32 to vector<8x128xf32>
    %61 = arith.addf %60, %59 : vector<8x128xf32>
    %62 = arith.divf %60, %61 : vector<8x128xf32>
    %63 = arith.mulf %54, %32 : vector<8x128xf32>
    %64 = arith.mulf %48, %56 : vector<8x128xf32>
    %65 = arith.addf %63, %64 : vector<8x128xf32>
    %66 = math.tanh %65 : vector<8x128xf32>
    %67 = arith.mulf %62, %66 : vector<8x128xf32>
    %68 = arith.truncf %67 : vector<8x128xf32> to vector<8x128xbf16>
    %c1_21 = arith.constant 1 : index
    %c0_22 = arith.constant 0 : index
    %c0_23 = arith.constant 0 : index
    %69 = vector.load %arg3[%c1_21, %c0_22, %c0_23] : memref<8x8x128xbf16, #tpu.memory_space<vmem>>, vector<1x8x128xbf16>
    %70 = vector.shape_cast %69 : vector<1x8x128xbf16> to vector<8x128xbf16>
    %71 = vector.shape_cast %68 : vector<8x128xbf16> to vector<1x8x128xbf16>
    tpu.vector_store %arg3[%c1_21, %c0_22, %c0_23], %71 {strides = array<i32>} : memref<8x8x128xbf16, #tpu.memory_space<vmem>>, vector<1x8x128xbf16>,
    %c2 = arith.constant 2 : index
    %c0_24 = arith.constant 0 : index
    %c0_25 = arith.constant 0 : index
    %72 = vector.load %arg1[%c2, %c0_24, %c0_25] : memref<8x8x512xf32, #tpu.memory_space<vmem>>, vector<1x8x512xf32>
    %73 = vector.shape_cast %72 : vector<1x8x512xf32> to vector<8x512xf32>
    %cst_26 = arith.constant dense<0.000000e+00> : vector<8x512xf32>
    %74 = tpu.matmul %68, %3, %cst_26 {dimension_numbers = #tpu.dot_dimension_numbers<[1], [0], [0], [1], [0, 0, 1, 1], [], []>} : vector<8x128xbf16>, vector<128x512xbf16>, vector<8x512xf32> -> vector<8x512xf32>
    %75 = arith.addf %73, %74 : vector<8x512xf32>
    %76 = vector.extract_strided_slice %75 {offsets = [0, 0], sizes = [8, 128], strides = [1, 1]} : vector<8x512xf32> to vector<8x128xf32>
    %77 = arith.negf %76 : vector<8x128xf32>
    %78 = math.exp %77 : vector<8x128xf32>
    %cst_27 = arith.constant 1.000000e+00 : f32
    %79 = vector.broadcast %cst_27 : f32 to vector<8x128xf32>
    %80 = arith.addf %79, %78 : vector<8x128xf32>
    %81 = arith.divf %79, %80 : vector<8x128xf32>
    %82 = vector.extract_strided_slice %75 {offsets = [0, 128], sizes = [8, 128], strides = [1, 1]} : vector<8x512xf32> to vector<8x128xf32>
    %83 = arith.negf %82 : vector<8x128xf32>
    %84 = math.exp %83 : vector<8x128xf32>
    %cst_28 = arith.constant 1.000000e+00 : f32
    %85 = vector.broadcast %cst_28 : f32 to vector<8x128xf32>
    %86 = arith.addf %85, %84 : vector<8x128xf32>
    %87 = arith.divf %85, %86 : vector<8x128xf32>
    %88 = vector.extract_strided_slice %75 {offsets = [0, 256], sizes = [8, 128], strides = [1, 1]} : vector<8x512xf32> to vector<8x128xf32>
    %89 = math.tanh %88 : vector<8x128xf32>
    %90 = vector.extract_strided_slice %75 {offsets = [0, 384], sizes = [8, 128], strides = [1, 1]} : vector<8x512xf32> to vector<8x128xf32>
    %91 = arith.negf %90 : vector<8x128xf32>
    %92 = math.exp %91 : vector<8x128xf32>
    %cst_29 = arith.constant 1.000000e+00 : f32
    %93 = vector.broadcast %cst_29 : f32 to vector<8x128xf32>
    %94 = arith.addf %93, %92 : vector<8x128xf32>
    %95 = arith.divf %93, %94 : vector<8x128xf32>
    %96 = arith.mulf %87, %65 : vector<8x128xf32>
    %97 = arith.mulf %81, %89 : vector<8x128xf32>
    %98 = arith.addf %96, %97 : vector<8x128xf32>
    %99 = math.tanh %98 : vector<8x128xf32>
    %100 = arith.mulf %95, %99 : vector<8x128xf32>
    %101 = arith.truncf %100 : vector<8x128xf32> to vector<8x128xbf16>
    %c2_30 = arith.constant 2 : index
    %c0_31 = arith.constant 0 : index
    %c0_32 = arith.constant 0 : index
    %102 = vector.load %arg3[%c2_30, %c0_31, %c0_32] : memref<8x8x128xbf16, #tpu.memory_space<vmem>>, vector<1x8x128xbf16>
    %103 = vector.shape_cast %102 : vector<1x8x128xbf16> to vector<8x128xbf16>
    %104 = vector.shape_cast %101 : vector<8x128xbf16> to vector<1x8x128xbf16>
    tpu.vector_store %arg3[%c2_30, %c0_31, %c0_32], %104 {strides = array<i32>} : memref<8x8x128xbf16, #tpu.memory_space<vmem>>, vector<1x8x128xbf16>,
    %c3 = arith.constant 3 : index
    %c0_33 = arith.constant 0 : index
    %c0_34 = arith.constant 0 : index
    %105 = vector.load %arg1[%c3, %c0_33, %c0_34] : memref<8x8x512xf32, #tpu.memory_space<vmem>>, vector<1x8x512xf32>
    %106 = vector.shape_cast %105 : vector<1x8x512xf32> to vector<8x512xf32>
    %cst_35 = arith.constant dense<0.000000e+00> : vector<8x512xf32>
    %107 = tpu.matmul %101, %3, %cst_35 {dimension_numbers = #tpu.dot_dimension_numbers<[1], [0], [0], [1], [0, 0, 1, 1], [], []>} : vector<8x128xbf16>, vector<128x512xbf16>, vector<8x512xf32> -> vector<8x512xf32>
    %108 = arith.addf %106, %107 : vector<8x512xf32>
    %109 = vector.extract_strided_slice %108 {offsets = [0, 0], sizes = [8, 128], strides = [1, 1]} : vector<8x512xf32> to vector<8x128xf32>
    %110 = arith.negf %109 : vector<8x128xf32>
    %111 = math.exp %110 : vector<8x128xf32>
    %cst_36 = arith.constant 1.000000e+00 : f32
    %112 = vector.broadcast %cst_36 : f32 to vector<8x128xf32>
    %113 = arith.addf %112, %111 : vector<8x128xf32>
    %114 = arith.divf %112, %113 : vector<8x128xf32>
    %115 = vector.extract_strided_slice %108 {offsets = [0, 128], sizes = [8, 128], strides = [1, 1]} : vector<8x512xf32> to vector<8x128xf32>
    %116 = arith.negf %115 : vector<8x128xf32>
    %117 = math.exp %116 : vector<8x128xf32>
    %cst_37 = arith.constant 1.000000e+00 : f32
    %118 = vector.broadcast %cst_37 : f32 to vector<8x128xf32>
    %119 = arith.addf %118, %117 : vector<8x128xf32>
    %120 = arith.divf %118, %119 : vector<8x128xf32>
    %121 = vector.extract_strided_slice %108 {offsets = [0, 256], sizes = [8, 128], strides = [1, 1]} : vector<8x512xf32> to vector<8x128xf32>
    %122 = math.tanh %121 : vector<8x128xf32>
    %123 = vector.extract_strided_slice %108 {offsets = [0, 384], sizes = [8, 128], strides = [1, 1]} : vector<8x512xf32> to vector<8x128xf32>
    %124 = arith.negf %123 : vector<8x128xf32>
    %125 = math.exp %124 : vector<8x128xf32>
    %cst_38 = arith.constant 1.000000e+00 : f32
    %126 = vector.broadcast %cst_38 : f32 to vector<8x128xf32>
    %127 = arith.addf %126, %125 : vector<8x128xf32>
    %128 = arith.divf %126, %127 : vector<8x128xf32>
    %129 = arith.mulf %120, %98 : vector<8x128xf32>
    %130 = arith.mulf %114, %122 : vector<8x128xf32>
    %131 = arith.addf %129, %130 : vector<8x128xf32>
    %132 = math.tanh %131 : vector<8x128xf32>
    %133 = arith.mulf %128, %132 : vector<8x128xf32>
    %134 = arith.truncf %133 : vector<8x128xf32> to vector<8x128xbf16>
    %c3_39 = arith.constant 3 : index
    %c0_40 = arith.constant 0 : index
    %c0_41 = arith.constant 0 : index
    %135 = vector.load %arg3[%c3_39, %c0_40, %c0_41] : memref<8x8x128xbf16, #tpu.memory_space<vmem>>, vector<1x8x128xbf16>
    %136 = vector.shape_cast %135 : vector<1x8x128xbf16> to vector<8x128xbf16>
    %137 = vector.shape_cast %134 : vector<8x128xbf16> to vector<1x8x128xbf16>
    tpu.vector_store %arg3[%c3_39, %c0_40, %c0_41], %137 {strides = array<i32>} : memref<8x8x128xbf16, #tpu.memory_space<vmem>>, vector<1x8x128xbf16>,
    %c4 = arith.constant 4 : index
    %c0_42 = arith.constant 0 : index
    %c0_43 = arith.constant 0 : index
    %138 = vector.load %arg1[%c4, %c0_42, %c0_43] : memref<8x8x512xf32, #tpu.memory_space<vmem>>, vector<1x8x512xf32>
    %139 = vector.shape_cast %138 : vector<1x8x512xf32> to vector<8x512xf32>
    %cst_44 = arith.constant dense<0.000000e+00> : vector<8x512xf32>
    %140 = tpu.matmul %134, %3, %cst_44 {dimension_numbers = #tpu.dot_dimension_numbers<[1], [0], [0], [1], [0, 0, 1, 1], [], []>} : vector<8x128xbf16>, vector<128x512xbf16>, vector<8x512xf32> -> vector<8x512xf32>
    %141 = arith.addf %139, %140 : vector<8x512xf32>
    %142 = vector.extract_strided_slice %141 {offsets = [0, 0], sizes = [8, 128], strides = [1, 1]} : vector<8x512xf32> to vector<8x128xf32>
    %143 = arith.negf %142 : vector<8x128xf32>
    %144 = math.exp %143 : vector<8x128xf32>
    %cst_45 = arith.constant 1.000000e+00 : f32
    %145 = vector.broadcast %cst_45 : f32 to vector<8x128xf32>
    %146 = arith.addf %145, %144 : vector<8x128xf32>
    %147 = arith.divf %145, %146 : vector<8x128xf32>
    %148 = vector.extract_strided_slice %141 {offsets = [0, 128], sizes = [8, 128], strides = [1, 1]} : vector<8x512xf32> to vector<8x128xf32>
    %149 = arith.negf %148 : vector<8x128xf32>
    %150 = math.exp %149 : vector<8x128xf32>
    %cst_46 = arith.constant 1.000000e+00 : f32
    %151 = vector.broadcast %cst_46 : f32 to vector<8x128xf32>
    %152 = arith.addf %151, %150 : vector<8x128xf32>
    %153 = arith.divf %151, %152 : vector<8x128xf32>
    %154 = vector.extract_strided_slice %141 {offsets = [0, 256], sizes = [8, 128], strides = [1, 1]} : vector<8x512xf32> to vector<8x128xf32>
    %155 = math.tanh %154 : vector<8x128xf32>
    %156 = vector.extract_strided_slice %141 {offsets = [0, 384], sizes = [8, 128], strides = [1, 1]} : vector<8x512xf32> to vector<8x128xf32>
    %157 = arith.negf %156 : vector<8x128xf32>
    %158 = math.exp %157 : vector<8x128xf32>
    %cst_47 = arith.constant 1.000000e+00 : f32
    %159 = vector.broadcast %cst_47 : f32 to vector<8x128xf32>
    %160 = arith.addf %159, %158 : vector<8x128xf32>
    %161 = arith.divf %159, %160 : vector<8x128xf32>
    %162 = arith.mulf %153, %131 : vector<8x128xf32>
    %163 = arith.mulf %147, %155 : vector<8x128xf32>
    %164 = arith.addf %162, %163 : vector<8x128xf32>
    %165 = math.tanh %164 : vector<8x128xf32>
    %166 = arith.mulf %161, %165 : vector<8x128xf32>
    %167 = arith.truncf %166 : vector<8x128xf32> to vector<8x128xbf16>
    %c4_48 = arith.constant 4 : index
    %c0_49 = arith.constant 0 : index
    %c0_50 = arith.constant 0 : index
    %168 = vector.load %arg3[%c4_48, %c0_49, %c0_50] : memref<8x8x128xbf16, #tpu.memory_space<vmem>>, vector<1x8x128xbf16>
    %169 = vector.shape_cast %168 : vector<1x8x128xbf16> to vector<8x128xbf16>
    %170 = vector.shape_cast %167 : vector<8x128xbf16> to vector<1x8x128xbf16>
    tpu.vector_store %arg3[%c4_48, %c0_49, %c0_50], %170 {strides = array<i32>} : memref<8x8x128xbf16, #tpu.memory_space<vmem>>, vector<1x8x128xbf16>,
    %c5 = arith.constant 5 : index
    %c0_51 = arith.constant 0 : index
    %c0_52 = arith.constant 0 : index
    %171 = vector.load %arg1[%c5, %c0_51, %c0_52] : memref<8x8x512xf32, #tpu.memory_space<vmem>>, vector<1x8x512xf32>
    %172 = vector.shape_cast %171 : vector<1x8x512xf32> to vector<8x512xf32>
    %cst_53 = arith.constant dense<0.000000e+00> : vector<8x512xf32>
    %173 = tpu.matmul %167, %3, %cst_53 {dimension_numbers = #tpu.dot_dimension_numbers<[1], [0], [0], [1], [0, 0, 1, 1], [], []>} : vector<8x128xbf16>, vector<128x512xbf16>, vector<8x512xf32> -> vector<8x512xf32>
    %174 = arith.addf %172, %173 : vector<8x512xf32>
    %175 = vector.extract_strided_slice %174 {offsets = [0, 0], sizes = [8, 128], strides = [1, 1]} : vector<8x512xf32> to vector<8x128xf32>
    %176 = arith.negf %175 : vector<8x128xf32>
    %177 = math.exp %176 : vector<8x128xf32>
    %cst_54 = arith.constant 1.000000e+00 : f32
    %178 = vector.broadcast %cst_54 : f32 to vector<8x128xf32>
    %179 = arith.addf %178, %177 : vector<8x128xf32>
    %180 = arith.divf %178, %179 : vector<8x128xf32>
    %181 = vector.extract_strided_slice %174 {offsets = [0, 128], sizes = [8, 128], strides = [1, 1]} : vector<8x512xf32> to vector<8x128xf32>
    %182 = arith.negf %181 : vector<8x128xf32>
    %183 = math.exp %182 : vector<8x128xf32>
    %cst_55 = arith.constant 1.000000e+00 : f32
    %184 = vector.broadcast %cst_55 : f32 to vector<8x128xf32>
    %185 = arith.addf %184, %183 : vector<8x128xf32>
    %186 = arith.divf %184, %185 : vector<8x128xf32>
    %187 = vector.extract_strided_slice %174 {offsets = [0, 256], sizes = [8, 128], strides = [1, 1]} : vector<8x512xf32> to vector<8x128xf32>
    %188 = math.tanh %187 : vector<8x128xf32>
    %189 = vector.extract_strided_slice %174 {offsets = [0, 384], sizes = [8, 128], strides = [1, 1]} : vector<8x512xf32> to vector<8x128xf32>
    %190 = arith.negf %189 : vector<8x128xf32>
    %191 = math.exp %190 : vector<8x128xf32>
    %cst_56 = arith.constant 1.000000e+00 : f32
    %192 = vector.broadcast %cst_56 : f32 to vector<8x128xf32>
    %193 = arith.addf %192, %191 : vector<8x128xf32>
    %194 = arith.divf %192, %193 : vector<8x128xf32>
    %195 = arith.mulf %186, %164 : vector<8x128xf32>
    %196 = arith.mulf %180, %188 : vector<8x128xf32>
    %197 = arith.addf %195, %196 : vector<8x128xf32>
    %198 = math.tanh %197 : vector<8x128xf32>
    %199 = arith.mulf %194, %198 : vector<8x128xf32>
    %200 = arith.truncf %199 : vector<8x128xf32> to vector<8x128xbf16>
    %c5_57 = arith.constant 5 : index
    %c0_58 = arith.constant 0 : index
    %c0_59 = arith.constant 0 : index
    %201 = vector.load %arg3[%c5_57, %c0_58, %c0_59] : memref<8x8x128xbf16, #tpu.memory_space<vmem>>, vector<1x8x128xbf16>
    %202 = vector.shape_cast %201 : vector<1x8x128xbf16> to vector<8x128xbf16>
    %203 = vector.shape_cast %200 : vector<8x128xbf16> to vector<1x8x128xbf16>
    tpu.vector_store %arg3[%c5_57, %c0_58, %c0_59], %203 {strides = array<i32>} : memref<8x8x128xbf16, #tpu.memory_space<vmem>>, vector<1x8x128xbf16>,
    %c6 = arith.constant 6 : index
    %c0_60 = arith.constant 0 : index
    %c0_61 = arith.constant 0 : index
    %204 = vector.load %arg1[%c6, %c0_60, %c0_61] : memref<8x8x512xf32, #tpu.memory_space<vmem>>, vector<1x8x512xf32>
    %205 = vector.shape_cast %204 : vector<1x8x512xf32> to vector<8x512xf32>
    %cst_62 = arith.constant dense<0.000000e+00> : vector<8x512xf32>
    %206 = tpu.matmul %200, %3, %cst_62 {dimension_numbers = #tpu.dot_dimension_numbers<[1], [0], [0], [1], [0, 0, 1, 1], [], []>} : vector<8x128xbf16>, vector<128x512xbf16>, vector<8x512xf32> -> vector<8x512xf32>
    %207 = arith.addf %205, %206 : vector<8x512xf32>
    %208 = vector.extract_strided_slice %207 {offsets = [0, 0], sizes = [8, 128], strides = [1, 1]} : vector<8x512xf32> to vector<8x128xf32>
    %209 = arith.negf %208 : vector<8x128xf32>
    %210 = math.exp %209 : vector<8x128xf32>
    %cst_63 = arith.constant 1.000000e+00 : f32
    %211 = vector.broadcast %cst_63 : f32 to vector<8x128xf32>
    %212 = arith.addf %211, %210 : vector<8x128xf32>
    %213 = arith.divf %211, %212 : vector<8x128xf32>
    %214 = vector.extract_strided_slice %207 {offsets = [0, 128], sizes = [8, 128], strides = [1, 1]} : vector<8x512xf32> to vector<8x128xf32>
    %215 = arith.negf %214 : vector<8x128xf32>
    %216 = math.exp %215 : vector<8x128xf32>
    %cst_64 = arith.constant 1.000000e+00 : f32
    %217 = vector.broadcast %cst_64 : f32 to vector<8x128xf32>
    %218 = arith.addf %217, %216 : vector<8x128xf32>
    %219 = arith.divf %217, %218 : vector<8x128xf32>
    %220 = vector.extract_strided_slice %207 {offsets = [0, 256], sizes = [8, 128], strides = [1, 1]} : vector<8x512xf32> to vector<8x128xf32>
    %221 = math.tanh %220 : vector<8x128xf32>
    %222 = vector.extract_strided_slice %207 {offsets = [0, 384], sizes = [8, 128], strides = [1, 1]} : vector<8x512xf32> to vector<8x128xf32>
    %223 = arith.negf %222 : vector<8x128xf32>
    %224 = math.exp %223 : vector<8x128xf32>
    %cst_65 = arith.constant 1.000000e+00 : f32
    %225 = vector.broadcast %cst_65 : f32 to vector<8x128xf32>
    %226 = arith.addf %225, %224 : vector<8x128xf32>
    %227 = arith.divf %225, %226 : vector<8x128xf32>
    %228 = arith.mulf %219, %197 : vector<8x128xf32>
    %229 = arith.mulf %213, %221 : vector<8x128xf32>
    %230 = arith.addf %228, %229 : vector<8x128xf32>
    %231 = math.tanh %230 : vector<8x128xf32>
    %232 = arith.mulf %227, %231 : vector<8x128xf32>
    %233 = arith.truncf %232 : vector<8x128xf32> to vector<8x128xbf16>
    %c6_66 = arith.constant 6 : index
    %c0_67 = arith.constant 0 : index
    %c0_68 = arith.constant 0 : index
    %234 = vector.load %arg3[%c6_66, %c0_67, %c0_68] : memref<8x8x128xbf16, #tpu.memory_space<vmem>>, vector<1x8x128xbf16>
    %235 = vector.shape_cast %234 : vector<1x8x128xbf16> to vector<8x128xbf16>
    %236 = vector.shape_cast %233 : vector<8x128xbf16> to vector<1x8x128xbf16>
    tpu.vector_store %arg3[%c6_66, %c0_67, %c0_68], %236 {strides = array<i32>} : memref<8x8x128xbf16, #tpu.memory_space<vmem>>, vector<1x8x128xbf16>,
    %c7 = arith.constant 7 : index
    %c0_69 = arith.constant 0 : index
    %c0_70 = arith.constant 0 : index
    %237 = vector.load %arg1[%c7, %c0_69, %c0_70] : memref<8x8x512xf32, #tpu.memory_space<vmem>>, vector<1x8x512xf32>
    %238 = vector.shape_cast %237 : vector<1x8x512xf32> to vector<8x512xf32>
    %cst_71 = arith.constant dense<0.000000e+00> : vector<8x512xf32>
    %239 = tpu.matmul %233, %3, %cst_71 {dimension_numbers = #tpu.dot_dimension_numbers<[1], [0], [0], [1], [0, 0, 1, 1], [], []>} : vector<8x128xbf16>, vector<128x512xbf16>, vector<8x512xf32> -> vector<8x512xf32>
    %240 = arith.addf %238, %239 : vector<8x512xf32>
    %241 = vector.extract_strided_slice %240 {offsets = [0, 0], sizes = [8, 128], strides = [1, 1]} : vector<8x512xf32> to vector<8x128xf32>
    %242 = arith.negf %241 : vector<8x128xf32>
    %243 = math.exp %242 : vector<8x128xf32>
    %cst_72 = arith.constant 1.000000e+00 : f32
    %244 = vector.broadcast %cst_72 : f32 to vector<8x128xf32>
    %245 = arith.addf %244, %243 : vector<8x128xf32>
    %246 = arith.divf %244, %245 : vector<8x128xf32>
    %247 = vector.extract_strided_slice %240 {offsets = [0, 128], sizes = [8, 128], strides = [1, 1]} : vector<8x512xf32> to vector<8x128xf32>
    %248 = arith.negf %247 : vector<8x128xf32>
    %249 = math.exp %248 : vector<8x128xf32>
    %cst_73 = arith.constant 1.000000e+00 : f32
    %250 = vector.broadcast %cst_73 : f32 to vector<8x128xf32>
    %251 = arith.addf %250, %249 : vector<8x128xf32>
    %252 = arith.divf %250, %251 : vector<8x128xf32>
    %253 = vector.extract_strided_slice %240 {offsets = [0, 256], sizes = [8, 128], strides = [1, 1]} : vector<8x512xf32> to vector<8x128xf32>
    %254 = math.tanh %253 : vector<8x128xf32>
    %255 = vector.extract_strided_slice %240 {offsets = [0, 384], sizes = [8, 128], strides = [1, 1]} : vector<8x512xf32> to vector<8x128xf32>
    %256 = arith.negf %255 : vector<8x128xf32>
    %257 = math.exp %256 : vector<8x128xf32>
    %cst_74 = arith.constant 1.000000e+00 : f32
    %258 = vector.broadcast %cst_74 : f32 to vector<8x128xf32>
    %259 = arith.addf %258, %257 : vector<8x128xf32>
    %260 = arith.divf %258, %259 : vector<8x128xf32>
    %261 = arith.mulf %252, %230 : vector<8x128xf32>
    %262 = arith.mulf %246, %254 : vector<8x128xf32>
    %263 = arith.addf %261, %262 : vector<8x128xf32>
    %264 = math.tanh %263 : vector<8x128xf32>
    %265 = arith.mulf %260, %264 : vector<8x128xf32>
    %266 = arith.truncf %265 : vector<8x128xf32> to vector<8x128xbf16>
    %c7_75 = arith.constant 7 : index
    %c0_76 = arith.constant 0 : index
    %c0_77 = arith.constant 0 : index
    %267 = vector.load %arg3[%c7_75, %c0_76, %c0_77] : memref<8x8x128xbf16, #tpu.memory_space<vmem>>, vector<1x8x128xbf16>
    %268 = vector.shape_cast %267 : vector<1x8x128xbf16> to vector<8x128xbf16>
    %269 = vector.shape_cast %266 : vector<8x128xbf16> to vector<1x8x128xbf16>
    tpu.vector_store %arg3[%c7_75, %c0_76, %c0_77], %269 {strides = array<i32>} : memref<8x8x128xbf16, #tpu.memory_space<vmem>>, vector<1x8x128xbf16>,
    %c0_78 = arith.constant 0 : index
    %c0_79 = arith.constant 0 : index
    %270 = vector.load %arg4[%c0_78, %c0_79] : memref<8x128xbf16, #tpu.memory_space<vmem>>, vector<8x128xbf16>
    tpu.vector_store %arg4[%c0_78, %c0_79], %266 {strides = array<i32>} : memref<8x128xbf16, #tpu.memory_space<vmem>>, vector<8x128xbf16>,
    %c0_80 = arith.constant 0 : index
    %c0_81 = arith.constant 0 : index
    %271 = vector.load %arg5[%c0_80, %c0_81] : memref<8x128xf32, #tpu.memory_space<vmem>>, vector<8x128xf32>
    tpu.vector_store %arg5[%c0_80, %c0_81], %263 {strides = array<i32>} : memref<8x128xf32, #tpu.memory_space<vmem>>, vector<8x128xf32>,
    return
  }
  func.func @transform_0(%arg0: i32) -> (i32, i32, i32) {
    %c0_i32 = arith.constant 0 : i32
    %c0_i32_0 = arith.constant 0 : i32
    %c0_i32_1 = arith.constant 0 : i32
    return %arg0, %c0_i32, %c0_i32_0 : i32, i32, i32
  }
  func.func @transform_1(%arg0: i32) -> (i32, i32) {
    %c0_i32 = arith.constant 0 : i32
    %c0_i32_0 = arith.constant 0 : i32
    %c0_i32_1 = arith.constant 0 : i32
    return %c0_i32, %c0_i32_0 : i32, i32
  }
  func.func @transform_2(%arg0: i32) -> (i32, i32, i32) {
    %c0_i32 = arith.constant 0 : i32
    %c0_i32_0 = arith.constant 0 : i32
    %c0_i32_1 = arith.constant 0 : i32
    return %arg0, %c0_i32, %c0_i32_0 : i32, i32, i32
  }
}

module attributes {stable_mosaic.version = 11 : i64} {
  func.func @_projection_kernel(%arg0: i32, %arg1: i32, %arg2: memref<8x8x128xbf16, #tpu.memory_space<vmem>>, %arg3: memref<128x128xbf16, #tpu.memory_space<vmem>>, %arg4: memref<1x128xf32, #tpu.memory_space<vmem>>, %arg5: memref<8x8x128xf32, #tpu.memory_space<vmem>>) attributes {dimension_semantics = [#tpu.dimension_semantics<parallel>, #tpu.dimension_semantics<parallel>], iteration_bounds = array<i64: 1, 1>, scalar_prefetch = 0 : i64, scratch_operands = 0 : i64, tpu.core_type = #tpu.core_type<tc>, window_params = [{transform_indices = @transform_0, window_bounds = array<i64: 8, 8, 128>}, {transform_indices = @transform_1, window_bounds = array<i64: 128, 128>}, {transform_indices = @transform_2, window_bounds = array<i64: 1, 128>}, {transform_indices = @transform_3, window_bounds = array<i64: 8, 8, 128>}]} {
    %c0 = arith.constant 0 : index
    %c0_0 = arith.constant 0 : index
    %c0_1 = arith.constant 0 : index
    %0 = vector.load %arg2[%c0, %c0_0, %c0_1] : memref<8x8x128xbf16, #tpu.memory_space<vmem>>, vector<8x8x128xbf16>
    %1 = vector.shape_cast %0 : vector<8x8x128xbf16> to vector<64x128xbf16>
    %c0_2 = arith.constant 0 : index
    %c0_3 = arith.constant 0 : index
    %2 = vector.load %arg3[%c0_2, %c0_3] : memref<128x128xbf16, #tpu.memory_space<vmem>>, vector<128x128xbf16>
    %cst = arith.constant dense<0.000000e+00> : vector<64x128xf32>
    %3 = tpu.matmul %1, %2, %cst {dimension_numbers = #tpu.dot_dimension_numbers<[1], [0], [0], [1], [0, 0, 1, 1], [], []>} : vector<64x128xbf16>, vector<128x128xbf16>, vector<64x128xf32> -> vector<64x128xf32>
    %c0_4 = arith.constant 0 : index
    %c0_5 = arith.constant 0 : index
    %4 = vector.load %arg4[%c0_4, %c0_5] : memref<1x128xf32, #tpu.memory_space<vmem>>, vector<1x128xf32>
    %5 = vector.broadcast %4 : vector<1x128xf32> to vector<64x128xf32>
    %6 = arith.addf %3, %5 : vector<64x128xf32>
    %7 = vector.shape_cast %6 : vector<64x128xf32> to vector<8x8x128xf32>
    %8 = tpu.transpose %7, [1, 0, 2] : vector<8x8x128xf32> -> vector<8x8x128xf32>
    %c0_6 = arith.constant 0 : index
    %c0_7 = arith.constant 0 : index
    %c0_8 = arith.constant 0 : index
    %9 = vector.load %arg5[%c0_6, %c0_7, %c0_8] : memref<8x8x128xf32, #tpu.memory_space<vmem>>, vector<8x8x128xf32>
    tpu.vector_store %arg5[%c0_6, %c0_7, %c0_8], %8 {strides = array<i32>} : memref<8x8x128xf32, #tpu.memory_space<vmem>>, vector<8x8x128xf32>,
    return
  }
  func.func @transform_0(%arg0: i32, %arg1: i32) -> (i32, i32, i32) {
    %c0_i32 = arith.constant 0 : i32
    %c0_i32_0 = arith.constant 0 : i32
    %c0_i32_1 = arith.constant 0 : i32
    return %arg1, %c0_i32, %c0_i32_0 : i32, i32, i32
  }
  func.func @transform_1(%arg0: i32, %arg1: i32) -> (i32, i32) {
    %c0_i32 = arith.constant 0 : i32
    %c0_i32_0 = arith.constant 0 : i32
    return %c0_i32, %arg0 : i32, i32
  }
  func.func @transform_2(%arg0: i32, %arg1: i32) -> (i32, i32) {
    %c0_i32 = arith.constant 0 : i32
    %c0_i32_0 = arith.constant 0 : i32
    return %c0_i32, %arg0 : i32, i32
  }
  func.func @transform_3(%arg0: i32, %arg1: i32) -> (i32, i32, i32) {
    %c0_i32 = arith.constant 0 : i32
    %c0_i32_0 = arith.constant 0 : i32
    return %c0_i32, %arg1, %arg0 : i32, i32, i32
  }
}

module attributes {stable_mosaic.version = 11 : i64} {
  func.func @_projection_kernel(%arg0: i32, %arg1: i32, %arg2: memref<8x8x128xbf16, #tpu.memory_space<vmem>>, %arg3: memref<128x128xbf16, #tpu.memory_space<vmem>>, %arg4: memref<1x128xf32, #tpu.memory_space<vmem>>, %arg5: memref<8x8x128xf32, #tpu.memory_space<vmem>>) attributes {dimension_semantics = [#tpu.dimension_semantics<parallel>, #tpu.dimension_semantics<parallel>], iteration_bounds = array<i64: 1, 1>, scalar_prefetch = 0 : i64, scratch_operands = 0 : i64, tpu.core_type = #tpu.core_type<tc>, window_params = [{transform_indices = @transform_0, window_bounds = array<i64: 8, 8, 128>}, {transform_indices = @transform_1, window_bounds = array<i64: 128, 128>}, {transform_indices = @transform_2, window_bounds = array<i64: 1, 128>}, {transform_indices = @transform_3, window_bounds = array<i64: 8, 8, 128>}]} {
    %c0 = arith.constant 0 : index
    %c0_0 = arith.constant 0 : index
    %c0_1 = arith.constant 0 : index
    %0 = vector.load %arg2[%c0, %c0_0, %c0_1] : memref<8x8x128xbf16, #tpu.memory_space<vmem>>, vector<8x8x128xbf16>
    %1 = vector.shape_cast %0 : vector<8x8x128xbf16> to vector<64x128xbf16>
    %c0_2 = arith.constant 0 : index
    %c0_3 = arith.constant 0 : index
    %2 = vector.load %arg3[%c0_2, %c0_3] : memref<128x128xbf16, #tpu.memory_space<vmem>>, vector<128x128xbf16>
    %cst = arith.constant dense<0.000000e+00> : vector<64x128xf32>
    %3 = tpu.matmul %1, %2, %cst {dimension_numbers = #tpu.dot_dimension_numbers<[1], [0], [0], [1], [0, 0, 1, 1], [], []>} : vector<64x128xbf16>, vector<128x128xbf16>, vector<64x128xf32> -> vector<64x128xf32>
    %c0_4 = arith.constant 0 : index
    %c0_5 = arith.constant 0 : index
    %4 = vector.load %arg4[%c0_4, %c0_5] : memref<1x128xf32, #tpu.memory_space<vmem>>, vector<1x128xf32>
    %5 = vector.broadcast %4 : vector<1x128xf32> to vector<64x128xf32>
    %6 = arith.addf %3, %5 : vector<64x128xf32>
    %7 = vector.shape_cast %6 : vector<64x128xf32> to vector<8x8x128xf32>
    %8 = tpu.transpose %7, [1, 0, 2] : vector<8x8x128xf32> -> vector<8x8x128xf32>
    %c0_6 = arith.constant 0 : index
    %c0_7 = arith.constant 0 : index
    %c0_8 = arith.constant 0 : index
    %9 = vector.load %arg5[%c0_6, %c0_7, %c0_8] : memref<8x8x128xf32, #tpu.memory_space<vmem>>, vector<8x8x128xf32>
    tpu.vector_store %arg5[%c0_6, %c0_7, %c0_8], %8 {strides = array<i32>} : memref<8x8x128xf32, #tpu.memory_space<vmem>>, vector<8x8x128xf32>,
    return
  }
  func.func @transform_0(%arg0: i32, %arg1: i32) -> (i32, i32, i32) {
    %c0_i32 = arith.constant 0 : i32
    %c0_i32_0 = arith.constant 0 : i32
    %c0_i32_1 = arith.constant 0 : i32
    return %arg1, %c0_i32, %c0_i32_0 : i32, i32, i32
  }
  func.func @transform_1(%arg0: i32, %arg1: i32) -> (i32, i32) {
    %c0_i32 = arith.constant 0 : i32
    %c0_i32_0 = arith.constant 0 : i32
    return %c0_i32, %arg0 : i32, i32
  }
  func.func @transform_2(%arg0: i32, %arg1: i32) -> (i32, i32) {
    %c0_i32 = arith.constant 0 : i32
    %c0_i32_0 = arith.constant 0 : i32
    return %c0_i32, %arg0 : i32, i32
  }
  func.func @transform_3(%arg0: i32, %arg1: i32) -> (i32, i32, i32) {
    %c0_i32 = arith.constant 0 : i32
    %c0_i32_0 = arith.constant 0 : i32
    return %c0_i32, %arg1, %arg0 : i32, i32, i32
  }
}

module attributes {stable_mosaic.version = 11 : i64} {
  func.func @_lstm_recurrent_kernel(%arg0: i32, %arg1: memref<8x8x512xf32, #tpu.memory_space<vmem>>, %arg2: memref<128x512xbf16, #tpu.memory_space<vmem>>, %arg3: memref<8x8x128xbf16, #tpu.memory_space<vmem>>, %arg4: memref<8x128xbf16, #tpu.memory_space<vmem>>, %arg5: memref<8x128xf32, #tpu.memory_space<vmem>>) attributes {dimension_semantics = [#tpu.dimension_semantics<arbitrary>], iteration_bounds = array<i64: 1>, scalar_prefetch = 0 : i64, scratch_operands = 2 : i64, tpu.core_type = #tpu.core_type<tc>, window_params = [{transform_indices = @transform_0, window_bounds = array<i64: 8, 8, 512>}, {pipeline_mode = #tpu.pipeline_mode<synchronous>, transform_indices = @transform_1, window_bounds = array<i64: 128, 512>}, {transform_indices = @transform_2, window_bounds = array<i64: 8, 8, 128>}]} {
    %c0_i32 = arith.constant 0 : i32
    %0 = arith.cmpi eq, %arg0, %c0_i32 : i32
    %1 = arith.extui %0 : i1 to i32
    %c0_i32_0 = arith.constant 0 : i32
    %2 = arith.cmpi ne, %1, %c0_i32_0 : i32
    scf.if %2 {
      %cst_82 = arith.constant 0.000000e+00 : bf16
      %272 = vector.broadcast %cst_82 : bf16 to vector<8x128xbf16>
      %c0_83 = arith.constant 0 : index
      %c0_84 = arith.constant 0 : index
      %273 = vector.load %arg4[%c0_83, %c0_84] : memref<8x128xbf16, #tpu.memory_space<vmem>>, vector<8x128xbf16>
      tpu.vector_store %arg4[%c0_83, %c0_84], %272 {strides = array<i32>} : memref<8x128xbf16, #tpu.memory_space<vmem>>, vector<8x128xbf16>,
      %cst_85 = arith.constant 0.000000e+00 : f32
      %274 = vector.broadcast %cst_85 : f32 to vector<8x128xf32>
      %c0_86 = arith.constant 0 : index
      %c0_87 = arith.constant 0 : index
      %275 = vector.load %arg5[%c0_86, %c0_87] : memref<8x128xf32, #tpu.memory_space<vmem>>, vector<8x128xf32>
      tpu.vector_store %arg5[%c0_86, %c0_87], %274 {strides = array<i32>} : memref<8x128xf32, #tpu.memory_space<vmem>>, vector<8x128xf32>,
    } else {
    }
    %c0 = arith.constant 0 : index
    %c0_1 = arith.constant 0 : index
    %3 = vector.load %arg2[%c0, %c0_1] : memref<128x512xbf16, #tpu.memory_space<vmem>>, vector<128x512xbf16>
    %c0_2 = arith.constant 0 : index
    %c0_3 = arith.constant 0 : index
    %4 = vector.load %arg4[%c0_2, %c0_3] : memref<8x128xbf16, #tpu.memory_space<vmem>>, vector<8x128xbf16>
    %c0_4 = arith.constant 0 : index
    %c0_5 = arith.constant 0 : index
    %5 = vector.load %arg5[%c0_4, %c0_5] : memref<8x128xf32, #tpu.memory_space<vmem>>, vector<8x128xf32>
    %c0_6 = arith.constant 0 : index
    %c0_7 = arith.constant 0 : index
    %c0_8 = arith.constant 0 : index
    %6 = vector.load %arg1[%c0_6, %c0_7, %c0_8] : memref<8x8x512xf32, #tpu.memory_space<vmem>>, vector<1x8x512xf32>
    %7 = vector.shape_cast %6 : vector<1x8x512xf32> to vector<8x512xf32>
    %cst = arith.constant dense<0.000000e+00> : vector<8x512xf32>
    %8 = tpu.matmul %4, %3, %cst {dimension_numbers = #tpu.dot_dimension_numbers<[1], [0], [0], [1], [0, 0, 1, 1], [], []>} : vector<8x128xbf16>, vector<128x512xbf16>, vector<8x512xf32> -> vector<8x512xf32>
    %9 = arith.addf %7, %8 : vector<8x512xf32>
    %10 = vector.extract_strided_slice %9 {offsets = [0, 0], sizes = [8, 128], strides = [1, 1]} : vector<8x512xf32> to vector<8x128xf32>
    %11 = arith.negf %10 : vector<8x128xf32>
    %12 = math.exp %11 : vector<8x128xf32>
    %cst_9 = arith.constant 1.000000e+00 : f32
    %13 = vector.broadcast %cst_9 : f32 to vector<8x128xf32>
    %14 = arith.addf %13, %12 : vector<8x128xf32>
    %15 = arith.divf %13, %14 : vector<8x128xf32>
    %16 = vector.extract_strided_slice %9 {offsets = [0, 128], sizes = [8, 128], strides = [1, 1]} : vector<8x512xf32> to vector<8x128xf32>
    %17 = arith.negf %16 : vector<8x128xf32>
    %18 = math.exp %17 : vector<8x128xf32>
    %cst_10 = arith.constant 1.000000e+00 : f32
    %19 = vector.broadcast %cst_10 : f32 to vector<8x128xf32>
    %20 = arith.addf %19, %18 : vector<8x128xf32>
    %21 = arith.divf %19, %20 : vector<8x128xf32>
    %22 = vector.extract_strided_slice %9 {offsets = [0, 256], sizes = [8, 128], strides = [1, 1]} : vector<8x512xf32> to vector<8x128xf32>
    %23 = math.tanh %22 : vector<8x128xf32>
    %24 = vector.extract_strided_slice %9 {offsets = [0, 384], sizes = [8, 128], strides = [1, 1]} : vector<8x512xf32> to vector<8x128xf32>
    %25 = arith.negf %24 : vector<8x128xf32>
    %26 = math.exp %25 : vector<8x128xf32>
    %cst_11 = arith.constant 1.000000e+00 : f32
    %27 = vector.broadcast %cst_11 : f32 to vector<8x128xf32>
    %28 = arith.addf %27, %26 : vector<8x128xf32>
    %29 = arith.divf %27, %28 : vector<8x128xf32>
    %30 = arith.mulf %21, %5 : vector<8x128xf32>
    %31 = arith.mulf %15, %23 : vector<8x128xf32>
    %32 = arith.addf %30, %31 : vector<8x128xf32>
    %33 = math.tanh %32 : vector<8x128xf32>
    %34 = arith.mulf %29, %33 : vector<8x128xf32>
    %35 = arith.truncf %34 : vector<8x128xf32> to vector<8x128xbf16>
    %c0_12 = arith.constant 0 : index
    %c0_13 = arith.constant 0 : index
    %c0_14 = arith.constant 0 : index
    %36 = vector.load %arg3[%c0_12, %c0_13, %c0_14] : memref<8x8x128xbf16, #tpu.memory_space<vmem>>, vector<1x8x128xbf16>
    %37 = vector.shape_cast %36 : vector<1x8x128xbf16> to vector<8x128xbf16>
    %38 = vector.shape_cast %35 : vector<8x128xbf16> to vector<1x8x128xbf16>
    tpu.vector_store %arg3[%c0_12, %c0_13, %c0_14], %38 {strides = array<i32>} : memref<8x8x128xbf16, #tpu.memory_space<vmem>>, vector<1x8x128xbf16>,
    %c1 = arith.constant 1 : index
    %c0_15 = arith.constant 0 : index
    %c0_16 = arith.constant 0 : index
    %39 = vector.load %arg1[%c1, %c0_15, %c0_16] : memref<8x8x512xf32, #tpu.memory_space<vmem>>, vector<1x8x512xf32>
    %40 = vector.shape_cast %39 : vector<1x8x512xf32> to vector<8x512xf32>
    %cst_17 = arith.constant dense<0.000000e+00> : vector<8x512xf32>
    %41 = tpu.matmul %35, %3, %cst_17 {dimension_numbers = #tpu.dot_dimension_numbers<[1], [0], [0], [1], [0, 0, 1, 1], [], []>} : vector<8x128xbf16>, vector<128x512xbf16>, vector<8x512xf32> -> vector<8x512xf32>
    %42 = arith.addf %40, %41 : vector<8x512xf32>
    %43 = vector.extract_strided_slice %42 {offsets = [0, 0], sizes = [8, 128], strides = [1, 1]} : vector<8x512xf32> to vector<8x128xf32>
    %44 = arith.negf %43 : vector<8x128xf32>
    %45 = math.exp %44 : vector<8x128xf32>
    %cst_18 = arith.constant 1.000000e+00 : f32
    %46 = vector.broadcast %cst_18 : f32 to vector<8x128xf32>
    %47 = arith.addf %46, %45 : vector<8x128xf32>
    %48 = arith.divf %46, %47 : vector<8x128xf32>
    %49 = vector.extract_strided_slice %42 {offsets = [0, 128], sizes = [8, 128], strides = [1, 1]} : vector<8x512xf32> to vector<8x128xf32>
    %50 = arith.negf %49 : vector<8x128xf32>
    %51 = math.exp %50 : vector<8x128xf32>
    %cst_19 = arith.constant 1.000000e+00 : f32
    %52 = vector.broadcast %cst_19 : f32 to vector<8x128xf32>
    %53 = arith.addf %52, %51 : vector<8x128xf32>
    %54 = arith.divf %52, %53 : vector<8x128xf32>
    %55 = vector.extract_strided_slice %42 {offsets = [0, 256], sizes = [8, 128], strides = [1, 1]} : vector<8x512xf32> to vector<8x128xf32>
    %56 = math.tanh %55 : vector<8x128xf32>
    %57 = vector.extract_strided_slice %42 {offsets = [0, 384], sizes = [8, 128], strides = [1, 1]} : vector<8x512xf32> to vector<8x128xf32>
    %58 = arith.negf %57 : vector<8x128xf32>
    %59 = math.exp %58 : vector<8x128xf32>
    %cst_20 = arith.constant 1.000000e+00 : f32
    %60 = vector.broadcast %cst_20 : f32 to vector<8x128xf32>
    %61 = arith.addf %60, %59 : vector<8x128xf32>
    %62 = arith.divf %60, %61 : vector<8x128xf32>
    %63 = arith.mulf %54, %32 : vector<8x128xf32>
    %64 = arith.mulf %48, %56 : vector<8x128xf32>
    %65 = arith.addf %63, %64 : vector<8x128xf32>
    %66 = math.tanh %65 : vector<8x128xf32>
    %67 = arith.mulf %62, %66 : vector<8x128xf32>
    %68 = arith.truncf %67 : vector<8x128xf32> to vector<8x128xbf16>
    %c1_21 = arith.constant 1 : index
    %c0_22 = arith.constant 0 : index
    %c0_23 = arith.constant 0 : index
    %69 = vector.load %arg3[%c1_21, %c0_22, %c0_23] : memref<8x8x128xbf16, #tpu.memory_space<vmem>>, vector<1x8x128xbf16>
    %70 = vector.shape_cast %69 : vector<1x8x128xbf16> to vector<8x128xbf16>
    %71 = vector.shape_cast %68 : vector<8x128xbf16> to vector<1x8x128xbf16>
    tpu.vector_store %arg3[%c1_21, %c0_22, %c0_23], %71 {strides = array<i32>} : memref<8x8x128xbf16, #tpu.memory_space<vmem>>, vector<1x8x128xbf16>,
    %c2 = arith.constant 2 : index
    %c0_24 = arith.constant 0 : index
    %c0_25 = arith.constant 0 : index
    %72 = vector.load %arg1[%c2, %c0_24, %c0_25] : memref<8x8x512xf32, #tpu.memory_space<vmem>>, vector<1x8x512xf32>
    %73 = vector.shape_cast %72 : vector<1x8x512xf32> to vector<8x512xf32>
    %cst_26 = arith.constant dense<0.000000e+00> : vector<8x512xf32>
    %74 = tpu.matmul %68, %3, %cst_26 {dimension_numbers = #tpu.dot_dimension_numbers<[1], [0], [0], [1], [0, 0, 1, 1], [], []>} : vector<8x128xbf16>, vector<128x512xbf16>, vector<8x512xf32> -> vector<8x512xf32>
    %75 = arith.addf %73, %74 : vector<8x512xf32>
    %76 = vector.extract_strided_slice %75 {offsets = [0, 0], sizes = [8, 128], strides = [1, 1]} : vector<8x512xf32> to vector<8x128xf32>
    %77 = arith.negf %76 : vector<8x128xf32>
    %78 = math.exp %77 : vector<8x128xf32>
    %cst_27 = arith.constant 1.000000e+00 : f32
    %79 = vector.broadcast %cst_27 : f32 to vector<8x128xf32>
    %80 = arith.addf %79, %78 : vector<8x128xf32>
    %81 = arith.divf %79, %80 : vector<8x128xf32>
    %82 = vector.extract_strided_slice %75 {offsets = [0, 128], sizes = [8, 128], strides = [1, 1]} : vector<8x512xf32> to vector<8x128xf32>
    %83 = arith.negf %82 : vector<8x128xf32>
    %84 = math.exp %83 : vector<8x128xf32>
    %cst_28 = arith.constant 1.000000e+00 : f32
    %85 = vector.broadcast %cst_28 : f32 to vector<8x128xf32>
    %86 = arith.addf %85, %84 : vector<8x128xf32>
    %87 = arith.divf %85, %86 : vector<8x128xf32>
    %88 = vector.extract_strided_slice %75 {offsets = [0, 256], sizes = [8, 128], strides = [1, 1]} : vector<8x512xf32> to vector<8x128xf32>
    %89 = math.tanh %88 : vector<8x128xf32>
    %90 = vector.extract_strided_slice %75 {offsets = [0, 384], sizes = [8, 128], strides = [1, 1]} : vector<8x512xf32> to vector<8x128xf32>
    %91 = arith.negf %90 : vector<8x128xf32>
    %92 = math.exp %91 : vector<8x128xf32>
    %cst_29 = arith.constant 1.000000e+00 : f32
    %93 = vector.broadcast %cst_29 : f32 to vector<8x128xf32>
    %94 = arith.addf %93, %92 : vector<8x128xf32>
    %95 = arith.divf %93, %94 : vector<8x128xf32>
    %96 = arith.mulf %87, %65 : vector<8x128xf32>
    %97 = arith.mulf %81, %89 : vector<8x128xf32>
    %98 = arith.addf %96, %97 : vector<8x128xf32>
    %99 = math.tanh %98 : vector<8x128xf32>
    %100 = arith.mulf %95, %99 : vector<8x128xf32>
    %101 = arith.truncf %100 : vector<8x128xf32> to vector<8x128xbf16>
    %c2_30 = arith.constant 2 : index
    %c0_31 = arith.constant 0 : index
    %c0_32 = arith.constant 0 : index
    %102 = vector.load %arg3[%c2_30, %c0_31, %c0_32] : memref<8x8x128xbf16, #tpu.memory_space<vmem>>, vector<1x8x128xbf16>
    %103 = vector.shape_cast %102 : vector<1x8x128xbf16> to vector<8x128xbf16>
    %104 = vector.shape_cast %101 : vector<8x128xbf16> to vector<1x8x128xbf16>
    tpu.vector_store %arg3[%c2_30, %c0_31, %c0_32], %104 {strides = array<i32>} : memref<8x8x128xbf16, #tpu.memory_space<vmem>>, vector<1x8x128xbf16>,
    %c3 = arith.constant 3 : index
    %c0_33 = arith.constant 0 : index
    %c0_34 = arith.constant 0 : index
    %105 = vector.load %arg1[%c3, %c0_33, %c0_34] : memref<8x8x512xf32, #tpu.memory_space<vmem>>, vector<1x8x512xf32>
    %106 = vector.shape_cast %105 : vector<1x8x512xf32> to vector<8x512xf32>
    %cst_35 = arith.constant dense<0.000000e+00> : vector<8x512xf32>
    %107 = tpu.matmul %101, %3, %cst_35 {dimension_numbers = #tpu.dot_dimension_numbers<[1], [0], [0], [1], [0, 0, 1, 1], [], []>} : vector<8x128xbf16>, vector<128x512xbf16>, vector<8x512xf32> -> vector<8x512xf32>
    %108 = arith.addf %106, %107 : vector<8x512xf32>
    %109 = vector.extract_strided_slice %108 {offsets = [0, 0], sizes = [8, 128], strides = [1, 1]} : vector<8x512xf32> to vector<8x128xf32>
    %110 = arith.negf %109 : vector<8x128xf32>
    %111 = math.exp %110 : vector<8x128xf32>
    %cst_36 = arith.constant 1.000000e+00 : f32
    %112 = vector.broadcast %cst_36 : f32 to vector<8x128xf32>
    %113 = arith.addf %112, %111 : vector<8x128xf32>
    %114 = arith.divf %112, %113 : vector<8x128xf32>
    %115 = vector.extract_strided_slice %108 {offsets = [0, 128], sizes = [8, 128], strides = [1, 1]} : vector<8x512xf32> to vector<8x128xf32>
    %116 = arith.negf %115 : vector<8x128xf32>
    %117 = math.exp %116 : vector<8x128xf32>
    %cst_37 = arith.constant 1.000000e+00 : f32
    %118 = vector.broadcast %cst_37 : f32 to vector<8x128xf32>
    %119 = arith.addf %118, %117 : vector<8x128xf32>
    %120 = arith.divf %118, %119 : vector<8x128xf32>
    %121 = vector.extract_strided_slice %108 {offsets = [0, 256], sizes = [8, 128], strides = [1, 1]} : vector<8x512xf32> to vector<8x128xf32>
    %122 = math.tanh %121 : vector<8x128xf32>
    %123 = vector.extract_strided_slice %108 {offsets = [0, 384], sizes = [8, 128], strides = [1, 1]} : vector<8x512xf32> to vector<8x128xf32>
    %124 = arith.negf %123 : vector<8x128xf32>
    %125 = math.exp %124 : vector<8x128xf32>
    %cst_38 = arith.constant 1.000000e+00 : f32
    %126 = vector.broadcast %cst_38 : f32 to vector<8x128xf32>
    %127 = arith.addf %126, %125 : vector<8x128xf32>
    %128 = arith.divf %126, %127 : vector<8x128xf32>
    %129 = arith.mulf %120, %98 : vector<8x128xf32>
    %130 = arith.mulf %114, %122 : vector<8x128xf32>
    %131 = arith.addf %129, %130 : vector<8x128xf32>
    %132 = math.tanh %131 : vector<8x128xf32>
    %133 = arith.mulf %128, %132 : vector<8x128xf32>
    %134 = arith.truncf %133 : vector<8x128xf32> to vector<8x128xbf16>
    %c3_39 = arith.constant 3 : index
    %c0_40 = arith.constant 0 : index
    %c0_41 = arith.constant 0 : index
    %135 = vector.load %arg3[%c3_39, %c0_40, %c0_41] : memref<8x8x128xbf16, #tpu.memory_space<vmem>>, vector<1x8x128xbf16>
    %136 = vector.shape_cast %135 : vector<1x8x128xbf16> to vector<8x128xbf16>
    %137 = vector.shape_cast %134 : vector<8x128xbf16> to vector<1x8x128xbf16>
    tpu.vector_store %arg3[%c3_39, %c0_40, %c0_41], %137 {strides = array<i32>} : memref<8x8x128xbf16, #tpu.memory_space<vmem>>, vector<1x8x128xbf16>,
    %c4 = arith.constant 4 : index
    %c0_42 = arith.constant 0 : index
    %c0_43 = arith.constant 0 : index
    %138 = vector.load %arg1[%c4, %c0_42, %c0_43] : memref<8x8x512xf32, #tpu.memory_space<vmem>>, vector<1x8x512xf32>
    %139 = vector.shape_cast %138 : vector<1x8x512xf32> to vector<8x512xf32>
    %cst_44 = arith.constant dense<0.000000e+00> : vector<8x512xf32>
    %140 = tpu.matmul %134, %3, %cst_44 {dimension_numbers = #tpu.dot_dimension_numbers<[1], [0], [0], [1], [0, 0, 1, 1], [], []>} : vector<8x128xbf16>, vector<128x512xbf16>, vector<8x512xf32> -> vector<8x512xf32>
    %141 = arith.addf %139, %140 : vector<8x512xf32>
    %142 = vector.extract_strided_slice %141 {offsets = [0, 0], sizes = [8, 128], strides = [1, 1]} : vector<8x512xf32> to vector<8x128xf32>
    %143 = arith.negf %142 : vector<8x128xf32>
    %144 = math.exp %143 : vector<8x128xf32>
    %cst_45 = arith.constant 1.000000e+00 : f32
    %145 = vector.broadcast %cst_45 : f32 to vector<8x128xf32>
    %146 = arith.addf %145, %144 : vector<8x128xf32>
    %147 = arith.divf %145, %146 : vector<8x128xf32>
    %148 = vector.extract_strided_slice %141 {offsets = [0, 128], sizes = [8, 128], strides = [1, 1]} : vector<8x512xf32> to vector<8x128xf32>
    %149 = arith.negf %148 : vector<8x128xf32>
    %150 = math.exp %149 : vector<8x128xf32>
    %cst_46 = arith.constant 1.000000e+00 : f32
    %151 = vector.broadcast %cst_46 : f32 to vector<8x128xf32>
    %152 = arith.addf %151, %150 : vector<8x128xf32>
    %153 = arith.divf %151, %152 : vector<8x128xf32>
    %154 = vector.extract_strided_slice %141 {offsets = [0, 256], sizes = [8, 128], strides = [1, 1]} : vector<8x512xf32> to vector<8x128xf32>
    %155 = math.tanh %154 : vector<8x128xf32>
    %156 = vector.extract_strided_slice %141 {offsets = [0, 384], sizes = [8, 128], strides = [1, 1]} : vector<8x512xf32> to vector<8x128xf32>
    %157 = arith.negf %156 : vector<8x128xf32>
    %158 = math.exp %157 : vector<8x128xf32>
    %cst_47 = arith.constant 1.000000e+00 : f32
    %159 = vector.broadcast %cst_47 : f32 to vector<8x128xf32>
    %160 = arith.addf %159, %158 : vector<8x128xf32>
    %161 = arith.divf %159, %160 : vector<8x128xf32>
    %162 = arith.mulf %153, %131 : vector<8x128xf32>
    %163 = arith.mulf %147, %155 : vector<8x128xf32>
    %164 = arith.addf %162, %163 : vector<8x128xf32>
    %165 = math.tanh %164 : vector<8x128xf32>
    %166 = arith.mulf %161, %165 : vector<8x128xf32>
    %167 = arith.truncf %166 : vector<8x128xf32> to vector<8x128xbf16>
    %c4_48 = arith.constant 4 : index
    %c0_49 = arith.constant 0 : index
    %c0_50 = arith.constant 0 : index
    %168 = vector.load %arg3[%c4_48, %c0_49, %c0_50] : memref<8x8x128xbf16, #tpu.memory_space<vmem>>, vector<1x8x128xbf16>
    %169 = vector.shape_cast %168 : vector<1x8x128xbf16> to vector<8x128xbf16>
    %170 = vector.shape_cast %167 : vector<8x128xbf16> to vector<1x8x128xbf16>
    tpu.vector_store %arg3[%c4_48, %c0_49, %c0_50], %170 {strides = array<i32>} : memref<8x8x128xbf16, #tpu.memory_space<vmem>>, vector<1x8x128xbf16>,
    %c5 = arith.constant 5 : index
    %c0_51 = arith.constant 0 : index
    %c0_52 = arith.constant 0 : index
    %171 = vector.load %arg1[%c5, %c0_51, %c0_52] : memref<8x8x512xf32, #tpu.memory_space<vmem>>, vector<1x8x512xf32>
    %172 = vector.shape_cast %171 : vector<1x8x512xf32> to vector<8x512xf32>
    %cst_53 = arith.constant dense<0.000000e+00> : vector<8x512xf32>
    %173 = tpu.matmul %167, %3, %cst_53 {dimension_numbers = #tpu.dot_dimension_numbers<[1], [0], [0], [1], [0, 0, 1, 1], [], []>} : vector<8x128xbf16>, vector<128x512xbf16>, vector<8x512xf32> -> vector<8x512xf32>
    %174 = arith.addf %172, %173 : vector<8x512xf32>
    %175 = vector.extract_strided_slice %174 {offsets = [0, 0], sizes = [8, 128], strides = [1, 1]} : vector<8x512xf32> to vector<8x128xf32>
    %176 = arith.negf %175 : vector<8x128xf32>
    %177 = math.exp %176 : vector<8x128xf32>
    %cst_54 = arith.constant 1.000000e+00 : f32
    %178 = vector.broadcast %cst_54 : f32 to vector<8x128xf32>
    %179 = arith.addf %178, %177 : vector<8x128xf32>
    %180 = arith.divf %178, %179 : vector<8x128xf32>
    %181 = vector.extract_strided_slice %174 {offsets = [0, 128], sizes = [8, 128], strides = [1, 1]} : vector<8x512xf32> to vector<8x128xf32>
    %182 = arith.negf %181 : vector<8x128xf32>
    %183 = math.exp %182 : vector<8x128xf32>
    %cst_55 = arith.constant 1.000000e+00 : f32
    %184 = vector.broadcast %cst_55 : f32 to vector<8x128xf32>
    %185 = arith.addf %184, %183 : vector<8x128xf32>
    %186 = arith.divf %184, %185 : vector<8x128xf32>
    %187 = vector.extract_strided_slice %174 {offsets = [0, 256], sizes = [8, 128], strides = [1, 1]} : vector<8x512xf32> to vector<8x128xf32>
    %188 = math.tanh %187 : vector<8x128xf32>
    %189 = vector.extract_strided_slice %174 {offsets = [0, 384], sizes = [8, 128], strides = [1, 1]} : vector<8x512xf32> to vector<8x128xf32>
    %190 = arith.negf %189 : vector<8x128xf32>
    %191 = math.exp %190 : vector<8x128xf32>
    %cst_56 = arith.constant 1.000000e+00 : f32
    %192 = vector.broadcast %cst_56 : f32 to vector<8x128xf32>
    %193 = arith.addf %192, %191 : vector<8x128xf32>
    %194 = arith.divf %192, %193 : vector<8x128xf32>
    %195 = arith.mulf %186, %164 : vector<8x128xf32>
    %196 = arith.mulf %180, %188 : vector<8x128xf32>
    %197 = arith.addf %195, %196 : vector<8x128xf32>
    %198 = math.tanh %197 : vector<8x128xf32>
    %199 = arith.mulf %194, %198 : vector<8x128xf32>
    %200 = arith.truncf %199 : vector<8x128xf32> to vector<8x128xbf16>
    %c5_57 = arith.constant 5 : index
    %c0_58 = arith.constant 0 : index
    %c0_59 = arith.constant 0 : index
    %201 = vector.load %arg3[%c5_57, %c0_58, %c0_59] : memref<8x8x128xbf16, #tpu.memory_space<vmem>>, vector<1x8x128xbf16>
    %202 = vector.shape_cast %201 : vector<1x8x128xbf16> to vector<8x128xbf16>
    %203 = vector.shape_cast %200 : vector<8x128xbf16> to vector<1x8x128xbf16>
    tpu.vector_store %arg3[%c5_57, %c0_58, %c0_59], %203 {strides = array<i32>} : memref<8x8x128xbf16, #tpu.memory_space<vmem>>, vector<1x8x128xbf16>,
    %c6 = arith.constant 6 : index
    %c0_60 = arith.constant 0 : index
    %c0_61 = arith.constant 0 : index
    %204 = vector.load %arg1[%c6, %c0_60, %c0_61] : memref<8x8x512xf32, #tpu.memory_space<vmem>>, vector<1x8x512xf32>
    %205 = vector.shape_cast %204 : vector<1x8x512xf32> to vector<8x512xf32>
    %cst_62 = arith.constant dense<0.000000e+00> : vector<8x512xf32>
    %206 = tpu.matmul %200, %3, %cst_62 {dimension_numbers = #tpu.dot_dimension_numbers<[1], [0], [0], [1], [0, 0, 1, 1], [], []>} : vector<8x128xbf16>, vector<128x512xbf16>, vector<8x512xf32> -> vector<8x512xf32>
    %207 = arith.addf %205, %206 : vector<8x512xf32>
    %208 = vector.extract_strided_slice %207 {offsets = [0, 0], sizes = [8, 128], strides = [1, 1]} : vector<8x512xf32> to vector<8x128xf32>
    %209 = arith.negf %208 : vector<8x128xf32>
    %210 = math.exp %209 : vector<8x128xf32>
    %cst_63 = arith.constant 1.000000e+00 : f32
    %211 = vector.broadcast %cst_63 : f32 to vector<8x128xf32>
    %212 = arith.addf %211, %210 : vector<8x128xf32>
    %213 = arith.divf %211, %212 : vector<8x128xf32>
    %214 = vector.extract_strided_slice %207 {offsets = [0, 128], sizes = [8, 128], strides = [1, 1]} : vector<8x512xf32> to vector<8x128xf32>
    %215 = arith.negf %214 : vector<8x128xf32>
    %216 = math.exp %215 : vector<8x128xf32>
    %cst_64 = arith.constant 1.000000e+00 : f32
    %217 = vector.broadcast %cst_64 : f32 to vector<8x128xf32>
    %218 = arith.addf %217, %216 : vector<8x128xf32>
    %219 = arith.divf %217, %218 : vector<8x128xf32>
    %220 = vector.extract_strided_slice %207 {offsets = [0, 256], sizes = [8, 128], strides = [1, 1]} : vector<8x512xf32> to vector<8x128xf32>
    %221 = math.tanh %220 : vector<8x128xf32>
    %222 = vector.extract_strided_slice %207 {offsets = [0, 384], sizes = [8, 128], strides = [1, 1]} : vector<8x512xf32> to vector<8x128xf32>
    %223 = arith.negf %222 : vector<8x128xf32>
    %224 = math.exp %223 : vector<8x128xf32>
    %cst_65 = arith.constant 1.000000e+00 : f32
    %225 = vector.broadcast %cst_65 : f32 to vector<8x128xf32>
    %226 = arith.addf %225, %224 : vector<8x128xf32>
    %227 = arith.divf %225, %226 : vector<8x128xf32>
    %228 = arith.mulf %219, %197 : vector<8x128xf32>
    %229 = arith.mulf %213, %221 : vector<8x128xf32>
    %230 = arith.addf %228, %229 : vector<8x128xf32>
    %231 = math.tanh %230 : vector<8x128xf32>
    %232 = arith.mulf %227, %231 : vector<8x128xf32>
    %233 = arith.truncf %232 : vector<8x128xf32> to vector<8x128xbf16>
    %c6_66 = arith.constant 6 : index
    %c0_67 = arith.constant 0 : index
    %c0_68 = arith.constant 0 : index
    %234 = vector.load %arg3[%c6_66, %c0_67, %c0_68] : memref<8x8x128xbf16, #tpu.memory_space<vmem>>, vector<1x8x128xbf16>
    %235 = vector.shape_cast %234 : vector<1x8x128xbf16> to vector<8x128xbf16>
    %236 = vector.shape_cast %233 : vector<8x128xbf16> to vector<1x8x128xbf16>
    tpu.vector_store %arg3[%c6_66, %c0_67, %c0_68], %236 {strides = array<i32>} : memref<8x8x128xbf16, #tpu.memory_space<vmem>>, vector<1x8x128xbf16>,
    %c7 = arith.constant 7 : index
    %c0_69 = arith.constant 0 : index
    %c0_70 = arith.constant 0 : index
    %237 = vector.load %arg1[%c7, %c0_69, %c0_70] : memref<8x8x512xf32, #tpu.memory_space<vmem>>, vector<1x8x512xf32>
    %238 = vector.shape_cast %237 : vector<1x8x512xf32> to vector<8x512xf32>
    %cst_71 = arith.constant dense<0.000000e+00> : vector<8x512xf32>
    %239 = tpu.matmul %233, %3, %cst_71 {dimension_numbers = #tpu.dot_dimension_numbers<[1], [0], [0], [1], [0, 0, 1, 1], [], []>} : vector<8x128xbf16>, vector<128x512xbf16>, vector<8x512xf32> -> vector<8x512xf32>
    %240 = arith.addf %238, %239 : vector<8x512xf32>
    %241 = vector.extract_strided_slice %240 {offsets = [0, 0], sizes = [8, 128], strides = [1, 1]} : vector<8x512xf32> to vector<8x128xf32>
    %242 = arith.negf %241 : vector<8x128xf32>
    %243 = math.exp %242 : vector<8x128xf32>
    %cst_72 = arith.constant 1.000000e+00 : f32
    %244 = vector.broadcast %cst_72 : f32 to vector<8x128xf32>
    %245 = arith.addf %244, %243 : vector<8x128xf32>
    %246 = arith.divf %244, %245 : vector<8x128xf32>
    %247 = vector.extract_strided_slice %240 {offsets = [0, 128], sizes = [8, 128], strides = [1, 1]} : vector<8x512xf32> to vector<8x128xf32>
    %248 = arith.negf %247 : vector<8x128xf32>
    %249 = math.exp %248 : vector<8x128xf32>
    %cst_73 = arith.constant 1.000000e+00 : f32
    %250 = vector.broadcast %cst_73 : f32 to vector<8x128xf32>
    %251 = arith.addf %250, %249 : vector<8x128xf32>
    %252 = arith.divf %250, %251 : vector<8x128xf32>
    %253 = vector.extract_strided_slice %240 {offsets = [0, 256], sizes = [8, 128], strides = [1, 1]} : vector<8x512xf32> to vector<8x128xf32>
    %254 = math.tanh %253 : vector<8x128xf32>
    %255 = vector.extract_strided_slice %240 {offsets = [0, 384], sizes = [8, 128], strides = [1, 1]} : vector<8x512xf32> to vector<8x128xf32>
    %256 = arith.negf %255 : vector<8x128xf32>
    %257 = math.exp %256 : vector<8x128xf32>
    %cst_74 = arith.constant 1.000000e+00 : f32
    %258 = vector.broadcast %cst_74 : f32 to vector<8x128xf32>
    %259 = arith.addf %258, %257 : vector<8x128xf32>
    %260 = arith.divf %258, %259 : vector<8x128xf32>
    %261 = arith.mulf %252, %230 : vector<8x128xf32>
    %262 = arith.mulf %246, %254 : vector<8x128xf32>
    %263 = arith.addf %261, %262 : vector<8x128xf32>
    %264 = math.tanh %263 : vector<8x128xf32>
    %265 = arith.mulf %260, %264 : vector<8x128xf32>
    %266 = arith.truncf %265 : vector<8x128xf32> to vector<8x128xbf16>
    %c7_75 = arith.constant 7 : index
    %c0_76 = arith.constant 0 : index
    %c0_77 = arith.constant 0 : index
    %267 = vector.load %arg3[%c7_75, %c0_76, %c0_77] : memref<8x8x128xbf16, #tpu.memory_space<vmem>>, vector<1x8x128xbf16>
    %268 = vector.shape_cast %267 : vector<1x8x128xbf16> to vector<8x128xbf16>
    %269 = vector.shape_cast %266 : vector<8x128xbf16> to vector<1x8x128xbf16>
    tpu.vector_store %arg3[%c7_75, %c0_76, %c0_77], %269 {strides = array<i32>} : memref<8x8x128xbf16, #tpu.memory_space<vmem>>, vector<1x8x128xbf16>,
    %c0_78 = arith.constant 0 : index
    %c0_79 = arith.constant 0 : index
    %270 = vector.load %arg4[%c0_78, %c0_79] : memref<8x128xbf16, #tpu.memory_space<vmem>>, vector<8x128xbf16>
    tpu.vector_store %arg4[%c0_78, %c0_79], %266 {strides = array<i32>} : memref<8x128xbf16, #tpu.memory_space<vmem>>, vector<8x128xbf16>,
    %c0_80 = arith.constant 0 : index
    %c0_81 = arith.constant 0 : index
    %271 = vector.load %arg5[%c0_80, %c0_81] : memref<8x128xf32, #tpu.memory_space<vmem>>, vector<8x128xf32>
    tpu.vector_store %arg5[%c0_80, %c0_81], %263 {strides = array<i32>} : memref<8x128xf32, #tpu.memory_space<vmem>>, vector<8x128xf32>,
    return
  }
  func.func @transform_0(%arg0: i32) -> (i32, i32, i32) {
    %c0_i32 = arith.constant 0 : i32
    %c0_i32_0 = arith.constant 0 : i32
    %c0_i32_1 = arith.constant 0 : i32
    return %arg0, %c0_i32, %c0_i32_0 : i32, i32, i32
  }
  func.func @transform_1(%arg0: i32) -> (i32, i32) {
    %c0_i32 = arith.constant 0 : i32
    %c0_i32_0 = arith.constant 0 : i32
    %c0_i32_1 = arith.constant 0 : i32
    return %c0_i32, %c0_i32_0 : i32, i32
  }
  func.func @transform_2(%arg0: i32) -> (i32, i32, i32) {
    %c0_i32 = arith.constant 0 : i32
    %c0_i32_0 = arith.constant 0 : i32
    %c0_i32_1 = arith.constant 0 : i32
    return %arg0, %c0_i32, %c0_i32_0 : i32, i32, i32
  }
}

module attributes {stable_mosaic.version = 11 : i64} {
  func.func @_xgate_kernel(%arg0: i32, %arg1: i32, %arg2: memref<64x128xbf16, #tpu.memory_space<vmem>>, %arg3: memref<128x512xbf16, #tpu.memory_space<vmem>>, %arg4: memref<1x512xf32, #tpu.memory_space<vmem>>, %arg5: memref<64x512xf32, #tpu.memory_space<vmem>>) attributes {dimension_semantics = [#tpu.dimension_semantics<parallel>, #tpu.dimension_semantics<parallel>], iteration_bounds = array<i64: 1, 1>, scalar_prefetch = 0 : i64, scratch_operands = 0 : i64, tpu.core_type = #tpu.core_type<tc>, window_params = [{transform_indices = @transform_0, window_bounds = array<i64: 64, 128>}, {transform_indices = @transform_1, window_bounds = array<i64: 128, 512>}, {transform_indices = @transform_2, window_bounds = array<i64: 1, 512>}, {transform_indices = @transform_3, window_bounds = array<i64: 64, 512>}]} {
    %c0 = arith.constant 0 : index
    %c0_0 = arith.constant 0 : index
    %0 = vector.load %arg2[%c0, %c0_0] : memref<64x128xbf16, #tpu.memory_space<vmem>>, vector<64x128xbf16>
    %c0_1 = arith.constant 0 : index
    %c0_2 = arith.constant 0 : index
    %1 = vector.load %arg3[%c0_1, %c0_2] : memref<128x512xbf16, #tpu.memory_space<vmem>>, vector<128x512xbf16>
    %cst = arith.constant dense<0.000000e+00> : vector<64x512xf32>
    %2 = tpu.matmul %0, %1, %cst {dimension_numbers = #tpu.dot_dimension_numbers<[1], [0], [0], [1], [0, 0, 1, 1], [], []>} : vector<64x128xbf16>, vector<128x512xbf16>, vector<64x512xf32> -> vector<64x512xf32>
    %c0_3 = arith.constant 0 : index
    %c0_4 = arith.constant 0 : index
    %3 = vector.load %arg4[%c0_3, %c0_4] : memref<1x512xf32, #tpu.memory_space<vmem>>, vector<1x512xf32>
    %4 = vector.broadcast %3 : vector<1x512xf32> to vector<64x512xf32>
    %5 = arith.addf %2, %4 : vector<64x512xf32>
    %c0_5 = arith.constant 0 : index
    %c0_6 = arith.constant 0 : index
    %6 = vector.load %arg5[%c0_5, %c0_6] : memref<64x512xf32, #tpu.memory_space<vmem>>, vector<64x512xf32>
    tpu.vector_store %arg5[%c0_5, %c0_6], %5 {strides = array<i32>} : memref<64x512xf32, #tpu.memory_space<vmem>>, vector<64x512xf32>,
    return
  }
  func.func @transform_0(%arg0: i32, %arg1: i32) -> (i32, i32) {
    %c0_i32 = arith.constant 0 : i32
    %c0_i32_0 = arith.constant 0 : i32
    return %arg1, %c0_i32 : i32, i32
  }
  func.func @transform_1(%arg0: i32, %arg1: i32) -> (i32, i32) {
    %c0_i32 = arith.constant 0 : i32
    %c0_i32_0 = arith.constant 0 : i32
    return %c0_i32, %arg0 : i32, i32
  }
  func.func @transform_2(%arg0: i32, %arg1: i32) -> (i32, i32) {
    %c0_i32 = arith.constant 0 : i32
    %c0_i32_0 = arith.constant 0 : i32
    return %c0_i32, %arg0 : i32, i32
  }
  func.func @transform_3(%arg0: i32, %arg1: i32) -> (i32, i32) {
    %c0_i32 = arith.constant 0 : i32
    return %arg1, %arg0 : i32, i32
  }
}

</mosaic_0001>

<bundles_post_ra>
// kernel: decoder_rnn_forward.3
= control target key start
LH: loop header
LB: loop body
LE: loop exit
PB: predicated region body
PF: predicated region fallthrough
CT: control target
= control target key end

     0   :  { %v532_v1 = vmov 0   ;;  %v57_v37 = vlaneseq  ;;  %s808_s1 = inlined_call_operand.vmem [shape: bf16[128,512], index: 1, kind: input, shape index: {}]   ;;  %s809_s0 = inlined_call_operand.vmem [shape: bf16[64,128], index: 0, kind: input, shape index: {}]   ;;  %s810_s2 = inlined_call_operand.vmem [shape: f32[1,512], index: 2, kind: input, shape index: {}]   ;;  %s811_s3 = inlined_call_operand.vmem [shape: f32[64,512], index: 3, kind: output, shape index: {}]  }
   0x1   :  { %v480_v0 = vld [vmem:[%s808_s1 + $0x4] ss:$16 sps:$4 sm:$0xff]   ;;  %293 = vmatprep.mubr.bf16.mxu0 %v532_v1  ;;  %366 = vmatprep.mubr.bf16.mxu1 %v532_v1  ;;  %v482_v2 = vld [vmem:[%s808_s1 + $0xc] ss:$16 sps:$4 sm:$0xff]   ;;  %v484_v3 = vld [vmem:[%s808_s1] ss:$16 sps:$4 sm:$0xff]  }
   0x2   :  { %261 = vmatprep.subr.bf16.mxu0 %v480_v0  ;;  %v485_v4 = vld [vmem:[%s808_s1 + $0x8] ss:$16 sps:$4 sm:$0xff]   ;;  %334 = vmatprep.subr.bf16.mxu1 %v482_v2  ;;  %v486_v5 = vld [vmem:[%s808_s1 + $0x24] ss:$16 sps:$4 sm:$0xff]   ;;  %v488_v6 = vld [vmem:[%s808_s1 + $0x2c] ss:$16 sps:$4 sm:$0xff]  }
   0x3   :  { %262 = vmatpush1.bf16.msra.mxu0 %v484_v3  ;;  %335 = vmatpush1.bf16.msra.mxu1 %v485_v4  ;;  %v490_v7 = vld [vmem:[%s808_s1 + $0x20] ss:$16 sps:$4 sm:$0xff]   ;;  %v491_v8 = vld [vmem:[%s808_s1 + $0x28] ss:$16 sps:$4 sm:$0xff]   ;;  %v492_v9 = vld [vmem:[%s808_s1 + $0x44] ss:$16 sps:$4 sm:$0xff]  }
   0x4   :  { %263 = vmatprep.subr.bf16.mxu0 %v486_v5  ;;  %336 = vmatprep.subr.bf16.mxu1 %v488_v6  ;;  %v494_v10 = vld [vmem:[%s808_s1 + $0x4c] ss:$16 sps:$4 sm:$0xff]   ;;  %v496_v11 = vld [vmem:[%s808_s1 + $0x40] ss:$16 sps:$4 sm:$0xff]   ;;  %v497_v12 = vld [vmem:[%s808_s1 + $0x48] ss:$16 sps:$4 sm:$0xff]  }
   0x5   :  { %v498_v13 = vld [vmem:[%s808_s1 + $0x64] ss:$16 sps:$4 sm:$0xff]   ;;  %v500_v14 = vld [vmem:[%s808_s1 + $0x6c] ss:$16 sps:$4 sm:$0xff]   ;;  %v502_v15 = vld [vmem:[%s808_s1 + $0x60] ss:$16 sps:$4 sm:$0xff]  }
   0x6   :  { %v503_v16 = vld [vmem:[%s808_s1 + $0x68] ss:$16 sps:$4 sm:$0xff]   ;;  %v504_v17 = vld [vmem:[%s808_s1 + $0x84] ss:$16 sps:$4 sm:$0xff]   ;;  %v506_v18 = vld [vmem:[%s808_s1 + $0x8c] ss:$16 sps:$4 sm:$0xff]  }
   0x7   :  { %264 = vmatpush1.bf16.msra.mxu0 %v490_v7  ;;  %337 = vmatpush1.bf16.msra.mxu1 %v491_v8  ;;  %v508_v19 = vld [vmem:[%s808_s1 + $0x80] ss:$16 sps:$4 sm:$0xff]   ;;  %v509_v20 = vld [vmem:[%s808_s1 + $0x88] ss:$16 sps:$4 sm:$0xff]   ;;  %v510_v21 = vld [vmem:[%s808_s1 + $0xa4] ss:$16 sps:$4 sm:$0xff]  }
   0x8   :  { %265 = vmatprep.subr.bf16.mxu0 %v492_v9  ;;  %338 = vmatprep.subr.bf16.mxu1 %v494_v10  ;;  %v512_v22 = vld [vmem:[%s808_s1 + $0xac] ss:$16 sps:$4 sm:$0xff]   ;;  %v514_v23 = vld [vmem:[%s808_s1 + $0xa0] ss:$16 sps:$4 sm:$0xff]   ;;  %v515_v24 = vld [vmem:[%s808_s1 + $0xa8] ss:$16 sps:$4 sm:$0xff]  }
   0x9   :  { %v516_v25 = vld [vmem:[%s808_s1 + $0xc4] ss:$16 sps:$4 sm:$0xff]   ;;  %v518_v26 = vld [vmem:[%s808_s1 + $0xcc] ss:$16 sps:$4 sm:$0xff]   ;;  %v520_v27 = vld [vmem:[%s808_s1 + $0xc0] ss:$16 sps:$4 sm:$0xff]  }
   0xa   :  { %v521_v28 = vld [vmem:[%s808_s1 + $0xc8] ss:$16 sps:$4 sm:$0xff]   ;;  %v522_v29 = vld [vmem:[%s808_s1 + $0xe4] ss:$16 sps:$4 sm:$0xff]   ;;  %v524_v30 = vld [vmem:[%s808_s1 + $0xec] ss:$16 sps:$4 sm:$0xff]  }
   0xb   :  { %266 = vmatpush1.bf16.msra.mxu0 %v496_v11  ;;  %339 = vmatpush1.bf16.msra.mxu1 %v497_v12  ;;  %v526_v31 = vld [vmem:[%s808_s1 + $0xe0] ss:$16 sps:$4 sm:$0xff]   ;;  %v527_v32 = vld [vmem:[%s808_s1 + $0xe8] ss:$16 sps:$4 sm:$0xff]   ;;  %v58_v38 = vshrl.u32 %v57_v37, 7 }
   0xc   :  { %267 = vmatprep.subr.bf16.mxu0 %v498_v13  ;;  %340 = vmatprep.subr.bf16.mxu1 %v500_v14  ;;  %v528_v33 = vld [vmem:[%s809_s0] sm:$0xff]   ;;  %v529_v34 = vld [vmem:[%s809_s0 + $0x8] sm:$0xff]   ;;  %v530_v35 = vld [vmem:[%s809_s0 + $0x10] sm:$0xff]  }
   0xd   :  { %v531_v36 = vld [vmem:[%s809_s0 + $0x18] sm:$0xff]   ;;  %v59_v39 = vsub.s32 0, %v58_v38  ;;  %v67_v40 = vsub.s32 2, %v58_v38  ;;  %v55_v41 = vld [vmem:[%s810_s2] sm:$0xf]  ;;  %v63_v42 = vsub.s32 1, %v58_v38 }
   0xe   :  { %v71_v43 = vsub.s32 3, %v58_v38 }
   0xf   :  { %268 = vmatpush1.bf16.msra.mxu0 %v502_v15  ;;  %341 = vmatpush1.bf16.msra.mxu1 %v503_v16  ;;  %v672_v44 = vrot.slane %v55_v41, %v59_v39  ;;  %v674_v45 = vrot.slane %v55_v41, %v67_v40  ;;  %v676_v46 = vrot.slane %v55_v41, %v63_v42 }
  0x10   :  { %269 = vmatprep.subr.bf16.mxu0 %v504_v17  ;;  %342 = vmatprep.subr.bf16.mxu1 %v506_v18  ;;  %v678_v47 = vrot.slane %v55_v41, %v71_v43 }
  0x13   :  { %270 = vmatpush1.bf16.msra.mxu0 %v508_v19  ;;  %343 = vmatpush1.bf16.msra.mxu1 %v509_v20 }
  0x14   :  { %271 = vmatprep.subr.bf16.mxu0 %v510_v21  ;;  %344 = vmatprep.subr.bf16.mxu1 %v512_v22 }
  0x17   :  { %272 = vmatpush1.bf16.msra.mxu0 %v514_v23  ;;  %345 = vmatpush1.bf16.msra.mxu1 %v515_v24 }
  0x18   :  { %273 = vmatprep.subr.bf16.mxu0 %v516_v25  ;;  %346 = vmatprep.subr.bf16.mxu1 %v518_v26 }
  0x1b   :  { %274 = vmatpush1.bf16.msra.mxu0 %v520_v27  ;;  %347 = vmatpush1.bf16.msra.mxu1 %v521_v28 }
  0x1c   :  { %275 = vmatprep.subr.bf16.mxu0 %v522_v29  ;;  %348 = vmatprep.subr.bf16.mxu1 %v524_v30 }
  0x1f   :  { %276 = vmatpush1.bf16.msra.mxu0 %v526_v31  ;;  %349 = vmatpush1.bf16.msra.mxu1 %v527_v32 }
  0x22   :  { %294 = vmatmul.mubr.bf16.vlgmr.msra.gmra.mrb[0].mxu0 %v528_v33  ;;  %367 = vmatmul.mubr.bf16.vlgmr.msra.gmra.mrb[0].mxu1 %v528_v33 }
  0x23   :  { %303 = vmatprep.mubr.bf16.mxu0 %v532_v1  ;;  %376 = vmatprep.mubr.bf16.mxu1 %v532_v1 }
  0x2a   :  { %304 = vmatmul.mubr.bf16.gmra.mrb[4].mxu0 %v529_v34  ;;  %377 = vmatmul.mubr.bf16.gmra.mrb[4].mxu1 %v529_v34 }
  0x2b   :  { %313 = vmatprep.mubr.bf16.mxu0 %v532_v1  ;;  %386 = vmatprep.mubr.bf16.mxu1 %v532_v1 }
  0x32   :  { %314 = vmatmul.mubr.bf16.gmra.mrb[8].mxu0 %v530_v35  ;;  %387 = vmatmul.mubr.bf16.gmra.mrb[8].mxu1 %v530_v35 }
  0x33   :  { %323 = vmatprep.mubr.bf16.mxu0 %v532_v1  ;;  %396 = vmatprep.mubr.bf16.mxu1 %v532_v1 }
  0x3a   :  { %324 = vmatmul.mubr.bf16.gmra.mrb[12].mxu0 %v531_v36  ;;  %397 = vmatmul.mubr.bf16.gmra.mrb[12].mxu1 %v531_v36 }
  0xf5   :  { %v295_v48 = vpop.f32.mrb[0].mxu0  ;;  %v368_v49 = vpop.f32.mrb[0].mxu1 }
  0xf6   :  { %v296_v50 = vadd.f32 %v295_v48, %v672_v44  ;;  %v369_v51 = vadd.f32 %v368_v49, %v674_v45  ;;  %v297_v52 = vpop.f32.mrb[1].mxu0  ;;  %v370_v53 = vpop.f32.mrb[1].mxu1 }
  0xf7   :  { %v298_v54 = vadd.f32 %v297_v52, %v676_v46  ;;  %v371_v55 = vadd.f32 %v370_v53, %v678_v47  ;;  %v299_v56 = vpop.f32.mrb[2].mxu0  ;;  %v372_v57 = vpop.f32.mrb[2].mxu1 }
  0xf8   :  { %407 = vst [vmem:[%s811_s3] sm:$0xff] %v296_v50  ;;  %409 = vst [vmem:[%s811_s3 + $0x10] sm:$0xff] %v369_v51  ;;  %v300_v58 = vadd.f32 %v299_v56, %v672_v44  ;;  %v373_v59 = vadd.f32 %v372_v57, %v674_v45  ;;  %v301_v60 = vpop.f32.mrb[3].mxu0  ;;  %v374_v61 = vpop.f32.mrb[3].mxu1 }
  0xf9   :  { %408 = vst [vmem:[%s811_s3 + $0x8] sm:$0xff] %v298_v54  ;;  %410 = vst [vmem:[%s811_s3 + $0x18] sm:$0xff] %v371_v55  ;;  %v302_v62 = vadd.f32 %v301_v60, %v676_v46  ;;  %v375_v63 = vadd.f32 %v374_v61, %v678_v47 }
  0xfa   :  { %411 = vst [vmem:[%s811_s3 + $0x20] sm:$0xff] %v300_v58  ;;  %413 = vst [vmem:[%s811_s3 + $0x30] sm:$0xff] %v373_v59 }
  0xfb   :  { %412 = vst [vmem:[%s811_s3 + $0x28] sm:$0xff] %v302_v62  ;;  %414 = vst [vmem:[%s811_s3 + $0x38] sm:$0xff] %v375_v63 }
  0xfd   :  { %v305_v0 = vpop.f32.mrb[4].mxu0  ;;  %v378_v1 = vpop.f32.mrb[4].mxu1 }
  0xfe   :  { %v306_v2 = vadd.f32 %v305_v0, %v672_v44  ;;  %v379_v3 = vadd.f32 %v378_v1, %v674_v45  ;;  %v307_v4 = vpop.f32.mrb[5].mxu0  ;;  %v380_v5 = vpop.f32.mrb[5].mxu1 }
  0xff   :  { %v308_v6 = vadd.f32 %v307_v4, %v676_v46  ;;  %v381_v7 = vadd.f32 %v380_v5, %v678_v47  ;;  %v309_v8 = vpop.f32.mrb[6].mxu0  ;;  %v382_v9 = vpop.f32.mrb[6].mxu1 }
 0x100   :  { %415 = vst [vmem:[%s811_s3 + $0x40] sm:$0xff] %v306_v2  ;;  %417 = vst [vmem:[%s811_s3 + $0x50] sm:$0xff] %v379_v3  ;;  %v310_v10 = vadd.f32 %v309_v8, %v672_v44  ;;  %v383_v11 = vadd.f32 %v382_v9, %v674_v45  ;;  %v311_v12 = vpop.f32.mrb[7].mxu0  ;;  %v384_v13 = vpop.f32.mrb[7].mxu1 }
 0x101   :  { %416 = vst [vmem:[%s811_s3 + $0x48] sm:$0xff] %v308_v6  ;;  %418 = vst [vmem:[%s811_s3 + $0x58] sm:$0xff] %v381_v7  ;;  %v312_v14 = vadd.f32 %v311_v12, %v676_v46  ;;  %v385_v15 = vadd.f32 %v384_v13, %v678_v47 }
 0x102   :  { %419 = vst [vmem:[%s811_s3 + $0x60] sm:$0xff] %v310_v10  ;;  %421 = vst [vmem:[%s811_s3 + $0x70] sm:$0xff] %v383_v11 }
 0x103   :  { %420 = vst [vmem:[%s811_s3 + $0x68] sm:$0xff] %v312_v14  ;;  %422 = vst [vmem:[%s811_s3 + $0x78] sm:$0xff] %v385_v15 }
 0x105   :  { %v315_v16 = vpop.f32.mrb[8].mxu0  ;;  %v388_v17 = vpop.f32.mrb[8].mxu1 }
 0x106   :  { %v316_v18 = vadd.f32 %v315_v16, %v672_v44  ;;  %v389_v19 = vadd.f32 %v388_v17, %v674_v45  ;;  %v317_v20 = vpop.f32.mrb[9].mxu0  ;;  %v390_v21 = vpop.f32.mrb[9].mxu1 }
 0x107   :  { %v318_v22 = vadd.f32 %v317_v20, %v676_v46  ;;  %v391_v23 = vadd.f32 %v390_v21, %v678_v47  ;;  %v319_v24 = vpop.f32.mrb[10].mxu0  ;;  %v392_v25 = vpop.f32.mrb[10].mxu1 }
 0x108   :  { %423 = vst [vmem:[%s811_s3 + $0x80] sm:$0xff] %v316_v18  ;;  %425 = vst [vmem:[%s811_s3 + $0x90] sm:$0xff] %v389_v19  ;;  %v320_v26 = vadd.f32 %v319_v24, %v672_v44  ;;  %v393_v27 = vadd.f32 %v392_v25, %v674_v45  ;;  %v321_v28 = vpop.f32.mrb[11].mxu0  ;;  %v394_v29 = vpop.f32.mrb[11].mxu1 }
 0x109   :  { %424 = vst [vmem:[%s811_s3 + $0x88] sm:$0xff] %v318_v22  ;;  %426 = vst [vmem:[%s811_s3 + $0x98] sm:$0xff] %v391_v23  ;;  %v322_v30 = vadd.f32 %v321_v28, %v676_v46  ;;  %v395_v31 = vadd.f32 %v394_v29, %v678_v47 }
 0x10a   :  { %427 = vst [vmem:[%s811_s3 + $0xa0] sm:$0xff] %v320_v26  ;;  %429 = vst [vmem:[%s811_s3 + $0xb0] sm:$0xff] %v393_v27 }
 0x10b   :  { %428 = vst [vmem:[%s811_s3 + $0xa8] sm:$0xff] %v322_v30  ;;  %430 = vst [vmem:[%s811_s3 + $0xb8] sm:$0xff] %v395_v31 }
 0x10d   :  { %v325_v32 = vpop.f32.mrb[12].mxu0  ;;  %v398_v33 = vpop.f32.mrb[12].mxu1 }
 0x10e   :  { %v326_v34 = vadd.f32 %v325_v32, %v672_v44  ;;  %v399_v35 = vadd.f32 %v398_v33, %v674_v45  ;;  %v327_v36 = vpop.f32.mrb[13].mxu0  ;;  %v400_v37 = vpop.f32.mrb[13].mxu1 }
 0x10f   :  { %v328_v38 = vadd.f32 %v327_v36, %v676_v46  ;;  %v401_v39 = vadd.f32 %v400_v37, %v678_v47  ;;  %v329_v40 = vpop.f32.mrb[14].mxu0  ;;  %v402_v41 = vpop.f32.mrb[14].mxu1 }
 0x110   :  { %431 = vst [vmem:[%s811_s3 + $0xc0] sm:$0xff] %v326_v34  ;;  %433 = vst [vmem:[%s811_s3 + $0xd0] sm:$0xff] %v399_v35  ;;  %v330_v42 = vadd.f32 %v329_v40, %v672_v44  ;;  %v403_v43 = vadd.f32 %v402_v41, %v674_v45  ;;  %v331_v48 = vpop.f32.mrb[15].mxu0  ;;  %v404_v49 = vpop.f32.mrb[15].mxu1 }
 0x111   :  { %432 = vst [vmem:[%s811_s3 + $0xc8] sm:$0xff] %v328_v38  ;;  %434 = vst [vmem:[%s811_s3 + $0xd8] sm:$0xff] %v401_v39  ;;  %v332_v50 = vadd.f32 %v331_v48, %v676_v46  ;;  %v405_v51 = vadd.f32 %v404_v49, %v678_v47 }
 0x112   :  { %435 = vst [vmem:[%s811_s3 + $0xe0] sm:$0xff] %v330_v42  ;;  %437 = vst [vmem:[%s811_s3 + $0xf0] sm:$0xff] %v403_v43 }
 0x113   :  { %436 = vst [vmem:[%s811_s3 + $0xe8] sm:$0xff] %v332_v50  ;;  %438 = vst [vmem:[%s811_s3 + $0xf8] sm:$0xff] %v405_v51 }

// kernel: decoder_rnn_forward.5
= control target key start
LH: loop header
LB: loop body
LE: loop exit
PB: predicated region body
PF: predicated region fallthrough
CT: control target
= control target key end

     0   :  { %v410_v12 = vmov 1983009808   ;;  %v188_v14 = vlaneseq  ;;  %v411_v18 = vmov 1934713408   ;;  %s495_s1 = inlined_call_operand.vmem [shape: bf16[128,128], index: 1, kind: input, shape index: {}]   ;;  %s496_s0 = inlined_call_operand.vmem [shape: bf16[8,8,128], index: 0, kind: input, shape index: {}]   ;;  %s497_s2 = inlined_call_operand.vmem [shape: f32[1,128], index: 2, kind: input, shape index: {}]   ;;  %s498_s3 = inlined_call_operand.vmem [shape: f32[8,8,128], index: 3, kind: output, shape index: {}]  }
   0x1   :  { %v398_v0 = vld [vmem:[%s495_s1] sm:$0xff]   ;;  %v399_v1 = vld [vmem:[%s495_s1 + $0x8] sm:$0xff]   ;;  %v400_v2 = vld [vmem:[%s495_s1 + $0x10] sm:$0xff]   ;;  %v186_v13 = vunpack.c.l.s4 %v410_v12  ;;  %v250_v19 = vunpack.c.l.s4 %v411_v18 }
   0x2   :  { %356 = vmatprep.subr.bf16.mxu0 %v398_v0  ;;  %380 = vmatprep.subr.bf16.mxu1 %v398_v0  ;;  %v401_v3 = vld [vmem:[%s495_s1 + $0x18] sm:$0xff]   ;;  %v406_v4 = vld [vmem:[%s496_s0] sm:$0xff]   ;;  %v407_v5 = vld [vmem:[%s496_s0 + $0x10] sm:$0xff]   ;;  %v189_v17 = vshrl.u32 %v188_v14, 7 }
   0x3   :  { %357 = vmatpush3.bf16.msra.mxu0 %v398_v0  ;;  %388 = vmatpush3.bf16.msra.mxu1 %v398_v0  ;;  %v402_v6 = vld [vmem:[%s495_s1 + $0x20] sm:$0xff]   ;;  %v403_v7 = vld [vmem:[%s495_s1 + $0x28] sm:$0xff]   ;;  %v404_v8 = vld [vmem:[%s495_s1 + $0x30] sm:$0xff]   ;;  %v187_v16 = vunpack.c.0.s8 %v186_v13  ;;  %v251_v34 = vunpack.c.0.s8 %v250_v19 }
   0x4   :  { %358 = vmatprep.subr.bf16.mxu0 %v399_v1  ;;  %381 = vmatprep.subr.bf16.mxu1 %v399_v1  ;;  %v405_v9 = vld [vmem:[%s495_s1 + $0x38] sm:$0xff]   ;;  %v408_v10 = vld [vmem:[%s496_s0 + $0x8] sm:$0xff]   ;;  %v331_v15 = vld [vmem:[%s497_s2] ss:$0 sm:$0xff] }
   0x5   :  { %372 = vmatprep.mubr.bf16.mxu0 %v406_v4  ;;  %376 = vmatprep.mubr.bf16.mxu1 %v407_v5  ;;  %v409_v11 = vld [vmem:[%s496_s0 + $0x18] sm:$0xff]   ;;  %v190_v30 = vsub.s32 %v187_v16, %v189_v17  ;;  %v254_v48 = vsub.s32 %v251_v34, %v189_v17 }
   0x7   :  { %359 = vmatpush3.bf16.msra.mxu0 %v399_v1  ;;  %389 = vmatpush3.bf16.msra.mxu1 %v399_v1 }
   0x8   :  { %360 = vmatprep.subr.bf16.mxu0 %v400_v2  ;;  %382 = vmatprep.subr.bf16.mxu1 %v400_v2 }
   0xb   :  { %361 = vmatpush3.bf16.msra.mxu0 %v400_v2  ;;  %390 = vmatpush3.bf16.msra.mxu1 %v400_v2 }
   0xc   :  { %362 = vmatprep.subr.bf16.mxu0 %v401_v3  ;;  %383 = vmatprep.subr.bf16.mxu1 %v401_v3 }
   0xf   :  { %363 = vmatpush3.bf16.msra.mxu0 %v401_v3  ;;  %391 = vmatpush3.bf16.msra.mxu1 %v401_v3 }
  0x10   :  { %364 = vmatprep.subr.bf16.mxu0 %v402_v6  ;;  %384 = vmatprep.subr.bf16.mxu1 %v402_v6 }
  0x13   :  { %365 = vmatpush3.bf16.msra.mxu0 %v402_v6  ;;  %392 = vmatpush3.bf16.msra.mxu1 %v402_v6 }
  0x14   :  { %366 = vmatprep.subr.bf16.mxu0 %v403_v7  ;;  %385 = vmatprep.subr.bf16.mxu1 %v403_v7 }
  0x17   :  { %367 = vmatpush3.bf16.msra.mxu0 %v403_v7  ;;  %393 = vmatpush3.bf16.msra.mxu1 %v403_v7 }
  0x18   :  { %368 = vmatprep.subr.bf16.mxu0 %v404_v8  ;;  %386 = vmatprep.subr.bf16.mxu1 %v404_v8 }
  0x1b   :  { %369 = vmatpush3.bf16.msra.mxu0 %v404_v8  ;;  %394 = vmatpush3.bf16.msra.mxu1 %v404_v8 }
  0x1c   :  { %370 = vmatprep.subr.bf16.mxu0 %v405_v9  ;;  %387 = vmatprep.subr.bf16.mxu1 %v405_v9 }
  0x1f   :  { %371 = vmatpush3.bf16.msra.mxu0 %v405_v9  ;;  %395 = vmatpush3.bf16.msra.mxu1 %v405_v9 }
  0x22   :  { %373 = vmatmul.mubr.bf16.vlgmr.msra.gmra.mrb[0].mxu0 %v408_v10  ;;  %377 = vmatmul.mubr.bf16.vlgmr.msra.gmra.mrb[0].mxu1 %v409_v11 }
  0xf5   :  { %v374_v20 = vpop.f32.mrb[0].mxu0  ;;  %v378_v21 = vpop.f32.mrb[0].mxu1 }
  0xf6   :  { %v161_v22 = vadd.f32 %v374_v20, %v331_v15  ;;  %v177_v23 = vadd.f32 %v378_v21, %v331_v15  ;;  %v152_v24 = vpop.f32.mrb[1].mxu0  ;;  %v168_v25 = vpop.f32.mrb[1].mxu1 }
  0xf7   :  { %v153_v26 = vadd.f32 %v331_v15, %v152_v24  ;;  %v169_v27 = vadd.f32 %v331_v15, %v168_v25  ;;  %v375_v28 = vpop.f32.mrb[2].mxu0  ;;  %v379_v29 = vpop.f32.mrb[2].mxu1 }
  0xf8   :  { %v164_v31 = vadd.f32 %v375_v28, %v331_v15  ;;  %v180_v32 = vadd.f32 %v379_v29, %v331_v15  ;;  %v155_v33 = vpop.f32.mrb[3].mxu0  ;;  %v171_v35 = vpop.f32.mrb[3].mxu1 }
  0xf9   :  { %v183_v36 = vcombine.low %v153_v26, %v161_v22  ;;  %v184_v37 = vcombine.high %v153_v26, %v161_v22  ;;  %v215_v38 = vcombine.low %v169_v27, %v177_v23  ;;  %v216_v39 = vcombine.high %v169_v27, %v177_v23 }
  0xfa   :  { %v156_v40 = vadd.f32 %v331_v15, %v155_v33  ;;  %v172_v41 = vadd.f32 %v331_v15, %v171_v35 }
  0xfb   :  { %v191_v46 = vrot.slane %v183_v36, %v190_v30  ;;  %v198_v47 = vrot.slane %v184_v37, %v190_v30  ;;  %v223_v53 = vrot.slane %v215_v38, %v190_v30  ;;  %v230_v54 = vrot.slane %v216_v39, %v190_v30 }
  0xfc   :  { %v199_v42 = vcombine.low %v156_v40, %v164_v31  ;;  %v200_v43 = vcombine.high %v156_v40, %v164_v31  ;;  %v231_v44 = vcombine.low %v172_v41, %v180_v32  ;;  %v232_v45 = vcombine.high %v172_v41, %v180_v32 }
  0xfe   :  { %v207_v49 = vrot.slane %v199_v42, %v190_v30  ;;  %v214_v50 = vrot.slane %v200_v43, %v190_v30  ;;  %v239_v51 = vrot.slane %v231_v44, %v190_v30  ;;  %v246_v52 = vrot.slane %v232_v45, %v190_v30 }
 0x100   :  { %v247_v55 = vcombine.low %v191_v46, %v207_v49  ;;  %v248_v56 = vcombine.high %v191_v46, %v207_v49  ;;  %v263_v57 = vcombine.low %v198_v47, %v214_v50  ;;  %v264_v58 = vcombine.high %v198_v47, %v214_v50 }
 0x101   :  { %v279_v59 = vcombine.low %v223_v53, %v239_v51  ;;  %v280_v60 = vcombine.high %v223_v53, %v239_v51  ;;  %v295_v61 = vcombine.low %v230_v54, %v246_v52  ;;  %v296_v62 = vcombine.high %v230_v54, %v246_v52 }
 0x102   :  { %v255_v63 = vrot.slane %v247_v55, %v254_v48  ;;  %v262_v0 = vrot.slane %v248_v56, %v254_v48  ;;  %v271_v1 = vrot.slane %v263_v57, %v254_v48  ;;  %v278_v2 = vrot.slane %v264_v58, %v254_v48 }
 0x103   :  { %v287_v3 = vrot.slane %v279_v59, %v254_v48  ;;  %v294_v4 = vrot.slane %v280_v60, %v254_v48  ;;  %v303_v5 = vrot.slane %v295_v61, %v254_v48  ;;  %v310_v6 = vrot.slane %v296_v62, %v254_v48 }
 0x105   :  { %v311_v7 = vcombine.low %v255_v63, %v287_v3  ;;  %v312_v8 = vcombine.high %v255_v63, %v287_v3  ;;  %v313_v9 = vcombine.low %v262_v0, %v294_v4  ;;  %v314_v10 = vcombine.high %v262_v0, %v294_v4 }
 0x106   :  { %v315_v11 = vcombine.low %v271_v1, %v303_v5  ;;  %v316_v12 = vcombine.high %v271_v1, %v303_v5  ;;  %v317_v13 = vcombine.low %v278_v2, %v310_v6  ;;  %v318_v14 = vcombine.high %v278_v2, %v310_v6 }
 0x107   :  { %319 = vst [vmem:[%s498_s3] sm:$0xff] %v311_v7  ;;  %320 = vst [vmem:[%s498_s3 + $0x8] sm:$0xff] %v312_v8 }
 0x108   :  { %321 = vst [vmem:[%s498_s3 + $0x10] sm:$0xff] %v313_v9  ;;  %322 = vst [vmem:[%s498_s3 + $0x18] sm:$0xff] %v314_v10 }
 0x109   :  { %323 = vst [vmem:[%s498_s3 + $0x20] sm:$0xff] %v315_v11  ;;  %324 = vst [vmem:[%s498_s3 + $0x28] sm:$0xff] %v316_v12 }
 0x10a   :  { %325 = vst [vmem:[%s498_s3 + $0x30] sm:$0xff] %v317_v13  ;;  %326 = vst [vmem:[%s498_s3 + $0x38] sm:$0xff] %v318_v14 }

// kernel: decoder_rnn_forward.4
= control target key start
LH: loop header
LB: loop body
LE: loop exit
PB: predicated region body
PF: predicated region fallthrough
CT: control target
= control target key end

     0   :  { %v1460_v1 = vmov 0   ;;  %s2117_s1 = inlined_call_operand.vmem [shape: bf16[128,512], index: 1, kind: input, shape index: {}]   ;;  %s2118_s0 = inlined_call_operand.vmem [shape: f32[8,8,512], index: 0, kind: input, shape index: {}]   ;;  %s2119_s2 = inlined_call_operand.vmem [shape: bf16[8,8,128], index: 2, kind: output, shape index: {}]  }
   0x1   :  { %v1479_v0 = vld [vmem:[%s2117_s1 + $0x4] ss:$16 sps:$4 sm:$0xff]   ;;  %248 = vmatprep.mubr.bf16.mxu0 %v1460_v1  ;;  %16 = vst [vmem:[#allocation2] sm:$0xf] %v1460_v1  ;;  %289 = vmatprep.mubr.bf16.mxu1 %v1460_v1  ;;  %v1487_v2 = vld [vmem:[%s2117_s1] ss:$16 sps:$4 sm:$0xff]  }
   0x2   :  { %216 = vmatprep.subr.bf16.mxu0 %v1479_v0  ;;  %v1493_v3 = vld [vmem:[%s2117_s1 + $0x24] ss:$16 sps:$4 sm:$0xff]   ;;  %v1499_v4 = vld [vmem:[%s2117_s1 + $0x20] ss:$16 sps:$4 sm:$0xff]   ;;  %v1510_v6 = vld [vmem:[%s2117_s1 + $0xc] ss:$16 sps:$4 sm:$0xff]  }
   0x3   :  { %217 = vmatpush1.bf16.msra.mxu0 %v1487_v2  ;;  %v1505_v5 = vld [vmem:[%s2117_s1 + $0x44] ss:$16 sps:$4 sm:$0xff]   ;;  %v1515_v7 = vld [vmem:[%s2117_s1 + $0x8] ss:$16 sps:$4 sm:$0xff]   ;;  %v1521_v8 = vld [vmem:[%s2117_s1 + $0x40] ss:$16 sps:$4 sm:$0xff]   ;;  %257 = vmatprep.subr.bf16.mxu1 %v1510_v6 }
   0x4   :  { %218 = vmatprep.subr.bf16.mxu0 %v1493_v3  ;;  %v1528_v9 = vld [vmem:[%s2117_s1 + $0x64] ss:$16 sps:$4 sm:$0xff]   ;;  %258 = vmatpush1.bf16.msra.mxu1 %v1515_v7  ;;  %v1534_v10 = vld [vmem:[%s2117_s1 + $0x2c] ss:$16 sps:$4 sm:$0xff]   ;;  %v1539_v11 = vld [vmem:[%s2117_s1 + $0x28] ss:$16 sps:$4 sm:$0xff]  }
   0x5   :  { %259 = vmatprep.subr.bf16.mxu1 %v1534_v10  ;;  %v1546_v12 = vld [vmem:[%s2117_s1 + $0x60] ss:$16 sps:$4 sm:$0xff]   ;;  %v1551_v13 = vld [vmem:[%s2117_s1 + $0x84] ss:$16 sps:$4 sm:$0xff]   ;;  %v1556_v14 = vld [vmem:[%s2117_s1 + $0x4c] ss:$16 sps:$4 sm:$0xff]  }
   0x6   :  { %v1563_v15 = vld [vmem:[%s2117_s1 + $0x48] ss:$16 sps:$4 sm:$0xff]   ;;  %v1569_v16 = vld [vmem:[%s2117_s1 + $0x6c] ss:$16 sps:$4 sm:$0xff]   ;;  %v1575_v17 = vld [vmem:[%s2117_s1 + $0x80] ss:$16 sps:$4 sm:$0xff]  }
   0x7   :  { %219 = vmatpush1.bf16.msra.mxu0 %v1499_v4  ;;  %v1581_v18 = vld [vmem:[%s2117_s1 + $0xa4] ss:$16 sps:$4 sm:$0xff]   ;;  %v1587_v19 = vld [vmem:[%s2117_s1 + $0x68] ss:$16 sps:$4 sm:$0xff]   ;;  %v1593_v20 = vld [vmem:[%s2117_s1 + $0x8c] ss:$16 sps:$4 sm:$0xff]  }
   0x8   :  { %220 = vmatprep.subr.bf16.mxu0 %v1505_v5  ;;  %260 = vmatpush1.bf16.msra.mxu1 %v1539_v11  ;;  %v1598_v21 = vld [vmem:[%s2117_s1 + $0xa0] ss:$16 sps:$4 sm:$0xff]   ;;  %v1604_v22 = vld [vmem:[%s2117_s1 + $0xc4] ss:$16 sps:$4 sm:$0xff]   ;;  %v1611_v23 = vld [vmem:[%s2117_s1 + $0x88] ss:$16 sps:$4 sm:$0xff]  }
   0x9   :  { %261 = vmatprep.subr.bf16.mxu1 %v1556_v14  ;;  %v1617_v24 = vld [vmem:[%s2117_s1 + $0xac] ss:$16 sps:$4 sm:$0xff]   ;;  %v1623_v25 = vld [vmem:[%s2117_s1 + $0xc0] ss:$16 sps:$4 sm:$0xff]   ;;  %v1629_v26 = vld [vmem:[%s2117_s1 + $0xe4] ss:$16 sps:$4 sm:$0xff]  }
   0xa   :  { %v1635_v27 = vld [vmem:[%s2117_s1 + $0xa8] ss:$16 sps:$4 sm:$0xff]   ;;  %v1641_v28 = vld [vmem:[%s2117_s1 + $0xcc] ss:$16 sps:$4 sm:$0xff]   ;;  %v1647_v29 = vld [vmem:[%s2117_s1 + $0xe0] ss:$16 sps:$4 sm:$0xff]  }
   0xb   :  { %221 = vmatpush1.bf16.msra.mxu0 %v1521_v8  ;;  %v1654_v30 = vld [vmem:[%s2117_s1 + $0xc8] ss:$16 sps:$4 sm:$0xff]   ;;  %v1660_v31 = vld [vmem:[%s2117_s1 + $0xec] ss:$16 sps:$4 sm:$0xff]   ;;  %v50_v32 = vld [vmem:[#allocation2] sm:$0xf] }
   0xc   :  { %222 = vmatprep.subr.bf16.mxu0 %v1528_v9  ;;  %262 = vmatpush1.bf16.msra.mxu1 %v1563_v15  ;;  %v1667_v33 = vld [vmem:[%s2117_s1 + $0xe8] ss:$16 sps:$4 sm:$0xff]   ;;  %v52_v34 = vld [vmem:[%s2118_s0] sm:$0xff]  ;;  %v54_v50 = vld [vmem:[%s2118_s0 + $0x10] sm:$0xff] }
   0xd   :  { %263 = vmatprep.subr.bf16.mxu1 %v1569_v16  ;;  %v53_v35 = vld [vmem:[%s2118_s0 + $0x8] sm:$0xff]  ;;  %v55_v44 = vld [vmem:[%s2118_s0 + $0x18] sm:$0xff] }
   0xf   :  { %223 = vmatpush1.bf16.msra.mxu0 %v1546_v12 }
  0x10   :  { %224 = vmatprep.subr.bf16.mxu0 %v1551_v13  ;;  %264 = vmatpush1.bf16.msra.mxu1 %v1587_v19 }
  0x11   :  { %265 = vmatprep.subr.bf16.mxu1 %v1593_v20 }
  0x13   :  { %225 = vmatpush1.bf16.msra.mxu0 %v1575_v17 }
  0x14   :  { %226 = vmatprep.subr.bf16.mxu0 %v1581_v18  ;;  %266 = vmatpush1.bf16.msra.mxu1 %v1611_v23 }
  0x15   :  { %267 = vmatprep.subr.bf16.mxu1 %v1617_v24 }
  0x17   :  { %227 = vmatpush1.bf16.msra.mxu0 %v1598_v21 }
  0x18   :  { %228 = vmatprep.subr.bf16.mxu0 %v1604_v22  ;;  %268 = vmatpush1.bf16.msra.mxu1 %v1635_v27 }
  0x19   :  { %269 = vmatprep.subr.bf16.mxu1 %v1641_v28 }
  0x1b   :  { %229 = vmatpush1.bf16.msra.mxu0 %v1623_v25 }
  0x1c   :  { %230 = vmatprep.subr.bf16.mxu0 %v1629_v26  ;;  %270 = vmatpush1.bf16.msra.mxu1 %v1654_v30 }
  0x1d   :  { %271 = vmatprep.subr.bf16.mxu1 %v1660_v31 }
  0x1f   :  { %231 = vmatpush1.bf16.msra.mxu0 %v1647_v29 }
  0x20   :  { %333 = vmatprep.subr.bf16.mxu0 %v1479_v0  ;;  %272 = vmatpush1.bf16.msra.mxu1 %v1667_v33 }
  0x21   :  { %374 = vmatprep.subr.bf16.mxu1 %v1510_v6 }
  0x22   :  { %249 = vmatmul.mubr.bf16.vlgmr.msra.gmra.mrb[0].mxu0 %v50_v32 }
  0x23   :  { %334 = vmatpush1.bf16.msra.mxu0 %v1487_v2  ;;  %365 = vmatprep.mubr.bf16.mxu0 %v1460_v1 }
  0x24   :  { %335 = vmatprep.subr.bf16.mxu0 %v1493_v3  ;;  %290 = vmatmul.mubr.bf16.vlgmr.msra.gmra.mrb[0].mxu1 %v50_v32 }
  0x25   :  { %375 = vmatpush1.bf16.msra.mxu1 %v1515_v7  ;;  %406 = vmatprep.mubr.bf16.mxu1 %v1460_v1 }
  0x26   :  { %376 = vmatprep.subr.bf16.mxu1 %v1534_v10 }
  0x27   :  { %336 = vmatpush1.bf16.msra.mxu0 %v1499_v4 }
  0x28   :  { %337 = vmatprep.subr.bf16.mxu0 %v1505_v5 }
  0x29   :  { %377 = vmatpush1.bf16.msra.mxu1 %v1539_v11 }
  0x2a   :  { %378 = vmatprep.subr.bf16.mxu1 %v1556_v14 }
  0x2b   :  { %338 = vmatpush1.bf16.msra.mxu0 %v1521_v8 }
  0x2c   :  { %339 = vmatprep.subr.bf16.mxu0 %v1528_v9 }
  0x2d   :  { %379 = vmatpush1.bf16.msra.mxu1 %v1563_v15 }
  0x2e   :  { %380 = vmatprep.subr.bf16.mxu1 %v1569_v16 }
  0x2f   :  { %340 = vmatpush1.bf16.msra.mxu0 %v1546_v12 }
  0x30   :  { %341 = vmatprep.subr.bf16.mxu0 %v1551_v13 }
  0x31   :  { %381 = vmatpush1.bf16.msra.mxu1 %v1587_v19 }
  0x32   :  { %382 = vmatprep.subr.bf16.mxu1 %v1593_v20 }
  0x33   :  { %342 = vmatpush1.bf16.msra.mxu0 %v1575_v17 }
  0x34   :  { %343 = vmatprep.subr.bf16.mxu0 %v1581_v18 }
  0x35   :  { %383 = vmatpush1.bf16.msra.mxu1 %v1611_v23 }
  0x36   :  { %384 = vmatprep.subr.bf16.mxu1 %v1617_v24 }
  0x37   :  { %344 = vmatpush1.bf16.msra.mxu0 %v1598_v21 }
  0x38   :  { %345 = vmatprep.subr.bf16.mxu0 %v1604_v22 }
  0x39   :  { %385 = vmatpush1.bf16.msra.mxu1 %v1635_v27 }
  0x3a   :  { %386 = vmatprep.subr.bf16.mxu1 %v1641_v28 }
  0x3b   :  { %346 = vmatpush1.bf16.msra.mxu0 %v1623_v25 }
  0x3c   :  { %347 = vmatprep.subr.bf16.mxu0 %v1629_v26 }
  0x3d   :  { %387 = vmatpush1.bf16.msra.mxu1 %v1654_v30 }
  0x3e   :  { %388 = vmatprep.subr.bf16.mxu1 %v1660_v31 }
  0x3f   :  { %348 = vmatpush1.bf16.msra.mxu0 %v1647_v29 }
  0x40   :  { %451 = vmatprep.subr.bf16.mxu0 %v1479_v0 }
  0x41   :  { %389 = vmatpush1.bf16.msra.mxu1 %v1667_v33 }
  0x42   :  { %492 = vmatprep.subr.bf16.mxu1 %v1510_v6 }
  0xf5   :  { %v250_v36 = vpop.f32.mrb[0].mxu0 }
  0xf6   :  { %v298_v37 = vadd.f32 %v250_v36, %v52_v34  ;;  %v252_v38 = vpop.f32.mrb[1].mxu0 }
  0xf7   :  { %v299_v39 = vadd.f32 %v252_v38, %v53_v35  ;;  %v254_v40 = vpop.f32.mrb[2].mxu0  ;;  %v291_v45 = vpop.f32.mrb[0].mxu1  ;;  %v1195_v38 = vld [vmem:[%s2118_s0 + $0x20] sm:$0xff] }
  0xf8   :  { %v1192_v41 = vmul.f32 -1.442695, %v298_v37  ;;  %v255_v42 = vpop.f32.mrb[3].mxu0  ;;  %v293_v46 = vpop.f32.mrb[1].mxu1  ;;  %v300_v52 = vadd.f32 %v291_v45, %v54_v50 }
  0xf9   :  { %v1193_v43 = vmul.f32 -1.442695, %v299_v39  ;;  %v301_v47 = vadd.f32 %v293_v46, %v55_v44  ;;  %v295_v48 = vpop.f32.mrb[2].mxu1  ;;  %v1196_v39 = vld [vmem:[%s2118_s0 + $0x28] sm:$0xff] }
  0xfa   :  { %1300 = vpow2.f32 %v1192_v41  ;;  %v296_v49 = vpop.f32.mrb[3].mxu1 }
  0xfb   :  { %1302 = vpow2.f32 %v1193_v43  ;;  %v1194_v51 = vmul.f32 -1.442695, %v301_v47 }
  0xfd   :  { %1304 = vpow2.f32 %v1194_v51 }
  0xfe   :  { %1306 = vtanh.f32 %v300_v52  ;;  %v1198_v52 = vld [vmem:[%s2118_s0 + $0x38] sm:$0xff] }
 0x104   :  { %v1301_v53 = vpop.eup %1300 }
 0x105   :  { %v1303_v54 = vpop.eup %1302  ;;  %v305_v55 = vadd.f32 1.0, %v1301_v53 }
 0x106   :  { %v311_v56 = vadd.f32 1.0, %v1303_v54  ;;  %v1197_v54 = vld [vmem:[%s2118_s0 + $0x30] sm:$0xff] }
 0x107   :  { %1308 = vrcp.f32 %v305_v55  ;;  %v1305_v57 = vpop.eup %1304 }
 0x108   :  { %1310 = vrcp.f32 %v311_v56  ;;  %v1307_v58 = vpop.eup %1306  ;;  %v318_v60 = vadd.f32 1.0, %v1305_v57 }
 0x10a   :  { %1312 = vrcp.f32 %v318_v60 }
 0x111   :  { %v1309_v59 = vpop.eup %1308 }
 0x112   :  { %v1311_v61 = vpop.eup %1310  ;;  %v322_v62 = vmul.f32 %v1309_v59, %v1307_v58 }
 0x113   :  { %v321_v63 = vmul.f32 0.0, %v1311_v61 }
 0x114   :  { %v1313_v34 = vpop.eup %1312 }
 0x115   :  { %v1719_v32 = vadd.f32 %v322_v62, %v321_v63 }
 0x117   :  { %1314 = vtanh.f32 %v1719_v32 }
 0x121   :  { %v1315_v35 = vpop.eup %1314 }
 0x122   :  { %v325_v36 = vmul.f32 %v1315_v35, %v1313_v34 }
 0x124   :  { %v326_v37 = vpack.c.bf16 %v325_v36, %v325_v36 }
 0x126   :  { %327 = vst [vmem:[%s2119_s2] sm:$0xf] %v326_v37  ;;  %366 = vmatmul.mubr.bf16.vlgmr.msra.gmra.mrb[4].mxu0 %v326_v37  ;;  %407 = vmatmul.mubr.bf16.vlgmr.msra.gmra.mrb[4].mxu1 %v326_v37 }
 0x127   :  { %452 = vmatpush1.bf16.msra.mxu0 %v1487_v2  ;;  %493 = vmatpush1.bf16.msra.mxu1 %v1515_v7 }
 0x128   :  { %453 = vmatprep.subr.bf16.mxu0 %v1493_v3  ;;  %494 = vmatprep.subr.bf16.mxu1 %v1534_v10 }
 0x129   :  { %483 = vmatprep.mubr.bf16.mxu0 %v1460_v1  ;;  %524 = vmatprep.mubr.bf16.mxu1 %v1460_v1 }
 0x12b   :  { %454 = vmatpush1.bf16.msra.mxu0 %v1499_v4  ;;  %495 = vmatpush1.bf16.msra.mxu1 %v1539_v11 }
 0x12c   :  { %455 = vmatprep.subr.bf16.mxu0 %v1505_v5  ;;  %496 = vmatprep.subr.bf16.mxu1 %v1556_v14 }
 0x12f   :  { %456 = vmatpush1.bf16.msra.mxu0 %v1521_v8  ;;  %497 = vmatpush1.bf16.msra.mxu1 %v1563_v15 }
 0x130   :  { %457 = vmatprep.subr.bf16.mxu0 %v1528_v9  ;;  %498 = vmatprep.subr.bf16.mxu1 %v1569_v16 }
 0x133   :  { %458 = vmatpush1.bf16.msra.mxu0 %v1546_v12  ;;  %499 = vmatpush1.bf16.msra.mxu1 %v1587_v19 }
 0x134   :  { %459 = vmatprep.subr.bf16.mxu0 %v1551_v13  ;;  %500 = vmatprep.subr.bf16.mxu1 %v1593_v20 }
 0x137   :  { %460 = vmatpush1.bf16.msra.mxu0 %v1575_v17  ;;  %501 = vmatpush1.bf16.msra.mxu1 %v1611_v23 }
 0x138   :  { %461 = vmatprep.subr.bf16.mxu0 %v1581_v18  ;;  %502 = vmatprep.subr.bf16.mxu1 %v1617_v24 }
 0x13b   :  { %462 = vmatpush1.bf16.msra.mxu0 %v1598_v21  ;;  %503 = vmatpush1.bf16.msra.mxu1 %v1635_v27 }
 0x13c   :  { %463 = vmatprep.subr.bf16.mxu0 %v1604_v22  ;;  %504 = vmatprep.subr.bf16.mxu1 %v1641_v28 }
 0x13f   :  { %464 = vmatpush1.bf16.msra.mxu0 %v1623_v25  ;;  %505 = vmatpush1.bf16.msra.mxu1 %v1654_v30 }
 0x140   :  { %465 = vmatprep.subr.bf16.mxu0 %v1629_v26  ;;  %506 = vmatprep.subr.bf16.mxu1 %v1660_v31 }
 0x143   :  { %466 = vmatpush1.bf16.msra.mxu0 %v1647_v29  ;;  %507 = vmatpush1.bf16.msra.mxu1 %v1667_v33 }
 0x144   :  { %569 = vmatprep.subr.bf16.mxu0 %v1479_v0  ;;  %610 = vmatprep.subr.bf16.mxu1 %v1510_v6 }
 0x1f9   :  { %v367_v40 = vpop.f32.mrb[4].mxu0  ;;  %v408_v41 = vpop.f32.mrb[4].mxu1 }
 0x1fa   :  { %v415_v42 = vadd.f32 %v1195_v38, %v367_v40  ;;  %v369_v43 = vpop.f32.mrb[5].mxu0  ;;  %v410_v44 = vpop.f32.mrb[5].mxu1  ;;  %v417_v56 = vadd.f32 %v1197_v54, %v408_v41 }
 0x1fb   :  { %v416_v45 = vadd.f32 %v1196_v39, %v369_v43  ;;  %v371_v46 = vpop.f32.mrb[6].mxu0  ;;  %v412_v47 = vpop.f32.mrb[6].mxu1  ;;  %v418_v53 = vadd.f32 %v1198_v52, %v410_v44  ;;  %v1204_v43 = vld [vmem:[%s2118_s0 + $0x48] sm:$0xff] }
 0x1fc   :  { %v1199_v48 = vmul.f32 -1.442695, %v415_v42  ;;  %v372_v49 = vpop.f32.mrb[7].mxu0  ;;  %v413_v50 = vpop.f32.mrb[7].mxu1 }
 0x1fd   :  { %v1200_v51 = vmul.f32 -1.442695, %v416_v45  ;;  %v1201_v55 = vmul.f32 -1.442695, %v418_v53 }
 0x1fe   :  { %1316 = vpow2.f32 %v1199_v48 }
 0x1ff   :  { %1318 = vpow2.f32 %v1200_v51 }
 0x200   :  { %1320 = vpow2.f32 %v1201_v55 }
 0x201   :  { %1322 = vtanh.f32 %v417_v56  ;;  %v1206_v56 = vld [vmem:[%s2118_s0 + $0x58] sm:$0xff] }
 0x208   :  { %v1317_v57 = vpop.eup %1316 }
 0x209   :  { %v1319_v58 = vpop.eup %1318  ;;  %v422_v59 = vadd.f32 1.0, %v1317_v57 }
 0x20a   :  { %v428_v60 = vadd.f32 1.0, %v1319_v58  ;;  %v1321_v61 = vpop.eup %1320  ;;  %v1205_v58 = vld [vmem:[%s2118_s0 + $0x50] sm:$0xff] }
 0x20b   :  { %1324 = vrcp.f32 %v422_v59  ;;  %v1323_v62 = vpop.eup %1322  ;;  %v435_v36 = vadd.f32 1.0, %v1321_v61 }
 0x20c   :  { %1326 = vrcp.f32 %v428_v60 }
 0x20d   :  { %1328 = vrcp.f32 %v435_v36 }
 0x215   :  { %v1325_v63 = vpop.eup %1324 }
 0x216   :  { %v1327_v34 = vpop.eup %1326  ;;  %v439_v35 = vmul.f32 %v1325_v63, %v1323_v62 }
 0x217   :  { %v438_v37 = vmul.f32 %v1327_v34, %v1719_v32  ;;  %v1329_v39 = vpop.eup %1328  ;;  %v1203_v32 = vld [vmem:[%s2118_s0 + $0x40] sm:$0xff] }
 0x219   :  { %v1772_v38 = vadd.f32 %v439_v35, %v438_v37 }
 0x21b   :  { %1330 = vtanh.f32 %v1772_v38 }
 0x225   :  { %v1331_v40 = vpop.eup %1330 }
 0x226   :  { %v442_v41 = vmul.f32 %v1331_v40, %v1329_v39 }
 0x228   :  { %v443_v42 = vpack.c.bf16 %v442_v41, %v442_v41 }
 0x22a   :  { %1202 = vst [vmem:[%s2119_s2 + $0x4] sm:$0xf] %v443_v42  ;;  %484 = vmatmul.mubr.bf16.vlgmr.msra.gmra.mrb[8].mxu0 %v443_v42  ;;  %525 = vmatmul.mubr.bf16.vlgmr.msra.gmra.mrb[8].mxu1 %v443_v42 }
 0x22b   :  { %570 = vmatpush1.bf16.msra.mxu0 %v1487_v2  ;;  %611 = vmatpush1.bf16.msra.mxu1 %v1515_v7 }
 0x22c   :  { %571 = vmatprep.subr.bf16.mxu0 %v1493_v3  ;;  %612 = vmatprep.subr.bf16.mxu1 %v1534_v10 }
 0x22d   :  { %601 = vmatprep.mubr.bf16.mxu0 %v1460_v1  ;;  %642 = vmatprep.mubr.bf16.mxu1 %v1460_v1 }
 0x22f   :  { %572 = vmatpush1.bf16.msra.mxu0 %v1499_v4  ;;  %613 = vmatpush1.bf16.msra.mxu1 %v1539_v11 }
 0x230   :  { %573 = vmatprep.subr.bf16.mxu0 %v1505_v5  ;;  %614 = vmatprep.subr.bf16.mxu1 %v1556_v14 }
 0x233   :  { %574 = vmatpush1.bf16.msra.mxu0 %v1521_v8  ;;  %615 = vmatpush1.bf16.msra.mxu1 %v1563_v15 }
 0x234   :  { %575 = vmatprep.subr.bf16.mxu0 %v1528_v9  ;;  %616 = vmatprep.subr.bf16.mxu1 %v1569_v16 }
 0x237   :  { %576 = vmatpush1.bf16.msra.mxu0 %v1546_v12  ;;  %617 = vmatpush1.bf16.msra.mxu1 %v1587_v19 }
 0x238   :  { %577 = vmatprep.subr.bf16.mxu0 %v1551_v13  ;;  %618 = vmatprep.subr.bf16.mxu1 %v1593_v20 }
 0x23b   :  { %578 = vmatpush1.bf16.msra.mxu0 %v1575_v17  ;;  %619 = vmatpush1.bf16.msra.mxu1 %v1611_v23 }
 0x23c   :  { %579 = vmatprep.subr.bf16.mxu0 %v1581_v18  ;;  %620 = vmatprep.subr.bf16.mxu1 %v1617_v24 }
 0x23f   :  { %580 = vmatpush1.bf16.msra.mxu0 %v1598_v21  ;;  %621 = vmatpush1.bf16.msra.mxu1 %v1635_v27 }
 0x240   :  { %581 = vmatprep.subr.bf16.mxu0 %v1604_v22  ;;  %622 = vmatprep.subr.bf16.mxu1 %v1641_v28 }
 0x243   :  { %582 = vmatpush1.bf16.msra.mxu0 %v1623_v25  ;;  %623 = vmatpush1.bf16.msra.mxu1 %v1654_v30 }
 0x244   :  { %583 = vmatprep.subr.bf16.mxu0 %v1629_v26  ;;  %624 = vmatprep.subr.bf16.mxu1 %v1660_v31 }
 0x247   :  { %584 = vmatpush1.bf16.msra.mxu0 %v1647_v29  ;;  %625 = vmatpush1.bf16.msra.mxu1 %v1667_v33 }
 0x248   :  { %687 = vmatprep.subr.bf16.mxu0 %v1479_v0  ;;  %728 = vmatprep.subr.bf16.mxu1 %v1510_v6 }
 0x2fd   :  { %v485_v44 = vpop.f32.mrb[8].mxu0  ;;  %v526_v45 = vpop.f32.mrb[8].mxu1 }
 0x2fe   :  { %v533_v46 = vadd.f32 %v1203_v32, %v485_v44  ;;  %v487_v47 = vpop.f32.mrb[9].mxu0  ;;  %v528_v48 = vpop.f32.mrb[9].mxu1  ;;  %v535_v60 = vadd.f32 %v1205_v58, %v526_v45 }
 0x2ff   :  { %v534_v49 = vadd.f32 %v1204_v43, %v487_v47  ;;  %v489_v50 = vpop.f32.mrb[10].mxu0  ;;  %v530_v51 = vpop.f32.mrb[10].mxu1  ;;  %v536_v57 = vadd.f32 %v1206_v56, %v528_v48  ;;  %v1212_v47 = vld [vmem:[%s2118_s0 + $0x68] sm:$0xff] }
 0x300   :  { %v1207_v52 = vmul.f32 -1.442695, %v533_v46  ;;  %v490_v53 = vpop.f32.mrb[11].mxu0  ;;  %v531_v54 = vpop.f32.mrb[11].mxu1 }
 0x301   :  { %v1208_v55 = vmul.f32 -1.442695, %v534_v49  ;;  %v1209_v59 = vmul.f32 -1.442695, %v536_v57 }
 0x302   :  { %1332 = vpow2.f32 %v1207_v52 }
 0x303   :  { %1334 = vpow2.f32 %v1208_v55 }
 0x304   :  { %1336 = vpow2.f32 %v1209_v59 }
 0x305   :  { %1338 = vtanh.f32 %v535_v60  ;;  %v1214_v60 = vld [vmem:[%s2118_s0 + $0x78] sm:$0xff] }
 0x30c   :  { %v1333_v61 = vpop.eup %1332 }
 0x30d   :  { %v1335_v62 = vpop.eup %1334  ;;  %v540_v63 = vadd.f32 1.0, %v1333_v61 }
 0x30e   :  { %v546_v34 = vadd.f32 1.0, %v1335_v62  ;;  %v1337_v35 = vpop.eup %1336  ;;  %v1213_v62 = vld [vmem:[%s2118_s0 + $0x70] sm:$0xff] }
 0x30f   :  { %1340 = vrcp.f32 %v540_v63  ;;  %v1339_v36 = vpop.eup %1338  ;;  %v553_v41 = vadd.f32 1.0, %v1337_v35 }
 0x310   :  { %1342 = vrcp.f32 %v546_v34 }
 0x311   :  { %1344 = vrcp.f32 %v553_v41 }
 0x319   :  { %v1341_v37 = vpop.eup %1340 }
 0x31a   :  { %v1343_v39 = vpop.eup %1342  ;;  %v557_v40 = vmul.f32 %v1341_v37, %v1339_v36 }
 0x31b   :  { %v556_v42 = vmul.f32 %v1343_v39, %v1772_v38  ;;  %v1345_v43 = vpop.eup %1344  ;;  %v1211_v38 = vld [vmem:[%s2118_s0 + $0x60] sm:$0xff] }
 0x31d   :  { %v1825_v32 = vadd.f32 %v557_v40, %v556_v42 }
 0x31f   :  { %1346 = vtanh.f32 %v1825_v32 }
 0x329   :  { %v1347_v44 = vpop.eup %1346 }
 0x32a   :  { %v560_v45 = vmul.f32 %v1347_v44, %v1345_v43 }
 0x32c   :  { %v561_v46 = vpack.c.bf16 %v560_v45, %v560_v45 }
 0x32e   :  { %1210 = vst [vmem:[%s2119_s2 + $0x8] sm:$0xf] %v561_v46  ;;  %602 = vmatmul.mubr.bf16.vlgmr.msra.gmra.mrb[12].mxu0 %v561_v46  ;;  %643 = vmatmul.mubr.bf16.vlgmr.msra.gmra.mrb[12].mxu1 %v561_v46 }
 0x32f   :  { %688 = vmatpush1.bf16.msra.mxu0 %v1487_v2  ;;  %729 = vmatpush1.bf16.msra.mxu1 %v1515_v7 }
 0x330   :  { %689 = vmatprep.subr.bf16.mxu0 %v1493_v3  ;;  %730 = vmatprep.subr.bf16.mxu1 %v1534_v10 }
 0x331   :  { %719 = vmatprep.mubr.bf16.mxu0 %v1460_v1  ;;  %760 = vmatprep.mubr.bf16.mxu1 %v1460_v1 }
 0x333   :  { %690 = vmatpush1.bf16.msra.mxu0 %v1499_v4  ;;  %731 = vmatpush1.bf16.msra.mxu1 %v1539_v11 }
 0x334   :  { %691 = vmatprep.subr.bf16.mxu0 %v1505_v5  ;;  %732 = vmatprep.subr.bf16.mxu1 %v1556_v14 }
 0x337   :  { %692 = vmatpush1.bf16.msra.mxu0 %v1521_v8  ;;  %733 = vmatpush1.bf16.msra.mxu1 %v1563_v15 }
 0x338   :  { %693 = vmatprep.subr.bf16.mxu0 %v1528_v9  ;;  %734 = vmatprep.subr.bf16.mxu1 %v1569_v16 }
 0x33b   :  { %694 = vmatpush1.bf16.msra.mxu0 %v1546_v12  ;;  %735 = vmatpush1.bf16.msra.mxu1 %v1587_v19 }
 0x33c   :  { %695 = vmatprep.subr.bf16.mxu0 %v1551_v13  ;;  %736 = vmatprep.subr.bf16.mxu1 %v1593_v20 }
 0x33f   :  { %696 = vmatpush1.bf16.msra.mxu0 %v1575_v17  ;;  %737 = vmatpush1.bf16.msra.mxu1 %v1611_v23 }
 0x340   :  { %697 = vmatprep.subr.bf16.mxu0 %v1581_v18  ;;  %738 = vmatprep.subr.bf16.mxu1 %v1617_v24 }
 0x343   :  { %698 = vmatpush1.bf16.msra.mxu0 %v1598_v21  ;;  %739 = vmatpush1.bf16.msra.mxu1 %v1635_v27 }
 0x344   :  { %699 = vmatprep.subr.bf16.mxu0 %v1604_v22  ;;  %740 = vmatprep.subr.bf16.mxu1 %v1641_v28 }
 0x347   :  { %700 = vmatpush1.bf16.msra.mxu0 %v1623_v25  ;;  %741 = vmatpush1.bf16.msra.mxu1 %v1654_v30 }
 0x348   :  { %701 = vmatprep.subr.bf16.mxu0 %v1629_v26  ;;  %742 = vmatprep.subr.bf16.mxu1 %v1660_v31 }
 0x34b   :  { %702 = vmatpush1.bf16.msra.mxu0 %v1647_v29  ;;  %743 = vmatpush1.bf16.msra.mxu1 %v1667_v33 }
 0x34c   :  { %805 = vmatprep.subr.bf16.mxu0 %v1479_v0  ;;  %846 = vmatprep.subr.bf16.mxu1 %v1510_v6 }
 0x401   :  { %v603_v48 = vpop.f32.mrb[12].mxu0  ;;  %v644_v49 = vpop.f32.mrb[12].mxu1 }
 0x402   :  { %v651_v50 = vadd.f32 %v1211_v38, %v603_v48  ;;  %v605_v51 = vpop.f32.mrb[13].mxu0  ;;  %v646_v52 = vpop.f32.mrb[13].mxu1  ;;  %v653_v34 = vadd.f32 %v1213_v62, %v644_v49  ;;  %v1222_v62 = vld [vmem:[%s2118_s0 + $0x98] sm:$0xff] }
 0x403   :  { %v652_v53 = vadd.f32 %v1212_v47, %v605_v51  ;;  %v607_v54 = vpop.f32.mrb[14].mxu0  ;;  %v648_v55 = vpop.f32.mrb[14].mxu1  ;;  %v654_v61 = vadd.f32 %v1214_v60, %v646_v52  ;;  %v1220_v51 = vld [vmem:[%s2118_s0 + $0x88] sm:$0xff] }
 0x404   :  { %v1215_v56 = vmul.f32 -1.442695, %v651_v50  ;;  %v608_v57 = vpop.f32.mrb[15].mxu0  ;;  %v649_v58 = vpop.f32.mrb[15].mxu1 }
 0x405   :  { %v1216_v59 = vmul.f32 -1.442695, %v652_v53  ;;  %v1217_v63 = vmul.f32 -1.442695, %v654_v61 }
 0x406   :  { %1348 = vpow2.f32 %v1215_v56 }
 0x407   :  { %1350 = vpow2.f32 %v1216_v59 }
 0x408   :  { %1352 = vpow2.f32 %v1217_v63 }
 0x409   :  { %1354 = vtanh.f32 %v653_v34  ;;  %v1221_v34 = vld [vmem:[%s2118_s0 + $0x90] sm:$0xff] }
 0x410   :  { %v1349_v35 = vpop.eup %1348 }
 0x411   :  { %v1351_v36 = vpop.eup %1350  ;;  %v658_v37 = vadd.f32 1.0, %v1349_v35 }
 0x412   :  { %v664_v39 = vadd.f32 1.0, %v1351_v36  ;;  %v1353_v40 = vpop.eup %1352 }
 0x413   :  { %1356 = vrcp.f32 %v658_v37  ;;  %v1355_v41 = vpop.eup %1354  ;;  %v671_v45 = vadd.f32 1.0, %v1353_v40 }
 0x414   :  { %1358 = vrcp.f32 %v664_v39 }
 0x415   :  { %1360 = vrcp.f32 %v671_v45 }
 0x41d   :  { %v1357_v42 = vpop.eup %1356 }
 0x41e   :  { %v1359_v43 = vpop.eup %1358  ;;  %v675_v44 = vmul.f32 %v1357_v42, %v1355_v41 }
 0x41f   :  { %v674_v46 = vmul.f32 %v1359_v43, %v1825_v32  ;;  %v1361_v47 = vpop.eup %1360  ;;  %v1219_v32 = vld [vmem:[%s2118_s0 + $0x80] sm:$0xff] }
 0x421   :  { %v1878_v38 = vadd.f32 %v675_v44, %v674_v46 }
 0x423   :  { %1362 = vtanh.f32 %v1878_v38 }
 0x42d   :  { %v1363_v48 = vpop.eup %1362 }
 0x42e   :  { %v678_v49 = vmul.f32 %v1363_v48, %v1361_v47 }
 0x430   :  { %v679_v50 = vpack.c.bf16 %v678_v49, %v678_v49 }
 0x432   :  { %1218 = vst [vmem:[%s2119_s2 + $0xc] sm:$0xf] %v679_v50  ;;  %720 = vmatmul.mubr.bf16.vlgmr.msra.gmra.mrb[16].mxu0 %v679_v50  ;;  %761 = vmatmul.mubr.bf16.vlgmr.msra.gmra.mrb[16].mxu1 %v679_v50 }
 0x433   :  { %806 = vmatpush1.bf16.msra.mxu0 %v1487_v2  ;;  %847 = vmatpush1.bf16.msra.mxu1 %v1515_v7 }
 0x434   :  { %807 = vmatprep.subr.bf16.mxu0 %v1493_v3  ;;  %848 = vmatprep.subr.bf16.mxu1 %v1534_v10 }
 0x435   :  { %837 = vmatprep.mubr.bf16.mxu0 %v1460_v1  ;;  %878 = vmatprep.mubr.bf16.mxu1 %v1460_v1 }
 0x437   :  { %808 = vmatpush1.bf16.msra.mxu0 %v1499_v4  ;;  %849 = vmatpush1.bf16.msra.mxu1 %v1539_v11 }
 0x438   :  { %809 = vmatprep.subr.bf16.mxu0 %v1505_v5  ;;  %850 = vmatprep.subr.bf16.mxu1 %v1556_v14 }
 0x43b   :  { %810 = vmatpush1.bf16.msra.mxu0 %v1521_v8  ;;  %851 = vmatpush1.bf16.msra.mxu1 %v1563_v15 }
 0x43c   :  { %811 = vmatprep.subr.bf16.mxu0 %v1528_v9  ;;  %852 = vmatprep.subr.bf16.mxu1 %v1569_v16 }
 0x43f   :  { %812 = vmatpush1.bf16.msra.mxu0 %v1546_v12  ;;  %853 = vmatpush1.bf16.msra.mxu1 %v1587_v19 }
 0x440   :  { %813 = vmatprep.subr.bf16.mxu0 %v1551_v13  ;;  %854 = vmatprep.subr.bf16.mxu1 %v1593_v20 }
 0x443   :  { %814 = vmatpush1.bf16.msra.mxu0 %v1575_v17  ;;  %855 = vmatpush1.bf16.msra.mxu1 %v1611_v23 }
 0x444   :  { %815 = vmatprep.subr.bf16.mxu0 %v1581_v18  ;;  %856 = vmatprep.subr.bf16.mxu1 %v1617_v24 }
 0x447   :  { %816 = vmatpush1.bf16.msra.mxu0 %v1598_v21  ;;  %857 = vmatpush1.bf16.msra.mxu1 %v1635_v27 }
 0x448   :  { %817 = vmatprep.subr.bf16.mxu0 %v1604_v22  ;;  %858 = vmatprep.subr.bf16.mxu1 %v1641_v28 }
 0x44b   :  { %818 = vmatpush1.bf16.msra.mxu0 %v1623_v25  ;;  %859 = vmatpush1.bf16.msra.mxu1 %v1654_v30 }
 0x44c   :  { %819 = vmatprep.subr.bf16.mxu0 %v1629_v26  ;;  %860 = vmatprep.subr.bf16.mxu1 %v1660_v31 }
 0x44f   :  { %820 = vmatpush1.bf16.msra.mxu0 %v1647_v29  ;;  %861 = vmatpush1.bf16.msra.mxu1 %v1667_v33 }
 0x450   :  { %923 = vmatprep.subr.bf16.mxu0 %v1479_v0  ;;  %964 = vmatprep.subr.bf16.mxu1 %v1510_v6 }
 0x505   :  { %v721_v52 = vpop.f32.mrb[16].mxu0  ;;  %v762_v53 = vpop.f32.mrb[16].mxu1 }
 0x506   :  { %v769_v54 = vadd.f32 %v1219_v32, %v721_v52  ;;  %v723_v55 = vpop.f32.mrb[17].mxu0  ;;  %v764_v56 = vpop.f32.mrb[17].mxu1  ;;  %v771_v36 = vadd.f32 %v1221_v34, %v762_v53  ;;  %v1437_v34 = vld [vmem:[%s2117_s1 + $0x4c] ss:$16 sps:$4 sm:$0xff]  }
 0x507   :  { %v770_v57 = vadd.f32 %v1220_v51, %v723_v55  ;;  %v725_v58 = vpop.f32.mrb[18].mxu0  ;;  %v766_v59 = vpop.f32.mrb[18].mxu1  ;;  %v772_v63 = vadd.f32 %v1222_v62, %v764_v56  ;;  %v1435_v62 = vld [vmem:[%s2117_s1 + $0x28] ss:$16 sps:$4 sm:$0xff]  }
 0x508   :  { %v1223_v60 = vmul.f32 -1.442695, %v769_v54  ;;  %v726_v0 = vpop.f32.mrb[19].mxu0  ;;  %v767_v61 = vpop.f32.mrb[19].mxu1  ;;  %v1430_v59 = vld [vmem:[%s2117_s1] ss:$16 sps:$4 sm:$0xff]  }
 0x509   :  { %v1224_v6 = vmul.f32 -1.442695, %v770_v57  ;;  %v1225_v35 = vmul.f32 -1.442695, %v772_v63  ;;  %v1432_v0 = vld [vmem:[%s2117_s1 + $0x24] ss:$16 sps:$4 sm:$0xff]  }
 0x50a   :  { %1364 = vpow2.f32 %v1223_v60  ;;  %v1431_v60 = vld [vmem:[%s2117_s1 + $0x8] ss:$16 sps:$4 sm:$0xff]   ;;  %v1433_v61 = vld [vmem:[%s2117_s1 + $0x2c] ss:$16 sps:$4 sm:$0xff]   ;;  %v1436_v63 = vld [vmem:[%s2117_s1 + $0x44] ss:$16 sps:$4 sm:$0xff]  }
 0x50b   :  { %1366 = vpow2.f32 %v1224_v6  ;;  %v1434_v6 = vld [vmem:[%s2117_s1 + $0x20] ss:$16 sps:$4 sm:$0xff]  }
 0x50c   :  { %1368 = vpow2.f32 %v1225_v35  ;;  %v1439_v35 = vld [vmem:[%s2117_s1 + $0x48] ss:$16 sps:$4 sm:$0xff]  }
 0x50d   :  { %1370 = vtanh.f32 %v771_v36  ;;  %v1440_v36 = vld [vmem:[%s2117_s1 + $0x64] ss:$16 sps:$4 sm:$0xff]  }
 0x514   :  { %v1365_v37 = vpop.eup %1364 }
 0x515   :  { %v1367_v39 = vpop.eup %1366  ;;  %v776_v40 = vadd.f32 1.0, %v1365_v37  ;;  %v1441_v37 = vld [vmem:[%s2117_s1 + $0x6c] ss:$16 sps:$4 sm:$0xff]  }
 0x516   :  { %v782_v41 = vadd.f32 1.0, %v1367_v39  ;;  %v1369_v42 = vpop.eup %1368  ;;  %v1442_v39 = vld [vmem:[%s2117_s1 + $0x60] ss:$16 sps:$4 sm:$0xff]  }
 0x517   :  { %1372 = vrcp.f32 %v776_v40  ;;  %v1371_v43 = vpop.eup %1370  ;;  %v789_v47 = vadd.f32 1.0, %v1369_v42  ;;  %v1443_v40 = vld [vmem:[%s2117_s1 + $0x68] ss:$16 sps:$4 sm:$0xff]   ;;  %v1445_v42 = vld [vmem:[%s2117_s1 + $0x8c] ss:$16 sps:$4 sm:$0xff]  }
 0x518   :  { %1374 = vrcp.f32 %v782_v41  ;;  %v1444_v41 = vld [vmem:[%s2117_s1 + $0x84] ss:$16 sps:$4 sm:$0xff]  }
 0x519   :  { %1376 = vrcp.f32 %v789_v47  ;;  %v1450_v47 = vld [vmem:[%s2117_s1 + $0xa0] ss:$16 sps:$4 sm:$0xff]  }
 0x521   :  { %v1373_v44 = vpop.eup %1372 }
 0x522   :  { %v1375_v45 = vpop.eup %1374  ;;  %v793_v46 = vmul.f32 %v1373_v44, %v1371_v43  ;;  %v1446_v43 = vld [vmem:[%s2117_s1 + $0x80] ss:$16 sps:$4 sm:$0xff]   ;;  %v1447_v44 = vld [vmem:[%s2117_s1 + $0x88] ss:$16 sps:$4 sm:$0xff]  }
 0x523   :  { %v792_v48 = vmul.f32 %v1375_v45, %v1878_v38  ;;  %v1377_v50 = vpop.eup %1376  ;;  %v1448_v45 = vld [vmem:[%s2117_s1 + $0xa4] ss:$16 sps:$4 sm:$0xff]  }
 0x525   :  { %v1931_v49 = vadd.f32 %v793_v46, %v792_v48  ;;  %v1449_v46 = vld [vmem:[%s2117_s1 + $0xac] ss:$16 sps:$4 sm:$0xff]   ;;  %v1451_v48 = vld [vmem:[%s2117_s1 + $0xa8] ss:$16 sps:$4 sm:$0xff]  }
 0x527   :  { %1378 = vtanh.f32 %v1931_v49 }
 0x531   :  { %v1379_v32 = vpop.eup %1378 }
 0x532   :  { %v796_v51 = vmul.f32 %v1379_v32, %v1377_v50  ;;  %v1453_v50 = vld [vmem:[%s2117_s1 + $0xcc] ss:$16 sps:$4 sm:$0xff]   ;;  %v1454_v32 = vld [vmem:[%s2117_s1 + $0xc0] ss:$16 sps:$4 sm:$0xff]  }
 0x534   :  { %v797_v52 = vpack.c.bf16 %v796_v51, %v796_v51  ;;  %v1455_v51 = vld [vmem:[%s2117_s1 + $0xc8] ss:$16 sps:$4 sm:$0xff]  }
 0x536   :  { %1226 = vst [vmem:[%s2119_s2 + $0x10] sm:$0xf] %v797_v52  ;;  %838 = vmatmul.mubr.bf16.vlgmr.msra.gmra.mrb[20].mxu0 %v797_v52  ;;  %879 = vmatmul.mubr.bf16.vlgmr.msra.gmra.mrb[20].mxu1 %v797_v52  ;;  %v1456_v52 = vld [vmem:[%s2117_s1 + $0xe4] ss:$16 sps:$4 sm:$0xff]  }
 0x537   :  { %924 = vmatpush1.bf16.msra.mxu0 %v1487_v2  ;;  %965 = vmatpush1.bf16.msra.mxu1 %v1515_v7  ;;  %v1428_v2 = vld [vmem:[%s2117_s1 + $0x4] ss:$16 sps:$4 sm:$0xff]  }
 0x538   :  { %925 = vmatprep.subr.bf16.mxu0 %v1493_v3  ;;  %966 = vmatprep.subr.bf16.mxu1 %v1534_v10  ;;  %v1429_v3 = vld [vmem:[%s2117_s1 + $0xc] ss:$16 sps:$4 sm:$0xff]  }
 0x539   :  { %955 = vmatprep.mubr.bf16.mxu0 %v1460_v1  ;;  %996 = vmatprep.mubr.bf16.mxu1 %v1460_v1 }
 0x53b   :  { %926 = vmatpush1.bf16.msra.mxu0 %v1499_v4  ;;  %967 = vmatpush1.bf16.msra.mxu1 %v1539_v11  ;;  %v1227_v4 = vld [vmem:[%s2118_s0 + $0xa0] sm:$0xff] }
 0x53c   :  { %927 = vmatprep.subr.bf16.mxu0 %v1505_v5  ;;  %968 = vmatprep.subr.bf16.mxu1 %v1556_v14  ;;  %v1228_v5 = vld [vmem:[%s2118_s0 + $0xa8] sm:$0xff] }
 0x53f   :  { %928 = vmatpush1.bf16.msra.mxu0 %v1521_v8  ;;  %969 = vmatpush1.bf16.msra.mxu1 %v1563_v15 }
 0x540   :  { %929 = vmatprep.subr.bf16.mxu0 %v1528_v9  ;;  %970 = vmatprep.subr.bf16.mxu1 %v1569_v16 }
 0x543   :  { %930 = vmatpush1.bf16.msra.mxu0 %v1546_v12  ;;  %971 = vmatpush1.bf16.msra.mxu1 %v1587_v19  ;;  %v1230_v19 = vld [vmem:[%s2118_s0 + $0xb8] sm:$0xff] }
 0x544   :  { %931 = vmatprep.subr.bf16.mxu0 %v1551_v13  ;;  %972 = vmatprep.subr.bf16.mxu1 %v1593_v20 }
 0x547   :  { %932 = vmatpush1.bf16.msra.mxu0 %v1575_v17  ;;  %973 = vmatpush1.bf16.msra.mxu1 %v1611_v23 }
 0x548   :  { %933 = vmatprep.subr.bf16.mxu0 %v1581_v18  ;;  %974 = vmatprep.subr.bf16.mxu1 %v1617_v24 }
 0x54b   :  { %934 = vmatpush1.bf16.msra.mxu0 %v1598_v21  ;;  %975 = vmatpush1.bf16.msra.mxu1 %v1635_v27  ;;  %v1229_v21 = vld [vmem:[%s2118_s0 + $0xb0] sm:$0xff] }
 0x54c   :  { %935 = vmatprep.subr.bf16.mxu0 %v1604_v22  ;;  %976 = vmatprep.subr.bf16.mxu1 %v1641_v28 }
 0x54f   :  { %936 = vmatpush1.bf16.msra.mxu0 %v1623_v25  ;;  %977 = vmatpush1.bf16.msra.mxu1 %v1654_v30 }
 0x550   :  { %937 = vmatprep.subr.bf16.mxu0 %v1629_v26  ;;  %978 = vmatprep.subr.bf16.mxu1 %v1660_v31 }
 0x553   :  { %938 = vmatpush1.bf16.msra.mxu0 %v1647_v29  ;;  %979 = vmatpush1.bf16.msra.mxu1 %v1667_v33 }
 0x554   :  { %1041 = vmatprep.subr.bf16.mxu0 %v1428_v2  ;;  %1082 = vmatprep.subr.bf16.mxu1 %v1429_v3  ;;  %v1457_v2 = vld [vmem:[%s2117_s1 + $0xec] ss:$16 sps:$4 sm:$0xff]   ;;  %v1458_v3 = vld [vmem:[%s2117_s1 + $0xe0] ss:$16 sps:$4 sm:$0xff]  }
 0x609   :  { %v839_v7 = vpop.f32.mrb[20].mxu0  ;;  %v880_v8 = vpop.f32.mrb[20].mxu1 }
 0x60a   :  { %v887_v9 = vadd.f32 %v1227_v4, %v839_v7  ;;  %v841_v10 = vpop.f32.mrb[21].mxu0  ;;  %v882_v11 = vpop.f32.mrb[21].mxu1  ;;  %v889_v23 = vadd.f32 %v1229_v21, %v880_v8  ;;  %v1459_v4 = vld [vmem:[%s2117_s1 + $0xe8] ss:$16 sps:$4 sm:$0xff]  }
 0x60b   :  { %v888_v12 = vadd.f32 %v1228_v5, %v841_v10  ;;  %v843_v13 = vpop.f32.mrb[22].mxu0  ;;  %v884_v14 = vpop.f32.mrb[22].mxu1  ;;  %v890_v20 = vadd.f32 %v1230_v19, %v882_v11  ;;  %v1235_v5 = vld [vmem:[%s2118_s0 + $0xc0] sm:$0xff]  ;;  %v1236_v7 = vld [vmem:[%s2118_s0 + $0xc8] sm:$0xff] }
 0x60c   :  { %v1231_v15 = vmul.f32 -1.442695, %v887_v9  ;;  %v844_v16 = vpop.f32.mrb[23].mxu0  ;;  %v885_v17 = vpop.f32.mrb[23].mxu1 }
 0x60d   :  { %v1232_v18 = vmul.f32 -1.442695, %v888_v12  ;;  %v1233_v22 = vmul.f32 -1.442695, %v890_v20  ;;  %v1238_v20 = vld [vmem:[%s2118_s0 + $0xd8] sm:$0xff] }
 0x60e   :  { %1380 = vpow2.f32 %v1231_v15 }
 0x60f   :  { %1382 = vpow2.f32 %v1232_v18 }
 0x610   :  { %1384 = vpow2.f32 %v1233_v22  ;;  %v1237_v22 = vld [vmem:[%s2118_s0 + $0xd0] sm:$0xff] }
 0x611   :  { %1386 = vtanh.f32 %v889_v23 }
 0x618   :  { %v1381_v24 = vpop.eup %1380 }
 0x619   :  { %v1383_v25 = vpop.eup %1382  ;;  %v894_v26 = vadd.f32 1.0, %v1381_v24 }
 0x61a   :  { %v900_v27 = vadd.f32 1.0, %v1383_v25  ;;  %v1385_v28 = vpop.eup %1384 }
 0x61b   :  { %1388 = vrcp.f32 %v894_v26  ;;  %v1387_v29 = vpop.eup %1386  ;;  %v907_v38 = vadd.f32 1.0, %v1385_v28 }
 0x61c   :  { %1390 = vrcp.f32 %v900_v27 }
 0x61d   :  { %1392 = vrcp.f32 %v907_v38 }
 0x625   :  { %v1389_v30 = vpop.eup %1388 }
 0x626   :  { %v1391_v31 = vpop.eup %1390  ;;  %v911_v33 = vmul.f32 %v1389_v30, %v1387_v29 }
 0x627   :  { %v910_v53 = vmul.f32 %v1391_v31, %v1931_v49  ;;  %v1393_v55 = vpop.eup %1392  ;;  %v1452_v49 = vld [vmem:[%s2117_s1 + $0xc4] ss:$16 sps:$4 sm:$0xff]  }
 0x629   :  { %v1988_v54 = vadd.f32 %v911_v33, %v910_v53 }
 0x62b   :  { %1394 = vtanh.f32 %v1988_v54 }
 0x635   :  { %v1395_v56 = vpop.eup %1394 }
 0x636   :  { %v914_v57 = vmul.f32 %v1395_v56, %v1393_v55 }
 0x638   :  { %v915_v58 = vpack.c.bf16 %v914_v57, %v914_v57 }
 0x63a   :  { %1234 = vst [vmem:[%s2119_s2 + $0x14] sm:$0xf] %v915_v58  ;;  %956 = vmatmul.mubr.bf16.vlgmr.msra.gmra.mrb[24].mxu0 %v915_v58  ;;  %997 = vmatmul.mubr.bf16.vlgmr.msra.gmra.mrb[24].mxu1 %v915_v58 }
 0x63b   :  { %1042 = vmatpush1.bf16.msra.mxu0 %v1430_v59  ;;  %1083 = vmatpush1.bf16.msra.mxu1 %v1431_v60 }
 0x63c   :  { %1043 = vmatprep.subr.bf16.mxu0 %v1432_v0  ;;  %1084 = vmatprep.subr.bf16.mxu1 %v1433_v61  ;;  %v1243_v0 = vld [vmem:[%s2118_s0 + $0xe0] sm:$0xff] }
 0x63d   :  { %1073 = vmatprep.mubr.bf16.mxu0 %v1460_v1  ;;  %1114 = vmatprep.mubr.bf16.mxu1 %v1460_v1  ;;  %v1438_v1 = vld [vmem:[%s2117_s1 + $0x40] ss:$16 sps:$4 sm:$0xff]  }
 0x63f   :  { %1044 = vmatpush1.bf16.msra.mxu0 %v1434_v6  ;;  %1085 = vmatpush1.bf16.msra.mxu1 %v1435_v62 }
 0x640   :  { %1045 = vmatprep.subr.bf16.mxu0 %v1436_v63  ;;  %1086 = vmatprep.subr.bf16.mxu1 %v1437_v34 }
 0x643   :  { %1046 = vmatpush1.bf16.msra.mxu0 %v1438_v1  ;;  %1087 = vmatpush1.bf16.msra.mxu1 %v1439_v35 }
 0x644   :  { %1047 = vmatprep.subr.bf16.mxu0 %v1440_v36  ;;  %1088 = vmatprep.subr.bf16.mxu1 %v1441_v37 }
 0x647   :  { %1048 = vmatpush1.bf16.msra.mxu0 %v1442_v39  ;;  %1089 = vmatpush1.bf16.msra.mxu1 %v1443_v40 }
 0x648   :  { %1049 = vmatprep.subr.bf16.mxu0 %v1444_v41  ;;  %1090 = vmatprep.subr.bf16.mxu1 %v1445_v42  ;;  %v1246_v42 = vld [vmem:[%s2118_s0 + $0xf8] sm:$0xff] }
 0x64b   :  { %1050 = vmatpush1.bf16.msra.mxu0 %v1446_v43  ;;  %1091 = vmatpush1.bf16.msra.mxu1 %v1447_v44  ;;  %v1245_v44 = vld [vmem:[%s2118_s0 + $0xf0] sm:$0xff] }
 0x64c   :  { %1051 = vmatprep.subr.bf16.mxu0 %v1448_v45  ;;  %1092 = vmatprep.subr.bf16.mxu1 %v1449_v46 }
 0x64f   :  { %1052 = vmatpush1.bf16.msra.mxu0 %v1450_v47  ;;  %1093 = vmatpush1.bf16.msra.mxu1 %v1451_v48 }
 0x650   :  { %1053 = vmatprep.subr.bf16.mxu0 %v1452_v49  ;;  %1094 = vmatprep.subr.bf16.mxu1 %v1453_v50 }
 0x653   :  { %1054 = vmatpush1.bf16.msra.mxu0 %v1454_v32  ;;  %1095 = vmatpush1.bf16.msra.mxu1 %v1455_v51 }
 0x654   :  { %1055 = vmatprep.subr.bf16.mxu0 %v1456_v52  ;;  %1096 = vmatprep.subr.bf16.mxu1 %v1457_v2 }
 0x657   :  { %1056 = vmatpush1.bf16.msra.mxu0 %v1458_v3  ;;  %1097 = vmatpush1.bf16.msra.mxu1 %v1459_v4 }
 0x70d   :  { %v957_v8 = vpop.f32.mrb[24].mxu0  ;;  %v998_v9 = vpop.f32.mrb[24].mxu1 }
 0x70e   :  { %v1005_v10 = vadd.f32 %v1235_v5, %v957_v8  ;;  %v959_v11 = vpop.f32.mrb[25].mxu0  ;;  %v1000_v12 = vpop.f32.mrb[25].mxu1  ;;  %v1007_v24 = vadd.f32 %v1237_v22, %v998_v9 }
 0x70f   :  { %v1006_v13 = vadd.f32 %v1236_v7, %v959_v11  ;;  %v961_v14 = vpop.f32.mrb[26].mxu0  ;;  %v1002_v15 = vpop.f32.mrb[26].mxu1  ;;  %v1008_v21 = vadd.f32 %v1238_v20, %v1000_v12 }
 0x710   :  { %v1239_v16 = vmul.f32 -1.442695, %v1005_v10  ;;  %v962_v17 = vpop.f32.mrb[27].mxu0  ;;  %v1003_v18 = vpop.f32.mrb[27].mxu1 }
 0x711   :  { %v1240_v19 = vmul.f32 -1.442695, %v1006_v13  ;;  %v1241_v23 = vmul.f32 -1.442695, %v1008_v21 }
 0x712   :  { %1396 = vpow2.f32 %v1239_v16 }
 0x713   :  { %1398 = vpow2.f32 %v1240_v19 }
 0x714   :  { %1400 = vpow2.f32 %v1241_v23 }
 0x715   :  { %1402 = vtanh.f32 %v1007_v24 }
 0x71c   :  { %v1397_v25 = vpop.eup %1396 }
 0x71d   :  { %v1399_v26 = vpop.eup %1398  ;;  %v1012_v27 = vadd.f32 1.0, %v1397_v25 }
 0x71e   :  { %v1018_v28 = vadd.f32 1.0, %v1399_v26  ;;  %v1401_v29 = vpop.eup %1400 }
 0x71f   :  { %1404 = vrcp.f32 %v1012_v27  ;;  %v1403_v30 = vpop.eup %1402  ;;  %v1025_v53 = vadd.f32 1.0, %v1401_v29 }
 0x720   :  { %1406 = vrcp.f32 %v1018_v28 }
 0x721   :  { %1408 = vrcp.f32 %v1025_v53 }
 0x729   :  { %v1405_v31 = vpop.eup %1404 }
 0x72a   :  { %v1407_v33 = vpop.eup %1406  ;;  %v1029_v38 = vmul.f32 %v1405_v31, %v1403_v30 }
 0x72b   :  { %v1028_v55 = vmul.f32 %v1407_v33, %v1988_v54  ;;  %v1409_v57 = vpop.eup %1408  ;;  %v1244_v54 = vld [vmem:[%s2118_s0 + $0xe8] sm:$0xff] }
 0x72d   :  { %v1030_v56 = vadd.f32 %v1029_v38, %v1028_v55 }
 0x72f   :  { %1410 = vtanh.f32 %v1030_v56 }
 0x739   :  { %v1411_v58 = vpop.eup %1410 }
 0x73a   :  { %v1032_v59 = vmul.f32 %v1411_v58, %v1409_v57 }
 0x73c   :  { %v1033_v60 = vpack.c.bf16 %v1032_v59, %v1032_v59 }
 0x73e   :  { %1242 = vst [vmem:[%s2119_s2 + $0x18] sm:$0xf] %v1033_v60  ;;  %1074 = vmatmul.mubr.bf16.vlgmr.msra.gmra.mrb[28].mxu0 %v1033_v60  ;;  %1115 = vmatmul.mubr.bf16.vlgmr.msra.gmra.mrb[28].mxu1 %v1033_v60 }
 0x811   :  { %v1075_v61 = vpop.f32.mrb[28].mxu0  ;;  %v1116_v6 = vpop.f32.mrb[28].mxu1 }
 0x812   :  { %v1123_v62 = vadd.f32 %v1243_v0, %v1075_v61  ;;  %v1077_v63 = vpop.f32.mrb[29].mxu0  ;;  %v1118_v34 = vpop.f32.mrb[29].mxu1  ;;  %v1125_v46 = vadd.f32 %v1245_v44, %v1116_v6 }
 0x813   :  { %v1124_v1 = vadd.f32 %v1244_v54, %v1077_v63  ;;  %v1079_v35 = vpop.f32.mrb[30].mxu0  ;;  %v1120_v36 = vpop.f32.mrb[30].mxu1  ;;  %v1126_v43 = vadd.f32 %v1246_v42, %v1118_v34 }
 0x814   :  { %v1247_v37 = vmul.f32 -1.442695, %v1123_v62  ;;  %v1080_v39 = vpop.f32.mrb[31].mxu0  ;;  %v1121_v40 = vpop.f32.mrb[31].mxu1 }
 0x815   :  { %v1248_v41 = vmul.f32 -1.442695, %v1124_v1  ;;  %v1249_v45 = vmul.f32 -1.442695, %v1126_v43 }
 0x816   :  { %1412 = vpow2.f32 %v1247_v37 }
 0x817   :  { %1414 = vpow2.f32 %v1248_v41 }
 0x818   :  { %1416 = vpow2.f32 %v1249_v45 }
 0x819   :  { %1418 = vtanh.f32 %v1125_v46 }
 0x820   :  { %v1413_v47 = vpop.eup %1412 }
 0x821   :  { %v1415_v48 = vpop.eup %1414  ;;  %v1130_v49 = vadd.f32 1.0, %v1413_v47 }
 0x822   :  { %v1136_v50 = vadd.f32 1.0, %v1415_v48  ;;  %v1417_v32 = vpop.eup %1416 }
 0x823   :  { %1420 = vrcp.f32 %v1130_v49  ;;  %v1419_v51 = vpop.eup %1418  ;;  %v1143_v4 = vadd.f32 1.0, %v1417_v32 }
 0x824   :  { %1422 = vrcp.f32 %v1136_v50 }
 0x825   :  { %1424 = vrcp.f32 %v1143_v4 }
 0x82d   :  { %v1421_v52 = vpop.eup %1420 }
 0x82e   :  { %v1423_v2 = vpop.eup %1422  ;;  %v1147_v3 = vmul.f32 %v1421_v52, %v1419_v51 }
 0x82f   :  { %v1146_v5 = vmul.f32 %v1423_v2, %v1030_v56  ;;  %v1425_v8 = vpop.eup %1424 }
 0x831   :  { %v1148_v7 = vadd.f32 %v1147_v3, %v1146_v5 }
 0x833   :  { %1426 = vtanh.f32 %v1148_v7 }
 0x83d   :  { %v1427_v9 = vpop.eup %1426 }
 0x83e   :  { %v1150_v10 = vmul.f32 %v1427_v9, %v1425_v8 }
 0x840   :  { %v1151_v11 = vpack.c.bf16 %v1150_v10, %v1150_v10 }
 0x842   :  { %1250 = vst [vmem:[%s2119_s2 + $0x1c] sm:$0xf] %v1151_v11  ;;  %1154 = vst [vmem:[#allocation2] sm:$0xf] %v1151_v11 }

// kernel: decoder_rnn_forward.5
= control target key start
LH: loop header
LB: loop body
LE: loop exit
PB: predicated region body
PF: predicated region fallthrough
CT: control target
= control target key end

     0   :  { %v410_v12 = vmov 1983009808   ;;  %v188_v14 = vlaneseq  ;;  %v411_v18 = vmov 1934713408   ;;  %s495_s1 = inlined_call_operand.vmem [shape: bf16[128,128], index: 1, kind: input, shape index: {}]   ;;  %s496_s0 = inlined_call_operand.vmem [shape: bf16[8,8,128], index: 0, kind: input, shape index: {}]   ;;  %s497_s2 = inlined_call_operand.vmem [shape: f32[1,128], index: 2, kind: input, shape index: {}]   ;;  %s498_s3 = inlined_call_operand.vmem [shape: f32[8,8,128], index: 3, kind: output, shape index: {}]  }
   0x1   :  { %v398_v0 = vld [vmem:[%s495_s1] sm:$0xff]   ;;  %v399_v1 = vld [vmem:[%s495_s1 + $0x8] sm:$0xff]   ;;  %v400_v2 = vld [vmem:[%s495_s1 + $0x10] sm:$0xff]   ;;  %v186_v13 = vunpack.c.l.s4 %v410_v12  ;;  %v250_v19 = vunpack.c.l.s4 %v411_v18 }
   0x2   :  { %356 = vmatprep.subr.bf16.mxu0 %v398_v0  ;;  %380 = vmatprep.subr.bf16.mxu1 %v398_v0  ;;  %v401_v3 = vld [vmem:[%s495_s1 + $0x18] sm:$0xff]   ;;  %v406_v4 = vld [vmem:[%s496_s0] sm:$0xff]   ;;  %v407_v5 = vld [vmem:[%s496_s0 + $0x10] sm:$0xff]   ;;  %v189_v17 = vshrl.u32 %v188_v14, 7 }
   0x3   :  { %357 = vmatpush3.bf16.msra.mxu0 %v398_v0  ;;  %388 = vmatpush3.bf16.msra.mxu1 %v398_v0  ;;  %v402_v6 = vld [vmem:[%s495_s1 + $0x20] sm:$0xff]   ;;  %v403_v7 = vld [vmem:[%s495_s1 + $0x28] sm:$0xff]   ;;  %v404_v8 = vld [vmem:[%s495_s1 + $0x30] sm:$0xff]   ;;  %v187_v16 = vunpack.c.0.s8 %v186_v13  ;;  %v251_v34 = vunpack.c.0.s8 %v250_v19 }
   0x4   :  { %358 = vmatprep.subr.bf16.mxu0 %v399_v1  ;;  %381 = vmatprep.subr.bf16.mxu1 %v399_v1  ;;  %v405_v9 = vld [vmem:[%s495_s1 + $0x38] sm:$0xff]   ;;  %v408_v10 = vld [vmem:[%s496_s0 + $0x8] sm:$0xff]   ;;  %v331_v15 = vld [vmem:[%s497_s2] ss:$0 sm:$0xff] }
   0x5   :  { %372 = vmatprep.mubr.bf16.mxu0 %v406_v4  ;;  %376 = vmatprep.mubr.bf16.mxu1 %v407_v5  ;;  %v409_v11 = vld [vmem:[%s496_s0 + $0x18] sm:$0xff]   ;;  %v190_v30 = vsub.s32 %v187_v16, %v189_v17  ;;  %v254_v48 = vsub.s32 %v251_v34, %v189_v17 }
   0x7   :  { %359 = vmatpush3.bf16.msra.mxu0 %v399_v1  ;;  %389 = vmatpush3.bf16.msra.mxu1 %v399_v1 }
   0x8   :  { %360 = vmatprep.subr.bf16.mxu0 %v400_v2  ;;  %382 = vmatprep.subr.bf16.mxu1 %v400_v2 }
   0xb   :  { %361 = vmatpush3.bf16.msra.mxu0 %v400_v2  ;;  %390 = vmatpush3.bf16.msra.mxu1 %v400_v2 }
   0xc   :  { %362 = vmatprep.subr.bf16.mxu0 %v401_v3  ;;  %383 = vmatprep.subr.bf16.mxu1 %v401_v3 }
   0xf   :  { %363 = vmatpush3.bf16.msra.mxu0 %v401_v3  ;;  %391 = vmatpush3.bf16.msra.mxu1 %v401_v3 }
  0x10   :  { %364 = vmatprep.subr.bf16.mxu0 %v402_v6  ;;  %384 = vmatprep.subr.bf16.mxu1 %v402_v6 }
  0x13   :  { %365 = vmatpush3.bf16.msra.mxu0 %v402_v6  ;;  %392 = vmatpush3.bf16.msra.mxu1 %v402_v6 }
  0x14   :  { %366 = vmatprep.subr.bf16.mxu0 %v403_v7  ;;  %385 = vmatprep.subr.bf16.mxu1 %v403_v7 }
  0x17   :  { %367 = vmatpush3.bf16.msra.mxu0 %v403_v7  ;;  %393 = vmatpush3.bf16.msra.mxu1 %v403_v7 }
  0x18   :  { %368 = vmatprep.subr.bf16.mxu0 %v404_v8  ;;  %386 = vmatprep.subr.bf16.mxu1 %v404_v8 }
  0x1b   :  { %369 = vmatpush3.bf16.msra.mxu0 %v404_v8  ;;  %394 = vmatpush3.bf16.msra.mxu1 %v404_v8 }
  0x1c   :  { %370 = vmatprep.subr.bf16.mxu0 %v405_v9  ;;  %387 = vmatprep.subr.bf16.mxu1 %v405_v9 }
  0x1f   :  { %371 = vmatpush3.bf16.msra.mxu0 %v405_v9  ;;  %395 = vmatpush3.bf16.msra.mxu1 %v405_v9 }
  0x22   :  { %373 = vmatmul.mubr.bf16.vlgmr.msra.gmra.mrb[0].mxu0 %v408_v10  ;;  %377 = vmatmul.mubr.bf16.vlgmr.msra.gmra.mrb[0].mxu1 %v409_v11 }
  0xf5   :  { %v374_v20 = vpop.f32.mrb[0].mxu0  ;;  %v378_v21 = vpop.f32.mrb[0].mxu1 }
  0xf6   :  { %v161_v22 = vadd.f32 %v374_v20, %v331_v15  ;;  %v177_v23 = vadd.f32 %v378_v21, %v331_v15  ;;  %v152_v24 = vpop.f32.mrb[1].mxu0  ;;  %v168_v25 = vpop.f32.mrb[1].mxu1 }
  0xf7   :  { %v153_v26 = vadd.f32 %v331_v15, %v152_v24  ;;  %v169_v27 = vadd.f32 %v331_v15, %v168_v25  ;;  %v375_v28 = vpop.f32.mrb[2].mxu0  ;;  %v379_v29 = vpop.f32.mrb[2].mxu1 }
  0xf8   :  { %v164_v31 = vadd.f32 %v375_v28, %v331_v15  ;;  %v180_v32 = vadd.f32 %v379_v29, %v331_v15  ;;  %v155_v33 = vpop.f32.mrb[3].mxu0  ;;  %v171_v35 = vpop.f32.mrb[3].mxu1 }
  0xf9   :  { %v183_v36 = vcombine.low %v153_v26, %v161_v22  ;;  %v184_v37 = vcombine.high %v153_v26, %v161_v22  ;;  %v215_v38 = vcombine.low %v169_v27, %v177_v23  ;;  %v216_v39 = vcombine.high %v169_v27, %v177_v23 }
  0xfa   :  { %v156_v40 = vadd.f32 %v331_v15, %v155_v33  ;;  %v172_v41 = vadd.f32 %v331_v15, %v171_v35 }
  0xfb   :  { %v191_v46 = vrot.slane %v183_v36, %v190_v30  ;;  %v198_v47 = vrot.slane %v184_v37, %v190_v30  ;;  %v223_v53 = vrot.slane %v215_v38, %v190_v30  ;;  %v230_v54 = vrot.slane %v216_v39, %v190_v30 }
  0xfc   :  { %v199_v42 = vcombine.low %v156_v40, %v164_v31  ;;  %v200_v43 = vcombine.high %v156_v40, %v164_v31  ;;  %v231_v44 = vcombine.low %v172_v41, %v180_v32  ;;  %v232_v45 = vcombine.high %v172_v41, %v180_v32 }
  0xfe   :  { %v207_v49 = vrot.slane %v199_v42, %v190_v30  ;;  %v214_v50 = vrot.slane %v200_v43, %v190_v30  ;;  %v239_v51 = vrot.slane %v231_v44, %v190_v30  ;;  %v246_v52 = vrot.slane %v232_v45, %v190_v30 }
 0x100   :  { %v247_v55 = vcombine.low %v191_v46, %v207_v49  ;;  %v248_v56 = vcombine.high %v191_v46, %v207_v49  ;;  %v263_v57 = vcombine.low %v198_v47, %v214_v50  ;;  %v264_v58 = vcombine.high %v198_v47, %v214_v50 }
 0x101   :  { %v279_v59 = vcombine.low %v223_v53, %v239_v51  ;;  %v280_v60 = vcombine.high %v223_v53, %v239_v51  ;;  %v295_v61 = vcombine.low %v230_v54, %v246_v52  ;;  %v296_v62 = vcombine.high %v230_v54, %v246_v52 }
 0x102   :  { %v255_v63 = vrot.slane %v247_v55, %v254_v48  ;;  %v262_v0 = vrot.slane %v248_v56, %v254_v48  ;;  %v271_v1 = vrot.slane %v263_v57, %v254_v48  ;;  %v278_v2 = vrot.slane %v264_v58, %v254_v48 }
 0x103   :  { %v287_v3 = vrot.slane %v279_v59, %v254_v48  ;;  %v294_v4 = vrot.slane %v280_v60, %v254_v48  ;;  %v303_v5 = vrot.slane %v295_v61, %v254_v48  ;;  %v310_v6 = vrot.slane %v296_v62, %v254_v48 }
 0x105   :  { %v311_v7 = vcombine.low %v255_v63, %v287_v3  ;;  %v312_v8 = vcombine.high %v255_v63, %v287_v3  ;;  %v313_v9 = vcombine.low %v262_v0, %v294_v4  ;;  %v314_v10 = vcombine.high %v262_v0, %v294_v4 }
 0x106   :  { %v315_v11 = vcombine.low %v271_v1, %v303_v5  ;;  %v316_v12 = vcombine.high %v271_v1, %v303_v5  ;;  %v317_v13 = vcombine.low %v278_v2, %v310_v6  ;;  %v318_v14 = vcombine.high %v278_v2, %v310_v6 }
 0x107   :  { %319 = vst [vmem:[%s498_s3] sm:$0xff] %v311_v7  ;;  %320 = vst [vmem:[%s498_s3 + $0x8] sm:$0xff] %v312_v8 }
 0x108   :  { %321 = vst [vmem:[%s498_s3 + $0x10] sm:$0xff] %v313_v9  ;;  %322 = vst [vmem:[%s498_s3 + $0x18] sm:$0xff] %v314_v10 }
 0x109   :  { %323 = vst [vmem:[%s498_s3 + $0x20] sm:$0xff] %v315_v11  ;;  %324 = vst [vmem:[%s498_s3 + $0x28] sm:$0xff] %v316_v12 }
 0x10a   :  { %325 = vst [vmem:[%s498_s3 + $0x30] sm:$0xff] %v317_v13  ;;  %326 = vst [vmem:[%s498_s3 + $0x38] sm:$0xff] %v318_v14 }

// kernel: decoder_rnn_forward.3
= control target key start
LH: loop header
LB: loop body
LE: loop exit
PB: predicated region body
PF: predicated region fallthrough
CT: control target
= control target key end

     0   :  { %v532_v1 = vmov 0   ;;  %v57_v37 = vlaneseq  ;;  %s808_s1 = inlined_call_operand.vmem [shape: bf16[128,512], index: 1, kind: input, shape index: {}]   ;;  %s809_s0 = inlined_call_operand.vmem [shape: bf16[64,128], index: 0, kind: input, shape index: {}]   ;;  %s810_s2 = inlined_call_operand.vmem [shape: f32[1,512], index: 2, kind: input, shape index: {}]   ;;  %s811_s3 = inlined_call_operand.vmem [shape: f32[64,512], index: 3, kind: output, shape index: {}]  }
   0x1   :  { %v480_v0 = vld [vmem:[%s808_s1 + $0x4] ss:$16 sps:$4 sm:$0xff]   ;;  %293 = vmatprep.mubr.bf16.mxu0 %v532_v1  ;;  %366 = vmatprep.mubr.bf16.mxu1 %v532_v1  ;;  %v482_v2 = vld [vmem:[%s808_s1 + $0xc] ss:$16 sps:$4 sm:$0xff]   ;;  %v484_v3 = vld [vmem:[%s808_s1] ss:$16 sps:$4 sm:$0xff]  }
   0x2   :  { %261 = vmatprep.subr.bf16.mxu0 %v480_v0  ;;  %v485_v4 = vld [vmem:[%s808_s1 + $0x8] ss:$16 sps:$4 sm:$0xff]   ;;  %334 = vmatprep.subr.bf16.mxu1 %v482_v2  ;;  %v486_v5 = vld [vmem:[%s808_s1 + $0x24] ss:$16 sps:$4 sm:$0xff]   ;;  %v488_v6 = vld [vmem:[%s808_s1 + $0x2c] ss:$16 sps:$4 sm:$0xff]  }
   0x3   :  { %262 = vmatpush1.bf16.msra.mxu0 %v484_v3  ;;  %335 = vmatpush1.bf16.msra.mxu1 %v485_v4  ;;  %v490_v7 = vld [vmem:[%s808_s1 + $0x20] ss:$16 sps:$4 sm:$0xff]   ;;  %v491_v8 = vld [vmem:[%s808_s1 + $0x28] ss:$16 sps:$4 sm:$0xff]   ;;  %v492_v9 = vld [vmem:[%s808_s1 + $0x44] ss:$16 sps:$4 sm:$0xff]  }
   0x4   :  { %263 = vmatprep.subr.bf16.mxu0 %v486_v5  ;;  %336 = vmatprep.subr.bf16.mxu1 %v488_v6  ;;  %v494_v10 = vld [vmem:[%s808_s1 + $0x4c] ss:$16 sps:$4 sm:$0xff]   ;;  %v496_v11 = vld [vmem:[%s808_s1 + $0x40] ss:$16 sps:$4 sm:$0xff]   ;;  %v497_v12 = vld [vmem:[%s808_s1 + $0x48] ss:$16 sps:$4 sm:$0xff]  }
   0x5   :  { %v498_v13 = vld [vmem:[%s808_s1 + $0x64] ss:$16 sps:$4 sm:$0xff]   ;;  %v500_v14 = vld [vmem:[%s808_s1 + $0x6c] ss:$16 sps:$4 sm:$0xff]   ;;  %v502_v15 = vld [vmem:[%s808_s1 + $0x60] ss:$16 sps:$4 sm:$0xff]  }
   0x6   :  { %v503_v16 = vld [vmem:[%s808_s1 + $0x68] ss:$16 sps:$4 sm:$0xff]   ;;  %v504_v17 = vld [vmem:[%s808_s1 + $0x84] ss:$16 sps:$4 sm:$0xff]   ;;  %v506_v18 = vld [vmem:[%s808_s1 + $0x8c] ss:$16 sps:$4 sm:$0xff]  }
   0x7   :  { %264 = vmatpush1.bf16.msra.mxu0 %v490_v7  ;;  %337 = vmatpush1.bf16.msra.mxu1 %v491_v8  ;;  %v508_v19 = vld [vmem:[%s808_s1 + $0x80] ss:$16 sps:$4 sm:$0xff]   ;;  %v509_v20 = vld [vmem:[%s808_s1 + $0x88] ss:$16 sps:$4 sm:$0xff]   ;;  %v510_v21 = vld [vmem:[%s808_s1 + $0xa4] ss:$16 sps:$4 sm:$0xff]  }
   0x8   :  { %265 = vmatprep.subr.bf16.mxu0 %v492_v9  ;;  %338 = vmatprep.subr.bf16.mxu1 %v494_v10  ;;  %v512_v22 = vld [vmem:[%s808_s1 + $0xac] ss:$16 sps:$4 sm:$0xff]   ;;  %v514_v23 = vld [vmem:[%s808_s1 + $0xa0] ss:$16 sps:$4 sm:$0xff]   ;;  %v515_v24 = vld [vmem:[%s808_s1 + $0xa8] ss:$16 sps:$4 sm:$0xff]  }
   0x9   :  { %v516_v25 = vld [vmem:[%s808_s1 + $0xc4] ss:$16 sps:$4 sm:$0xff]   ;;  %v518_v26 = vld [vmem:[%s808_s1 + $0xcc] ss:$16 sps:$4 sm:$0xff]   ;;  %v520_v27 = vld [vmem:[%s808_s1 + $0xc0] ss:$16 sps:$4 sm:$0xff]  }
   0xa   :  { %v521_v28 = vld [vmem:[%s808_s1 + $0xc8] ss:$16 sps:$4 sm:$0xff]   ;;  %v522_v29 = vld [vmem:[%s808_s1 + $0xe4] ss:$16 sps:$4 sm:$0xff]   ;;  %v524_v30 = vld [vmem:[%s808_s1 + $0xec] ss:$16 sps:$4 sm:$0xff]  }
   0xb   :  { %266 = vmatpush1.bf16.msra.mxu0 %v496_v11  ;;  %339 = vmatpush1.bf16.msra.mxu1 %v497_v12  ;;  %v526_v31 = vld [vmem:[%s808_s1 + $0xe0] ss:$16 sps:$4 sm:$0xff]   ;;  %v527_v32 = vld [vmem:[%s808_s1 + $0xe8] ss:$16 sps:$4 sm:$0xff]   ;;  %v58_v38 = vshrl.u32 %v57_v37, 7 }
   0xc   :  { %267 = vmatprep.subr.bf16.mxu0 %v498_v13  ;;  %340 = vmatprep.subr.bf16.mxu1 %v500_v14  ;;  %v528_v33 = vld [vmem:[%s809_s0] sm:$0xff]   ;;  %v529_v34 = vld [vmem:[%s809_s0 + $0x8] sm:$0xff]   ;;  %v530_v35 = vld [vmem:[%s809_s0 + $0x10] sm:$0xff]  }
   0xd   :  { %v531_v36 = vld [vmem:[%s809_s0 + $0x18] sm:$0xff]   ;;  %v59_v39 = vsub.s32 0, %v58_v38  ;;  %v67_v40 = vsub.s32 2, %v58_v38  ;;  %v55_v41 = vld [vmem:[%s810_s2] sm:$0xf]  ;;  %v63_v42 = vsub.s32 1, %v58_v38 }
   0xe   :  { %v71_v43 = vsub.s32 3, %v58_v38 }
   0xf   :  { %268 = vmatpush1.bf16.msra.mxu0 %v502_v15  ;;  %341 = vmatpush1.bf16.msra.mxu1 %v503_v16  ;;  %v672_v44 = vrot.slane %v55_v41, %v59_v39  ;;  %v674_v45 = vrot.slane %v55_v41, %v67_v40  ;;  %v676_v46 = vrot.slane %v55_v41, %v63_v42 }
  0x10   :  { %269 = vmatprep.subr.bf16.mxu0 %v504_v17  ;;  %342 = vmatprep.subr.bf16.mxu1 %v506_v18  ;;  %v678_v47 = vrot.slane %v55_v41, %v71_v43 }
  0x13   :  { %270 = vmatpush1.bf16.msra.mxu0 %v508_v19  ;;  %343 = vmatpush1.bf16.msra.mxu1 %v509_v20 }
  0x14   :  { %271 = vmatprep.subr.bf16.mxu0 %v510_v21  ;;  %344 = vmatprep.subr.bf16.mxu1 %v512_v22 }
  0x17   :  { %272 = vmatpush1.bf16.msra.mxu0 %v514_v23  ;;  %345 = vmatpush1.bf16.msra.mxu1 %v515_v24 }
  0x18   :  { %273 = vmatprep.subr.bf16.mxu0 %v516_v25  ;;  %346 = vmatprep.subr.bf16.mxu1 %v518_v26 }
  0x1b   :  { %274 = vmatpush1.bf16.msra.mxu0 %v520_v27  ;;  %347 = vmatpush1.bf16.msra.mxu1 %v521_v28 }
  0x1c   :  { %275 = vmatprep.subr.bf16.mxu0 %v522_v29  ;;  %348 = vmatprep.subr.bf16.mxu1 %v524_v30 }
  0x1f   :  { %276 = vmatpush1.bf16.msra.mxu0 %v526_v31  ;;  %349 = vmatpush1.bf16.msra.mxu1 %v527_v32 }
  0x22   :  { %294 = vmatmul.mubr.bf16.vlgmr.msra.gmra.mrb[0].mxu0 %v528_v33  ;;  %367 = vmatmul.mubr.bf16.vlgmr.msra.gmra.mrb[0].mxu1 %v528_v33 }
  0x23   :  { %303 = vmatprep.mubr.bf16.mxu0 %v532_v1  ;;  %376 = vmatprep.mubr.bf16.mxu1 %v532_v1 }
  0x2a   :  { %304 = vmatmul.mubr.bf16.gmra.mrb[4].mxu0 %v529_v34  ;;  %377 = vmatmul.mubr.bf16.gmra.mrb[4].mxu1 %v529_v34 }
  0x2b   :  { %313 = vmatprep.mubr.bf16.mxu0 %v532_v1  ;;  %386 = vmatprep.mubr.bf16.mxu1 %v532_v1 }
  0x32   :  { %314 = vmatmul.mubr.bf16.gmra.mrb[8].mxu0 %v530_v35  ;;  %387 = vmatmul.mubr.bf16.gmra.mrb[8].mxu1 %v530_v35 }
  0x33   :  { %323 = vmatprep.mubr.bf16.mxu0 %v532_v1  ;;  %396 = vmatprep.mubr.bf16.mxu1 %v532_v1 }
  0x3a   :  { %324 = vmatmul.mubr.bf16.gmra.mrb[12].mxu0 %v531_v36  ;;  %397 = vmatmul.mubr.bf16.gmra.mrb[12].mxu1 %v531_v36 }
  0xf5   :  { %v295_v48 = vpop.f32.mrb[0].mxu0  ;;  %v368_v49 = vpop.f32.mrb[0].mxu1 }
  0xf6   :  { %v296_v50 = vadd.f32 %v295_v48, %v672_v44  ;;  %v369_v51 = vadd.f32 %v368_v49, %v674_v45  ;;  %v297_v52 = vpop.f32.mrb[1].mxu0  ;;  %v370_v53 = vpop.f32.mrb[1].mxu1 }
  0xf7   :  { %v298_v54 = vadd.f32 %v297_v52, %v676_v46  ;;  %v371_v55 = vadd.f32 %v370_v53, %v678_v47  ;;  %v299_v56 = vpop.f32.mrb[2].mxu0  ;;  %v372_v57 = vpop.f32.mrb[2].mxu1 }
  0xf8   :  { %407 = vst [vmem:[%s811_s3] sm:$0xff] %v296_v50  ;;  %409 = vst [vmem:[%s811_s3 + $0x10] sm:$0xff] %v369_v51  ;;  %v300_v58 = vadd.f32 %v299_v56, %v672_v44  ;;  %v373_v59 = vadd.f32 %v372_v57, %v674_v45  ;;  %v301_v60 = vpop.f32.mrb[3].mxu0  ;;  %v374_v61 = vpop.f32.mrb[3].mxu1 }
  0xf9   :  { %408 = vst [vmem:[%s811_s3 + $0x8] sm:$0xff] %v298_v54  ;;  %410 = vst [vmem:[%s811_s3 + $0x18] sm:$0xff] %v371_v55  ;;  %v302_v62 = vadd.f32 %v301_v60, %v676_v46  ;;  %v375_v63 = vadd.f32 %v374_v61, %v678_v47 }
  0xfa   :  { %411 = vst [vmem:[%s811_s3 + $0x20] sm:$0xff] %v300_v58  ;;  %413 = vst [vmem:[%s811_s3 + $0x30] sm:$0xff] %v373_v59 }
  0xfb   :  { %412 = vst [vmem:[%s811_s3 + $0x28] sm:$0xff] %v302_v62  ;;  %414 = vst [vmem:[%s811_s3 + $0x38] sm:$0xff] %v375_v63 }
  0xfd   :  { %v305_v0 = vpop.f32.mrb[4].mxu0  ;;  %v378_v1 = vpop.f32.mrb[4].mxu1 }
  0xfe   :  { %v306_v2 = vadd.f32 %v305_v0, %v672_v44  ;;  %v379_v3 = vadd.f32 %v378_v1, %v674_v45  ;;  %v307_v4 = vpop.f32.mrb[5].mxu0  ;;  %v380_v5 = vpop.f32.mrb[5].mxu1 }
  0xff   :  { %v308_v6 = vadd.f32 %v307_v4, %v676_v46  ;;  %v381_v7 = vadd.f32 %v380_v5, %v678_v47  ;;  %v309_v8 = vpop.f32.mrb[6].mxu0  ;;  %v382_v9 = vpop.f32.mrb[6].mxu1 }
 0x100   :  { %415 = vst [vmem:[%s811_s3 + $0x40] sm:$0xff] %v306_v2  ;;  %417 = vst [vmem:[%s811_s3 + $0x50] sm:$0xff] %v379_v3  ;;  %v310_v10 = vadd.f32 %v309_v8, %v672_v44  ;;  %v383_v11 = vadd.f32 %v382_v9, %v674_v45  ;;  %v311_v12 = vpop.f32.mrb[7].mxu0  ;;  %v384_v13 = vpop.f32.mrb[7].mxu1 }
 0x101   :  { %416 = vst [vmem:[%s811_s3 + $0x48] sm:$0xff] %v308_v6  ;;  %418 = vst [vmem:[%s811_s3 + $0x58] sm:$0xff] %v381_v7  ;;  %v312_v14 = vadd.f32 %v311_v12, %v676_v46  ;;  %v385_v15 = vadd.f32 %v384_v13, %v678_v47 }
 0x102   :  { %419 = vst [vmem:[%s811_s3 + $0x60] sm:$0xff] %v310_v10  ;;  %421 = vst [vmem:[%s811_s3 + $0x70] sm:$0xff] %v383_v11 }
 0x103   :  { %420 = vst [vmem:[%s811_s3 + $0x68] sm:$0xff] %v312_v14  ;;  %422 = vst [vmem:[%s811_s3 + $0x78] sm:$0xff] %v385_v15 }
 0x105   :  { %v315_v16 = vpop.f32.mrb[8].mxu0  ;;  %v388_v17 = vpop.f32.mrb[8].mxu1 }
 0x106   :  { %v316_v18 = vadd.f32 %v315_v16, %v672_v44  ;;  %v389_v19 = vadd.f32 %v388_v17, %v674_v45  ;;  %v317_v20 = vpop.f32.mrb[9].mxu0  ;;  %v390_v21 = vpop.f32.mrb[9].mxu1 }
 0x107   :  { %v318_v22 = vadd.f32 %v317_v20, %v676_v46  ;;  %v391_v23 = vadd.f32 %v390_v21, %v678_v47  ;;  %v319_v24 = vpop.f32.mrb[10].mxu0  ;;  %v392_v25 = vpop.f32.mrb[10].mxu1 }
 0x108   :  { %423 = vst [vmem:[%s811_s3 + $0x80] sm:$0xff] %v316_v18  ;;  %425 = vst [vmem:[%s811_s3 + $0x90] sm:$0xff] %v389_v19  ;;  %v320_v26 = vadd.f32 %v319_v24, %v672_v44  ;;  %v393_v27 = vadd.f32 %v392_v25, %v674_v45  ;;  %v321_v28 = vpop.f32.mrb[11].mxu0  ;;  %v394_v29 = vpop.f32.mrb[11].mxu1 }
 0x109   :  { %424 = vst [vmem:[%s811_s3 + $0x88] sm:$0xff] %v318_v22  ;;  %426 = vst [vmem:[%s811_s3 + $0x98] sm:$0xff] %v391_v23  ;;  %v322_v30 = vadd.f32 %v321_v28, %v676_v46  ;;  %v395_v31 = vadd.f32 %v394_v29, %v678_v47 }
 0x10a   :  { %427 = vst [vmem:[%s811_s3 + $0xa0] sm:$0xff] %v320_v26  ;;  %429 = vst [vmem:[%s811_s3 + $0xb0] sm:$0xff] %v393_v27 }
 0x10b   :  { %428 = vst [vmem:[%s811_s3 + $0xa8] sm:$0xff] %v322_v30  ;;  %430 = vst [vmem:[%s811_s3 + $0xb8] sm:$0xff] %v395_v31 }
 0x10d   :  { %v325_v32 = vpop.f32.mrb[12].mxu0  ;;  %v398_v33 = vpop.f32.mrb[12].mxu1 }
 0x10e   :  { %v326_v34 = vadd.f32 %v325_v32, %v672_v44  ;;  %v399_v35 = vadd.f32 %v398_v33, %v674_v45  ;;  %v327_v36 = vpop.f32.mrb[13].mxu0  ;;  %v400_v37 = vpop.f32.mrb[13].mxu1 }
 0x10f   :  { %v328_v38 = vadd.f32 %v327_v36, %v676_v46  ;;  %v401_v39 = vadd.f32 %v400_v37, %v678_v47  ;;  %v329_v40 = vpop.f32.mrb[14].mxu0  ;;  %v402_v41 = vpop.f32.mrb[14].mxu1 }
 0x110   :  { %431 = vst [vmem:[%s811_s3 + $0xc0] sm:$0xff] %v326_v34  ;;  %433 = vst [vmem:[%s811_s3 + $0xd0] sm:$0xff] %v399_v35  ;;  %v330_v42 = vadd.f32 %v329_v40, %v672_v44  ;;  %v403_v43 = vadd.f32 %v402_v41, %v674_v45  ;;  %v331_v48 = vpop.f32.mrb[15].mxu0  ;;  %v404_v49 = vpop.f32.mrb[15].mxu1 }
 0x111   :  { %432 = vst [vmem:[%s811_s3 + $0xc8] sm:$0xff] %v328_v38  ;;  %434 = vst [vmem:[%s811_s3 + $0xd8] sm:$0xff] %v401_v39  ;;  %v332_v50 = vadd.f32 %v331_v48, %v676_v46  ;;  %v405_v51 = vadd.f32 %v404_v49, %v678_v47 }
 0x112   :  { %435 = vst [vmem:[%s811_s3 + $0xe0] sm:$0xff] %v330_v42  ;;  %437 = vst [vmem:[%s811_s3 + $0xf0] sm:$0xff] %v403_v43 }
 0x113   :  { %436 = vst [vmem:[%s811_s3 + $0xe8] sm:$0xff] %v332_v50  ;;  %438 = vst [vmem:[%s811_s3 + $0xf8] sm:$0xff] %v405_v51 }

// kernel: decoder_rnn_forward.4
= control target key start
LH: loop header
LB: loop body
LE: loop exit
PB: predicated region body
PF: predicated region fallthrough
CT: control target
= control target key end

     0   :  { %v1460_v1 = vmov 0   ;;  %s2117_s1 = inlined_call_operand.vmem [shape: bf16[128,512], index: 1, kind: input, shape index: {}]   ;;  %s2118_s0 = inlined_call_operand.vmem [shape: f32[8,8,512], index: 0, kind: input, shape index: {}]   ;;  %s2119_s2 = inlined_call_operand.vmem [shape: bf16[8,8,128], index: 2, kind: output, shape index: {}]  }
   0x1   :  { %v1479_v0 = vld [vmem:[%s2117_s1 + $0x4] ss:$16 sps:$4 sm:$0xff]   ;;  %248 = vmatprep.mubr.bf16.mxu0 %v1460_v1  ;;  %16 = vst [vmem:[#allocation2] sm:$0xf] %v1460_v1  ;;  %289 = vmatprep.mubr.bf16.mxu1 %v1460_v1  ;;  %v1487_v2 = vld [vmem:[%s2117_s1] ss:$16 sps:$4 sm:$0xff]  }
   0x2   :  { %216 = vmatprep.subr.bf16.mxu0 %v1479_v0  ;;  %v1493_v3 = vld [vmem:[%s2117_s1 + $0x24] ss:$16 sps:$4 sm:$0xff]   ;;  %v1499_v4 = vld [vmem:[%s2117_s1 + $0x20] ss:$16 sps:$4 sm:$0xff]   ;;  %v1510_v6 = vld [vmem:[%s2117_s1 + $0xc] ss:$16 sps:$4 sm:$0xff]  }
   0x3   :  { %217 = vmatpush1.bf16.msra.mxu0 %v1487_v2  ;;  %v1505_v5 = vld [vmem:[%s2117_s1 + $0x44] ss:$16 sps:$4 sm:$0xff]   ;;  %v1515_v7 = vld [vmem:[%s2117_s1 + $0x8] ss:$16 sps:$4 sm:$0xff]   ;;  %v1521_v8 = vld [vmem:[%s2117_s1 + $0x40] ss:$16 sps:$4 sm:$0xff]   ;;  %257 = vmatprep.subr.bf16.mxu1 %v1510_v6 }
   0x4   :  { %218 = vmatprep.subr.bf16.mxu0 %v1493_v3  ;;  %v1528_v9 = vld [vmem:[%s2117_s1 + $0x64] ss:$16 sps:$4 sm:$0xff]   ;;  %258 = vmatpush1.bf16.msra.mxu1 %v1515_v7  ;;  %v1534_v10 = vld [vmem:[%s2117_s1 + $0x2c] ss:$16 sps:$4 sm:$0xff]   ;;  %v1539_v11 = vld [vmem:[%s2117_s1 + $0x28] ss:$16 sps:$4 sm:$0xff]  }
   0x5   :  { %259 = vmatprep.subr.bf16.mxu1 %v1534_v10  ;;  %v1546_v12 = vld [vmem:[%s2117_s1 + $0x60] ss:$16 sps:$4 sm:$0xff]   ;;  %v1551_v13 = vld [vmem:[%s2117_s1 + $0x84] ss:$16 sps:$4 sm:$0xff]   ;;  %v1556_v14 = vld [vmem:[%s2117_s1 + $0x4c] ss:$16 sps:$4 sm:$0xff]  }
   0x6   :  { %v1563_v15 = vld [vmem:[%s2117_s1 + $0x48] ss:$16 sps:$4 sm:$0xff]   ;;  %v1569_v16 = vld [vmem:[%s2117_s1 + $0x6c] ss:$16 sps:$4 sm:$0xff]   ;;  %v1575_v17 = vld [vmem:[%s2117_s1 + $0x80] ss:$16 sps:$4 sm:$0xff]  }
   0x7   :  { %219 = vmatpush1.bf16.msra.mxu0 %v1499_v4  ;;  %v1581_v18 = vld [vmem:[%s2117_s1 + $0xa4] ss:$16 sps:$4 sm:$0xff]   ;;  %v1587_v19 = vld [vmem:[%s2117_s1 + $0x68] ss:$16 sps:$4 sm:$0xff]   ;;  %v1593_v20 = vld [vmem:[%s2117_s1 + $0x8c] ss:$16 sps:$4 sm:$0xff]  }
   0x8   :  { %220 = vmatprep.subr.bf16.mxu0 %v1505_v5  ;;  %260 = vmatpush1.bf16.msra.mxu1 %v1539_v11  ;;  %v1598_v21 = vld [vmem:[%s2117_s1 + $0xa0] ss:$16 sps:$4 sm:$0xff]   ;;  %v1604_v22 = vld [vmem:[%s2117_s1 + $0xc4] ss:$16 sps:$4 sm:$0xff]   ;;  %v1611_v23 = vld [vmem:[%s2117_s1 + $0x88] ss:$16 sps:$4 sm:$0xff]  }
   0x9   :  { %261 = vmatprep.subr.bf16.mxu1 %v1556_v14  ;;  %v1617_v24 = vld [vmem:[%s2117_s1 + $0xac] ss:$16 sps:$4 sm:$0xff]   ;;  %v1623_v25 = vld [vmem:[%s2117_s1 + $0xc0] ss:$16 sps:$4 sm:$0xff]   ;;  %v1629_v26 = vld [vmem:[%s2117_s1 + $0xe4] ss:$16 sps:$4 sm:$0xff]  }
   0xa   :  { %v1635_v27 = vld [vmem:[%s2117_s1 + $0xa8] ss:$16 sps:$4 sm:$0xff]   ;;  %v1641_v28 = vld [vmem:[%s2117_s1 + $0xcc] ss:$16 sps:$4 sm:$0xff]   ;;  %v1647_v29 = vld [vmem:[%s2117_s1 + $0xe0] ss:$16 sps:$4 sm:$0xff]  }
   0xb   :  { %221 = vmatpush1.bf16.msra.mxu0 %v1521_v8  ;;  %v1654_v30 = vld [vmem:[%s2117_s1 + $0xc8] ss:$16 sps:$4 sm:$0xff]   ;;  %v1660_v31 = vld [vmem:[%s2117_s1 + $0xec] ss:$16 sps:$4 sm:$0xff]   ;;  %v50_v32 = vld [vmem:[#allocation2] sm:$0xf] }
   0xc   :  { %222 = vmatprep.subr.bf16.mxu0 %v1528_v9  ;;  %262 = vmatpush1.bf16.msra.mxu1 %v1563_v15  ;;  %v1667_v33 = vld [vmem:[%s2117_s1 + $0xe8] ss:$16 sps:$4 sm:$0xff]   ;;  %v52_v34 = vld [vmem:[%s2118_s0] sm:$0xff]  ;;  %v54_v50 = vld [vmem:[%s2118_s0 + $0x10] sm:$0xff] }
   0xd   :  { %263 = vmatprep.subr.bf16.mxu1 %v1569_v16  ;;  %v53_v35 = vld [vmem:[%s2118_s0 + $0x8] sm:$0xff]  ;;  %v55_v44 = vld [vmem:[%s2118_s0 + $0x18] sm:$0xff] }
   0xf   :  { %223 = vmatpush1.bf16.msra.mxu0 %v1546_v12 }
  0x10   :  { %224 = vmatprep.subr.bf16.mxu0 %v1551_v13  ;;  %264 = vmatpush1.bf16.msra.mxu1 %v1587_v19 }
  0x11   :  { %265 = vmatprep.subr.bf16.mxu1 %v1593_v20 }
  0x13   :  { %225 = vmatpush1.bf16.msra.mxu0 %v1575_v17 }
  0x14   :  { %226 = vmatprep.subr.bf16.mxu0 %v1581_v18  ;;  %266 = vmatpush1.bf16.msra.mxu1 %v1611_v23 }
  0x15   :  { %267 = vmatprep.subr.bf16.mxu1 %v1617_v24 }
  0x17   :  { %227 = vmatpush1.bf16.msra.mxu0 %v1598_v21 }
  0x18   :  { %228 = vmatprep.subr.bf16.mxu0 %v1604_v22  ;;  %268 = vmatpush1.bf16.msra.mxu1 %v1635_v27 }
  0x19   :  { %269 = vmatprep.subr.bf16.mxu1 %v1641_v28 }
  0x1b   :  { %229 = vmatpush1.bf16.msra.mxu0 %v1623_v25 }
  0x1c   :  { %230 = vmatprep.subr.bf16.mxu0 %v1629_v26  ;;  %270 = vmatpush1.bf16.msra.mxu1 %v1654_v30 }
  0x1d   :  { %271 = vmatprep.subr.bf16.mxu1 %v1660_v31 }
  0x1f   :  { %231 = vmatpush1.bf16.msra.mxu0 %v1647_v29 }
  0x20   :  { %333 = vmatprep.subr.bf16.mxu0 %v1479_v0  ;;  %272 = vmatpush1.bf16.msra.mxu1 %v1667_v33 }
  0x21   :  { %374 = vmatprep.subr.bf16.mxu1 %v1510_v6 }
  0x22   :  { %249 = vmatmul.mubr.bf16.vlgmr.msra.gmra.mrb[0].mxu0 %v50_v32 }
  0x23   :  { %334 = vmatpush1.bf16.msra.mxu0 %v1487_v2  ;;  %365 = vmatprep.mubr.bf16.mxu0 %v1460_v1 }
  0x24   :  { %335 = vmatprep.subr.bf16.mxu0 %v1493_v3  ;;  %290 = vmatmul.mubr.bf16.vlgmr.msra.gmra.mrb[0].mxu1 %v50_v32 }
  0x25   :  { %375 = vmatpush1.bf16.msra.mxu1 %v1515_v7  ;;  %406 = vmatprep.mubr.bf16.mxu1 %v1460_v1 }
  0x26   :  { %376 = vmatprep.subr.bf16.mxu1 %v1534_v10 }
  0x27   :  { %336 = vmatpush1.bf16.msra.mxu0 %v1499_v4 }
  0x28   :  { %337 = vmatprep.subr.bf16.mxu0 %v1505_v5 }
  0x29   :  { %377 = vmatpush1.bf16.msra.mxu1 %v1539_v11 }
  0x2a   :  { %378 = vmatprep.subr.bf16.mxu1 %v1556_v14 }
  0x2b   :  { %338 = vmatpush1.bf16.msra.mxu0 %v1521_v8 }
  0x2c   :  { %339 = vmatprep.subr.bf16.mxu0 %v1528_v9 }
  0x2d   :  { %379 = vmatpush1.bf16.msra.mxu1 %v1563_v15 }
  0x2e   :  { %380 = vmatprep.subr.bf16.mxu1 %v1569_v16 }
  0x2f   :  { %340 = vmatpush1.bf16.msra.mxu0 %v1546_v12 }
  0x30   :  { %341 = vmatprep.subr.bf16.mxu0 %v1551_v13 }
  0x31   :  { %381 = vmatpush1.bf16.msra.mxu1 %v1587_v19 }
  0x32   :  { %382 = vmatprep.subr.bf16.mxu1 %v1593_v20 }
  0x33   :  { %342 = vmatpush1.bf16.msra.mxu0 %v1575_v17 }
  0x34   :  { %343 = vmatprep.subr.bf16.mxu0 %v1581_v18 }
  0x35   :  { %383 = vmatpush1.bf16.msra.mxu1 %v1611_v23 }
  0x36   :  { %384 = vmatprep.subr.bf16.mxu1 %v1617_v24 }
  0x37   :  { %344 = vmatpush1.bf16.msra.mxu0 %v1598_v21 }
  0x38   :  { %345 = vmatprep.subr.bf16.mxu0 %v1604_v22 }
  0x39   :  { %385 = vmatpush1.bf16.msra.mxu1 %v1635_v27 }
  0x3a   :  { %386 = vmatprep.subr.bf16.mxu1 %v1641_v28 }
  0x3b   :  { %346 = vmatpush1.bf16.msra.mxu0 %v1623_v25 }
  0x3c   :  { %347 = vmatprep.subr.bf16.mxu0 %v1629_v26 }
  0x3d   :  { %387 = vmatpush1.bf16.msra.mxu1 %v1654_v30 }
  0x3e   :  { %388 = vmatprep.subr.bf16.mxu1 %v1660_v31 }
  0x3f   :  { %348 = vmatpush1.bf16.msra.mxu0 %v1647_v29 }
  0x40   :  { %451 = vmatprep.subr.bf16.mxu0 %v1479_v0 }
  0x41   :  { %389 = vmatpush1.bf16.msra.mxu1 %v1667_v33 }
  0x42   :  { %492 = vmatprep.subr.bf16.mxu1 %v1510_v6 }
  0xf5   :  { %v250_v36 = vpop.f32.mrb[0].mxu0 }
  0xf6   :  { %v298_v37 = vadd.f32 %v250_v36, %v52_v34  ;;  %v252_v38 = vpop.f32.mrb[1].mxu0 }
  0xf7   :  { %v299_v39 = vadd.f32 %v252_v38, %v53_v35  ;;  %v254_v40 = vpop.f32.mrb[2].mxu0  ;;  %v291_v45 = vpop.f32.mrb[0].mxu1  ;;  %v1195_v38 = vld [vmem:[%s2118_s0 + $0x20] sm:$0xff] }
  0xf8   :  { %v1192_v41 = vmul.f32 -1.442695, %v298_v37  ;;  %v255_v42 = vpop.f32.mrb[3].mxu0  ;;  %v293_v46 = vpop.f32.mrb[1].mxu1  ;;  %v300_v52 = vadd.f32 %v291_v45, %v54_v50 }
  0xf9   :  { %v1193_v43 = vmul.f32 -1.442695, %v299_v39  ;;  %v301_v47 = vadd.f32 %v293_v46, %v55_v44  ;;  %v295_v48 = vpop.f32.mrb[2].mxu1  ;;  %v1196_v39 = vld [vmem:[%s2118_s0 + $0x28] sm:$0xff] }
  0xfa   :  { %1300 = vpow2.f32 %v1192_v41  ;;  %v296_v49 = vpop.f32.mrb[3].mxu1 }
  0xfb   :  { %1302 = vpow2.f32 %v1193_v43  ;;  %v1194_v51 = vmul.f32 -1.442695, %v301_v47 }
  0xfd   :  { %1304 = vpow2.f32 %v1194_v51 }
  0xfe   :  { %1306 = vtanh.f32 %v300_v52  ;;  %v1198_v52 = vld [vmem:[%s2118_s0 + $0x38] sm:$0xff] }
 0x104   :  { %v1301_v53 = vpop.eup %1300 }
 0x105   :  { %v1303_v54 = vpop.eup %1302  ;;  %v305_v55 = vadd.f32 1.0, %v1301_v53 }
 0x106   :  { %v311_v56 = vadd.f32 1.0, %v1303_v54  ;;  %v1197_v54 = vld [vmem:[%s2118_s0 + $0x30] sm:$0xff] }
 0x107   :  { %1308 = vrcp.f32 %v305_v55  ;;  %v1305_v57 = vpop.eup %1304 }
 0x108   :  { %1310 = vrcp.f32 %v311_v56  ;;  %v1307_v58 = vpop.eup %1306  ;;  %v318_v60 = vadd.f32 1.0, %v1305_v57 }
 0x10a   :  { %1312 = vrcp.f32 %v318_v60 }
 0x111   :  { %v1309_v59 = vpop.eup %1308 }
 0x112   :  { %v1311_v61 = vpop.eup %1310  ;;  %v322_v62 = vmul.f32 %v1309_v59, %v1307_v58 }
 0x113   :  { %v321_v63 = vmul.f32 0.0, %v1311_v61 }
 0x114   :  { %v1313_v34 = vpop.eup %1312 }
 0x115   :  { %v1719_v32 = vadd.f32 %v322_v62, %v321_v63 }
 0x117   :  { %1314 = vtanh.f32 %v1719_v32 }
 0x121   :  { %v1315_v35 = vpop.eup %1314 }
 0x122   :  { %v325_v36 = vmul.f32 %v1315_v35, %v1313_v34 }
 0x124   :  { %v326_v37 = vpack.c.bf16 %v325_v36, %v325_v36 }
 0x126   :  { %327 = vst [vmem:[%s2119_s2] sm:$0xf] %v326_v37  ;;  %366 = vmatmul.mubr.bf16.vlgmr.msra.gmra.mrb[4].mxu0 %v326_v37  ;;  %407 = vmatmul.mubr.bf16.vlgmr.msra.gmra.mrb[4].mxu1 %v326_v37 }
 0x127   :  { %452 = vmatpush1.bf16.msra.mxu0 %v1487_v2  ;;  %493 = vmatpush1.bf16.msra.mxu1 %v1515_v7 }
 0x128   :  { %453 = vmatprep.subr.bf16.mxu0 %v1493_v3  ;;  %494 = vmatprep.subr.bf16.mxu1 %v1534_v10 }
 0x129   :  { %483 = vmatprep.mubr.bf16.mxu0 %v1460_v1  ;;  %524 = vmatprep.mubr.bf16.mxu1 %v1460_v1 }
 0x12b   :  { %454 = vmatpush1.bf16.msra.mxu0 %v1499_v4  ;;  %495 = vmatpush1.bf16.msra.mxu1 %v1539_v11 }
 0x12c   :  { %455 = vmatprep.subr.bf16.mxu0 %v1505_v5  ;;  %496 = vmatprep.subr.bf16.mxu1 %v1556_v14 }
 0x12f   :  { %456 = vmatpush1.bf16.msra.mxu0 %v1521_v8  ;;  %497 = vmatpush1.bf16.msra.mxu1 %v1563_v15 }
 0x130   :  { %457 = vmatprep.subr.bf16.mxu0 %v1528_v9  ;;  %498 = vmatprep.subr.bf16.mxu1 %v1569_v16 }
 0x133   :  { %458 = vmatpush1.bf16.msra.mxu0 %v1546_v12  ;;  %499 = vmatpush1.bf16.msra.mxu1 %v1587_v19 }
 0x134   :  { %459 = vmatprep.subr.bf16.mxu0 %v1551_v13  ;;  %500 = vmatprep.subr.bf16.mxu1 %v1593_v20 }
 0x137   :  { %460 = vmatpush1.bf16.msra.mxu0 %v1575_v17  ;;  %501 = vmatpush1.bf16.msra.mxu1 %v1611_v23 }
 0x138   :  { %461 = vmatprep.subr.bf16.mxu0 %v1581_v18  ;;  %502 = vmatprep.subr.bf16.mxu1 %v1617_v24 }
 0x13b   :  { %462 = vmatpush1.bf16.msra.mxu0 %v1598_v21  ;;  %503 = vmatpush1.bf16.msra.mxu1 %v1635_v27 }
 0x13c   :  { %463 = vmatprep.subr.bf16.mxu0 %v1604_v22  ;;  %504 = vmatprep.subr.bf16.mxu1 %v1641_v28 }
 0x13f   :  { %464 = vmatpush1.bf16.msra.mxu0 %v1623_v25  ;;  %505 = vmatpush1.bf16.msra.mxu1 %v1654_v30 }
 0x140   :  { %465 = vmatprep.subr.bf16.mxu0 %v1629_v26  ;;  %506 = vmatprep.subr.bf16.mxu1 %v1660_v31 }
 0x143   :  { %466 = vmatpush1.bf16.msra.mxu0 %v1647_v29  ;;  %507 = vmatpush1.bf16.msra.mxu1 %v1667_v33 }
 0x144   :  { %569 = vmatprep.subr.bf16.mxu0 %v1479_v0  ;;  %610 = vmatprep.subr.bf16.mxu1 %v1510_v6 }
 0x1f9   :  { %v367_v40 = vpop.f32.mrb[4].mxu0  ;;  %v408_v41 = vpop.f32.mrb[4].mxu1 }
 0x1fa   :  { %v415_v42 = vadd.f32 %v1195_v38, %v367_v40  ;;  %v369_v43 = vpop.f32.mrb[5].mxu0  ;;  %v410_v44 = vpop.f32.mrb[5].mxu1  ;;  %v417_v56 = vadd.f32 %v1197_v54, %v408_v41 }
 0x1fb   :  { %v416_v45 = vadd.f32 %v1196_v39, %v369_v43  ;;  %v371_v46 = vpop.f32.mrb[6].mxu0  ;;  %v412_v47 = vpop.f32.mrb[6].mxu1  ;;  %v418_v53 = vadd.f32 %v1198_v52, %v410_v44  ;;  %v1204_v43 = vld [vmem:[%s2118_s0 + $0x48] sm:$0xff] }
 0x1fc   :  { %v1199_v48 = vmul.f32 -1.442695, %v415_v42  ;;  %v372_v49 = vpop.f32.mrb[7].mxu0  ;;  %v413_v50 = vpop.f32.mrb[7].mxu1 }
 0x1fd   :  { %v1200_v51 = vmul.f32 -1.442695, %v416_v45  ;;  %v1201_v55 = vmul.f32 -1.442695, %v418_v53 }
 0x1fe   :  { %1316 = vpow2.f32 %v1199_v48 }
 0x1ff   :  { %1318 = vpow2.f32 %v1200_v51 }
 0x200   :  { %1320 = vpow2.f32 %v1201_v55 }
 0x201   :  { %1322 = vtanh.f32 %v417_v56  ;;  %v1206_v56 = vld [vmem:[%s2118_s0 + $0x58] sm:$0xff] }
 0x208   :  { %v1317_v57 = vpop.eup %1316 }
 0x209   :  { %v1319_v58 = vpop.eup %1318  ;;  %v422_v59 = vadd.f32 1.0, %v1317_v57 }
 0x20a   :  { %v428_v60 = vadd.f32 1.0, %v1319_v58  ;;  %v1321_v61 = vpop.eup %1320  ;;  %v1205_v58 = vld [vmem:[%s2118_s0 + $0x50] sm:$0xff] }
 0x20b   :  { %1324 = vrcp.f32 %v422_v59  ;;  %v1323_v62 = vpop.eup %1322  ;;  %v435_v36 = vadd.f32 1.0, %v1321_v61 }
 0x20c   :  { %1326 = vrcp.f32 %v428_v60 }
 0x20d   :  { %1328 = vrcp.f32 %v435_v36 }
 0x215   :  { %v1325_v63 = vpop.eup %1324 }
 0x216   :  { %v1327_v34 = vpop.eup %1326  ;;  %v439_v35 = vmul.f32 %v1325_v63, %v1323_v62 }
 0x217   :  { %v438_v37 = vmul.f32 %v1327_v34, %v1719_v32  ;;  %v1329_v39 = vpop.eup %1328  ;;  %v1203_v32 = vld [vmem:[%s2118_s0 + $0x40] sm:$0xff] }
 0x219   :  { %v1772_v38 = vadd.f32 %v439_v35, %v438_v37 }
 0x21b   :  { %1330 = vtanh.f32 %v1772_v38 }
 0x225   :  { %v1331_v40 = vpop.eup %1330 }
 0x226   :  { %v442_v41 = vmul.f32 %v1331_v40, %v1329_v39 }
 0x228   :  { %v443_v42 = vpack.c.bf16 %v442_v41, %v442_v41 }
 0x22a   :  { %1202 = vst [vmem:[%s2119_s2 + $0x4] sm:$0xf] %v443_v42  ;;  %484 = vmatmul.mubr.bf16.vlgmr.msra.gmra.mrb[8].mxu0 %v443_v42  ;;  %525 = vmatmul.mubr.bf16.vlgmr.msra.gmra.mrb[8].mxu1 %v443_v42 }
 0x22b   :  { %570 = vmatpush1.bf16.msra.mxu0 %v1487_v2  ;;  %611 = vmatpush1.bf16.msra.mxu1 %v1515_v7 }
 0x22c   :  { %571 = vmatprep.subr.bf16.mxu0 %v1493_v3  ;;  %612 = vmatprep.subr.bf16.mxu1 %v1534_v10 }
 0x22d   :  { %601 = vmatprep.mubr.bf16.mxu0 %v1460_v1  ;;  %642 = vmatprep.mubr.bf16.mxu1 %v1460_v1 }
 0x22f   :  { %572 = vmatpush1.bf16.msra.mxu0 %v1499_v4  ;;  %613 = vmatpush1.bf16.msra.mxu1 %v1539_v11 }
 0x230   :  { %573 = vmatprep.subr.bf16.mxu0 %v1505_v5  ;;  %614 = vmatprep.subr.bf16.mxu1 %v1556_v14 }
 0x233   :  { %574 = vmatpush1.bf16.msra.mxu0 %v1521_v8  ;;  %615 = vmatpush1.bf16.msra.mxu1 %v1563_v15 }
 0x234   :  { %575 = vmatprep.subr.bf16.mxu0 %v1528_v9  ;;  %616 = vmatprep.subr.bf16.mxu1 %v1569_v16 }
 0x237   :  { %576 = vmatpush1.bf16.msra.mxu0 %v1546_v12  ;;  %617 = vmatpush1.bf16.msra.mxu1 %v1587_v19 }
 0x238   :  { %577 = vmatprep.subr.bf16.mxu0 %v1551_v13  ;;  %618 = vmatprep.subr.bf16.mxu1 %v1593_v20 }
 0x23b   :  { %578 = vmatpush1.bf16.msra.mxu0 %v1575_v17  ;;  %619 = vmatpush1.bf16.msra.mxu1 %v1611_v23 }
 0x23c   :  { %579 = vmatprep.subr.bf16.mxu0 %v1581_v18  ;;  %620 = vmatprep.subr.bf16.mxu1 %v1617_v24 }
 0x23f   :  { %580 = vmatpush1.bf16.msra.mxu0 %v1598_v21  ;;  %621 = vmatpush1.bf16.msra.mxu1 %v1635_v27 }
 0x240   :  { %581 = vmatprep.subr.bf16.mxu0 %v1604_v22  ;;  %622 = vmatprep.subr.bf16.mxu1 %v1641_v28 }
 0x243   :  { %582 = vmatpush1.bf16.msra.mxu0 %v1623_v25  ;;  %623 = vmatpush1.bf16.msra.mxu1 %v1654_v30 }
 0x244   :  { %583 = vmatprep.subr.bf16.mxu0 %v1629_v26  ;;  %624 = vmatprep.subr.bf16.mxu1 %v1660_v31 }
 0x247   :  { %584 = vmatpush1.bf16.msra.mxu0 %v1647_v29  ;;  %625 = vmatpush1.bf16.msra.mxu1 %v1667_v33 }
 0x248   :  { %687 = vmatprep.subr.bf16.mxu0 %v1479_v0  ;;  %728 = vmatprep.subr.bf16.mxu1 %v1510_v6 }
 0x2fd   :  { %v485_v44 = vpop.f32.mrb[8].mxu0  ;;  %v526_v45 = vpop.f32.mrb[8].mxu1 }
 0x2fe   :  { %v533_v46 = vadd.f32 %v1203_v32, %v485_v44  ;;  %v487_v47 = vpop.f32.mrb[9].mxu0  ;;  %v528_v48 = vpop.f32.mrb[9].mxu1  ;;  %v535_v60 = vadd.f32 %v1205_v58, %v526_v45 }
 0x2ff   :  { %v534_v49 = vadd.f32 %v1204_v43, %v487_v47  ;;  %v489_v50 = vpop.f32.mrb[10].mxu0  ;;  %v530_v51 = vpop.f32.mrb[10].mxu1  ;;  %v536_v57 = vadd.f32 %v1206_v56, %v528_v48  ;;  %v1212_v47 = vld [vmem:[%s2118_s0 + $0x68] sm:$0xff] }
 0x300   :  { %v1207_v52 = vmul.f32 -1.442695, %v533_v46  ;;  %v490_v53 = vpop.f32.mrb[11].mxu0  ;;  %v531_v54 = vpop.f32.mrb[11].mxu1 }
 0x301   :  { %v1208_v55 = vmul.f32 -1.442695, %v534_v49  ;;  %v1209_v59 = vmul.f32 -1.442695, %v536_v57 }
 0x302   :  { %1332 = vpow2.f32 %v1207_v52 }
 0x303   :  { %1334 = vpow2.f32 %v1208_v55 }
 0x304   :  { %1336 = vpow2.f32 %v1209_v59 }
 0x305   :  { %1338 = vtanh.f32 %v535_v60  ;;  %v1214_v60 = vld [vmem:[%s2118_s0 + $0x78] sm:$0xff] }
 0x30c   :  { %v1333_v61 = vpop.eup %1332 }
 0x30d   :  { %v1335_v62 = vpop.eup %1334  ;;  %v540_v63 = vadd.f32 1.0, %v1333_v61 }
 0x30e   :  { %v546_v34 = vadd.f32 1.0, %v1335_v62  ;;  %v1337_v35 = vpop.eup %1336  ;;  %v1213_v62 = vld [vmem:[%s2118_s0 + $0x70] sm:$0xff] }
 0x30f   :  { %1340 = vrcp.f32 %v540_v63  ;;  %v1339_v36 = vpop.eup %1338  ;;  %v553_v41 = vadd.f32 1.0, %v1337_v35 }
 0x310   :  { %1342 = vrcp.f32 %v546_v34 }
 0x311   :  { %1344 = vrcp.f32 %v553_v41 }
 0x319   :  { %v1341_v37 = vpop.eup %1340 }
 0x31a   :  { %v1343_v39 = vpop.eup %1342  ;;  %v557_v40 = vmul.f32 %v1341_v37, %v1339_v36 }
 0x31b   :  { %v556_v42 = vmul.f32 %v1343_v39, %v1772_v38  ;;  %v1345_v43 = vpop.eup %1344  ;;  %v1211_v38 = vld [vmem:[%s2118_s0 + $0x60] sm:$0xff] }
 0x31d   :  { %v1825_v32 = vadd.f32 %v557_v40, %v556_v42 }
 0x31f   :  { %1346 = vtanh.f32 %v1825_v32 }
 0x329   :  { %v1347_v44 = vpop.eup %1346 }
 0x32a   :  { %v560_v45 = vmul.f32 %v1347_v44, %v1345_v43 }
 0x32c   :  { %v561_v46 = vpack.c.bf16 %v560_v45, %v560_v45 }
 0x32e   :  { %1210 = vst [vmem:[%s2119_s2 + $0x8] sm:$0xf] %v561_v46  ;;  %602 = vmatmul.mubr.bf16.vlgmr.msra.gmra.mrb[12].mxu0 %v561_v46  ;;  %643 = vmatmul.mubr.bf16.vlgmr.msra.gmra.mrb[12].mxu1 %v561_v46 }
 0x32f   :  { %688 = vmatpush1.bf16.msra.mxu0 %v1487_v2  ;;  %729 = vmatpush1.bf16.msra.mxu1 %v1515_v7 }
 0x330   :  { %689 = vmatprep.subr.bf16.mxu0 %v1493_v3  ;;  %730 = vmatprep.subr.bf16.mxu1 %v1534_v10 }
 0x331   :  { %719 = vmatprep.mubr.bf16.mxu0 %v1460_v1  ;;  %760 = vmatprep.mubr.bf16.mxu1 %v1460_v1 }
 0x333   :  { %690 = vmatpush1.bf16.msra.mxu0 %v1499_v4  ;;  %731 = vmatpush1.bf16.msra.mxu1 %v1539_v11 }
 0x334   :  { %691 = vmatprep.subr.bf16.mxu0 %v1505_v5  ;;  %732 = vmatprep.subr.bf16.mxu1 %v1556_v14 }
 0x337   :  { %692 = vmatpush1.bf16.msra.mxu0 %v1521_v8  ;;  %733 = vmatpush1.bf16.msra.mxu1 %v1563_v15 }
 0x338   :  { %693 = vmatprep.subr.bf16.mxu0 %v1528_v9  ;;  %734 = vmatprep.subr.bf16.mxu1 %v1569_v16 }
 0x33b   :  { %694 = vmatpush1.bf16.msra.mxu0 %v1546_v12  ;;  %735 = vmatpush1.bf16.msra.mxu1 %v1587_v19 }
 0x33c   :  { %695 = vmatprep.subr.bf16.mxu0 %v1551_v13  ;;  %736 = vmatprep.subr.bf16.mxu1 %v1593_v20 }
 0x33f   :  { %696 = vmatpush1.bf16.msra.mxu0 %v1575_v17  ;;  %737 = vmatpush1.bf16.msra.mxu1 %v1611_v23 }
 0x340   :  { %697 = vmatprep.subr.bf16.mxu0 %v1581_v18  ;;  %738 = vmatprep.subr.bf16.mxu1 %v1617_v24 }
 0x343   :  { %698 = vmatpush1.bf16.msra.mxu0 %v1598_v21  ;;  %739 = vmatpush1.bf16.msra.mxu1 %v1635_v27 }
 0x344   :  { %699 = vmatprep.subr.bf16.mxu0 %v1604_v22  ;;  %740 = vmatprep.subr.bf16.mxu1 %v1641_v28 }
 0x347   :  { %700 = vmatpush1.bf16.msra.mxu0 %v1623_v25  ;;  %741 = vmatpush1.bf16.msra.mxu1 %v1654_v30 }
 0x348   :  { %701 = vmatprep.subr.bf16.mxu0 %v1629_v26  ;;  %742 = vmatprep.subr.bf16.mxu1 %v1660_v31 }
 0x34b   :  { %702 = vmatpush1.bf16.msra.mxu0 %v1647_v29  ;;  %743 = vmatpush1.bf16.msra.mxu1 %v1667_v33 }
 0x34c   :  { %805 = vmatprep.subr.bf16.mxu0 %v1479_v0  ;;  %846 = vmatprep.subr.bf16.mxu1 %v1510_v6 }
 0x401   :  { %v603_v48 = vpop.f32.mrb[12].mxu0  ;;  %v644_v49 = vpop.f32.mrb[12].mxu1 }
 0x402   :  { %v651_v50 = vadd.f32 %v1211_v38, %v603_v48  ;;  %v605_v51 = vpop.f32.mrb[13].mxu0  ;;  %v646_v52 = vpop.f32.mrb[13].mxu1  ;;  %v653_v34 = vadd.f32 %v1213_v62, %v644_v49  ;;  %v1222_v62 = vld [vmem:[%s2118_s0 + $0x98] sm:$0xff] }
 0x403   :  { %v652_v53 = vadd.f32 %v1212_v47, %v605_v51  ;;  %v607_v54 = vpop.f32.mrb[14].mxu0  ;;  %v648_v55 = vpop.f32.mrb[14].mxu1  ;;  %v654_v61 = vadd.f32 %v1214_v60, %v646_v52  ;;  %v1220_v51 = vld [vmem:[%s2118_s0 + $0x88] sm:$0xff] }
 0x404   :  { %v1215_v56 = vmul.f32 -1.442695, %v651_v50  ;;  %v608_v57 = vpop.f32.mrb[15].mxu0  ;;  %v649_v58 = vpop.f32.mrb[15].mxu1 }
 0x405   :  { %v1216_v59 = vmul.f32 -1.442695, %v652_v53  ;;  %v1217_v63 = vmul.f32 -1.442695, %v654_v61 }
 0x406   :  { %1348 = vpow2.f32 %v1215_v56 }
 0x407   :  { %1350 = vpow2.f32 %v1216_v59 }
 0x408   :  { %1352 = vpow2.f32 %v1217_v63 }
 0x409   :  { %1354 = vtanh.f32 %v653_v34  ;;  %v1221_v34 = vld [vmem:[%s2118_s0 + $0x90] sm:$0xff] }
 0x410   :  { %v1349_v35 = vpop.eup %1348 }
 0x411   :  { %v1351_v36 = vpop.eup %1350  ;;  %v658_v37 = vadd.f32 1.0, %v1349_v35 }
 0x412   :  { %v664_v39 = vadd.f32 1.0, %v1351_v36  ;;  %v1353_v40 = vpop.eup %1352 }
 0x413   :  { %1356 = vrcp.f32 %v658_v37  ;;  %v1355_v41 = vpop.eup %1354  ;;  %v671_v45 = vadd.f32 1.0, %v1353_v40 }
 0x414   :  { %1358 = vrcp.f32 %v664_v39 }
 0x415   :  { %1360 = vrcp.f32 %v671_v45 }
 0x41d   :  { %v1357_v42 = vpop.eup %1356 }
 0x41e   :  { %v1359_v43 = vpop.eup %1358  ;;  %v675_v44 = vmul.f32 %v1357_v42, %v1355_v41 }
 0x41f   :  { %v674_v46 = vmul.f32 %v1359_v43, %v1825_v32  ;;  %v1361_v47 = vpop.eup %1360  ;;  %v1219_v32 = vld [vmem:[%s2118_s0 + $0x80] sm:$0xff] }
 0x421   :  { %v1878_v38 = vadd.f32 %v675_v44, %v674_v46 }
 0x423   :  { %1362 = vtanh.f32 %v1878_v38 }
 0x42d   :  { %v1363_v48 = vpop.eup %1362 }
 0x42e   :  { %v678_v49 = vmul.f32 %v1363_v48, %v1361_v47 }
 0x430   :  { %v679_v50 = vpack.c.bf16 %v678_v49, %v678_v49 }
 0x432   :  { %1218 = vst [vmem:[%s2119_s2 + $0xc] sm:$0xf] %v679_v50  ;;  %720 = vmatmul.mubr.bf16.vlgmr.msra.gmra.mrb[16].mxu0 %v679_v50  ;;  %761 = vmatmul.mubr.bf16.vlgmr.msra.gmra.mrb[16].mxu1 %v679_v50 }
 0x433   :  { %806 = vmatpush1.bf16.msra.mxu0 %v1487_v2  ;;  %847 = vmatpush1.bf16.msra.mxu1 %v1515_v7 }
 0x434   :  { %807 = vmatprep.subr.bf16.mxu0 %v1493_v3  ;;  %848 = vmatprep.subr.bf16.mxu1 %v1534_v10 }
 0x435   :  { %837 = vmatprep.mubr.bf16.mxu0 %v1460_v1  ;;  %878 = vmatprep.mubr.bf16.mxu1 %v1460_v1 }
 0x437   :  { %808 = vmatpush1.bf16.msra.mxu0 %v1499_v4  ;;  %849 = vmatpush1.bf16.msra.mxu1 %v1539_v11 }
 0x438   :  { %809 = vmatprep.subr.bf16.mxu0 %v1505_v5  ;;  %850 = vmatprep.subr.bf16.mxu1 %v1556_v14 }
 0x43b   :  { %810 = vmatpush1.bf16.msra.mxu0 %v1521_v8  ;;  %851 = vmatpush1.bf16.msra.mxu1 %v1563_v15 }
 0x43c   :  { %811 = vmatprep.subr.bf16.mxu0 %v1528_v9  ;;  %852 = vmatprep.subr.bf16.mxu1 %v1569_v16 }
 0x43f   :  { %812 = vmatpush1.bf16.msra.mxu0 %v1546_v12  ;;  %853 = vmatpush1.bf16.msra.mxu1 %v1587_v19 }
 0x440   :  { %813 = vmatprep.subr.bf16.mxu0 %v1551_v13  ;;  %854 = vmatprep.subr.bf16.mxu1 %v1593_v20 }
 0x443   :  { %814 = vmatpush1.bf16.msra.mxu0 %v1575_v17  ;;  %855 = vmatpush1.bf16.msra.mxu1 %v1611_v23 }
 0x444   :  { %815 = vmatprep.subr.bf16.mxu0 %v1581_v18  ;;  %856 = vmatprep.subr.bf16.mxu1 %v1617_v24 }
 0x447   :  { %816 = vmatpush1.bf16.msra.mxu0 %v1598_v21  ;;  %857 = vmatpush1.bf16.msra.mxu1 %v1635_v27 }
 0x448   :  { %817 = vmatprep.subr.bf16.mxu0 %v1604_v22  ;;  %858 = vmatprep.subr.bf16.mxu1 %v1641_v28 }
 0x44b   :  { %818 = vmatpush1.bf16.msra.mxu0 %v1623_v25  ;;  %859 = vmatpush1.bf16.msra.mxu1 %v1654_v30 }
 0x44c   :  { %819 = vmatprep.subr.bf16.mxu0 %v1629_v26  ;;  %860 = vmatprep.subr.bf16.mxu1 %v1660_v31 }
 0x44f   :  { %820 = vmatpush1.bf16.msra.mxu0 %v1647_v29  ;;  %861 = vmatpush1.bf16.msra.mxu1 %v1667_v33 }
 0x450   :  { %923 = vmatprep.subr.bf16.mxu0 %v1479_v0  ;;  %964 = vmatprep.subr.bf16.mxu1 %v1510_v6 }
 0x505   :  { %v721_v52 = vpop.f32.mrb[16].mxu0  ;;  %v762_v53 = vpop.f32.mrb[16].mxu1 }
 0x506   :  { %v769_v54 = vadd.f32 %v1219_v32, %v721_v52  ;;  %v723_v55 = vpop.f32.mrb[17].mxu0  ;;  %v764_v56 = vpop.f32.mrb[17].mxu1  ;;  %v771_v36 = vadd.f32 %v1221_v34, %v762_v53  ;;  %v1437_v34 = vld [vmem:[%s2117_s1 + $0x4c] ss:$16 sps:$4 sm:$0xff]  }
 0x507   :  { %v770_v57 = vadd.f32 %v1220_v51, %v723_v55  ;;  %v725_v58 = vpop.f32.mrb[18].mxu0  ;;  %v766_v59 = vpop.f32.mrb[18].mxu1  ;;  %v772_v63 = vadd.f32 %v1222_v62, %v764_v56  ;;  %v1435_v62 = vld [vmem:[%s2117_s1 + $0x28] ss:$16 sps:$4 sm:$0xff]  }
 0x508   :  { %v1223_v60 = vmul.f32 -1.442695, %v769_v54  ;;  %v726_v0 = vpop.f32.mrb[19].mxu0  ;;  %v767_v61 = vpop.f32.mrb[19].mxu1  ;;  %v1430_v59 = vld [vmem:[%s2117_s1] ss:$16 sps:$4 sm:$0xff]  }
 0x509   :  { %v1224_v6 = vmul.f32 -1.442695, %v770_v57  ;;  %v1225_v35 = vmul.f32 -1.442695, %v772_v63  ;;  %v1432_v0 = vld [vmem:[%s2117_s1 + $0x24] ss:$16 sps:$4 sm:$0xff]  }
 0x50a   :  { %1364 = vpow2.f32 %v1223_v60  ;;  %v1431_v60 = vld [vmem:[%s2117_s1 + $0x8] ss:$16 sps:$4 sm:$0xff]   ;;  %v1433_v61 = vld [vmem:[%s2117_s1 + $0x2c] ss:$16 sps:$4 sm:$0xff]   ;;  %v1436_v63 = vld [vmem:[%s2117_s1 + $0x44] ss:$16 sps:$4 sm:$0xff]  }
 0x50b   :  { %1366 = vpow2.f32 %v1224_v6  ;;  %v1434_v6 = vld [vmem:[%s2117_s1 + $0x20] ss:$16 sps:$4 sm:$0xff]  }
 0x50c   :  { %1368 = vpow2.f32 %v1225_v35  ;;  %v1439_v35 = vld [vmem:[%s2117_s1 + $0x48] ss:$16 sps:$4 sm:$0xff]  }
 0x50d   :  { %1370 = vtanh.f32 %v771_v36  ;;  %v1440_v36 = vld [vmem:[%s2117_s1 + $0x64] ss:$16 sps:$4 sm:$0xff]  }
 0x514   :  { %v1365_v37 = vpop.eup %1364 }
 0x515   :  { %v1367_v39 = vpop.eup %1366  ;;  %v776_v40 = vadd.f32 1.0, %v1365_v37  ;;  %v1441_v37 = vld [vmem:[%s2117_s1 + $0x6c] ss:$16 sps:$4 sm:$0xff]  }
 0x516   :  { %v782_v41 = vadd.f32 1.0, %v1367_v39  ;;  %v1369_v42 = vpop.eup %1368  ;;  %v1442_v39 = vld [vmem:[%s2117_s1 + $0x60] ss:$16 sps:$4 sm:$0xff]  }
 0x517   :  { %1372 = vrcp.f32 %v776_v40  ;;  %v1371_v43 = vpop.eup %1370  ;;  %v789_v47 = vadd.f32 1.0, %v1369_v42  ;;  %v1443_v40 = vld [vmem:[%s2117_s1 + $0x68] ss:$16 sps:$4 sm:$0xff]   ;;  %v1445_v42 = vld [vmem:[%s2117_s1 + $0x8c] ss:$16 sps:$4 sm:$0xff]  }
 0x518   :  { %1374 = vrcp.f32 %v782_v41  ;;  %v1444_v41 = vld [vmem:[%s2117_s1 + $0x84] ss:$16 sps:$4 sm:$0xff]  }
 0x519   :  { %1376 = vrcp.f32 %v789_v47  ;;  %v1450_v47 = vld [vmem:[%s2117_s1 + $0xa0] ss:$16 sps:$4 sm:$0xff]  }
 0x521   :  { %v1373_v44 = vpop.eup %1372 }
 0x522   :  { %v1375_v45 = vpop.eup %1374  ;;  %v793_v46 = vmul.f32 %v1373_v44, %v1371_v43  ;;  %v1446_v43 = vld [vmem:[%s2117_s1 + $0x80] ss:$16 sps:$4 sm:$0xff]   ;;  %v1447_v44 = vld [vmem:[%s2117_s1 + $0x88] ss:$16 sps:$4 sm:$0xff]  }
 0x523   :  { %v792_v48 = vmul.f32 %v1375_v45, %v1878_v38  ;;  %v1377_v50 = vpop.eup %1376  ;;  %v1448_v45 = vld [vmem:[%s2117_s1 + $0xa4] ss:$16 sps:$4 sm:$0xff]  }
 0x525   :  { %v1931_v49 = vadd.f32 %v793_v46, %v792_v48  ;;  %v1449_v46 = vld [vmem:[%s2117_s1 + $0xac] ss:$16 sps:$4 sm:$0xff]   ;;  %v1451_v48 = vld [vmem:[%s2117_s1 + $0xa8] ss:$16 sps:$4 sm:$0xff]  }
 0x527   :  { %1378 = vtanh.f32 %v1931_v49 }
 0x531   :  { %v1379_v32 = vpop.eup %1378 }
 0x532   :  { %v796_v51 = vmul.f32 %v1379_v32, %v1377_v50  ;;  %v1453_v50 = vld [vmem:[%s2117_s1 + $0xcc] ss:$16 sps:$4 sm:$0xff]   ;;  %v1454_v32 = vld [vmem:[%s2117_s1 + $0xc0] ss:$16 sps:$4 sm:$0xff]  }
 0x534   :  { %v797_v52 = vpack.c.bf16 %v796_v51, %v796_v51  ;;  %v1455_v51 = vld [vmem:[%s2117_s1 + $0xc8] ss:$16 sps:$4 sm:$0xff]  }
 0x536   :  { %1226 = vst [vmem:[%s2119_s2 + $0x10] sm:$0xf] %v797_v52  ;;  %838 = vmatmul.mubr.bf16.vlgmr.msra.gmra.mrb[20].mxu0 %v797_v52  ;;  %879 = vmatmul.mubr.bf16.vlgmr.msra.gmra.mrb[20].mxu1 %v797_v52  ;;  %v1456_v52 = vld [vmem:[%s2117_s1 + $0xe4] ss:$16 sps:$4 sm:$0xff]  }
 0x537   :  { %924 = vmatpush1.bf16.msra.mxu0 %v1487_v2  ;;  %965 = vmatpush1.bf16.msra.mxu1 %v1515_v7  ;;  %v1428_v2 = vld [vmem:[%s2117_s1 + $0x4] ss:$16 sps:$4 sm:$0xff]  }
 0x538   :  { %925 = vmatprep.subr.bf16.mxu0 %v1493_v3  ;;  %966 = vmatprep.subr.bf16.mxu1 %v1534_v10  ;;  %v1429_v3 = vld [vmem:[%s2117_s1 + $0xc] ss:$16 sps:$4 sm:$0xff]  }
 0x539   :  { %955 = vmatprep.mubr.bf16.mxu0 %v1460_v1  ;;  %996 = vmatprep.mubr.bf16.mxu1 %v1460_v1 }
 0x53b   :  { %926 = vmatpush1.bf16.msra.mxu0 %v1499_v4  ;;  %967 = vmatpush1.bf16.msra.mxu1 %v1539_v11  ;;  %v1227_v4 = vld [vmem:[%s2118_s0 + $0xa0] sm:$0xff] }
 0x53c   :  { %927 = vmatprep.subr.bf16.mxu0 %v1505_v5  ;;  %968 = vmatprep.subr.bf16.mxu1 %v1556_v14  ;;  %v1228_v5 = vld [vmem:[%s2118_s0 + $0xa8] sm:$0xff] }
 0x53f   :  { %928 = vmatpush1.bf16.msra.mxu0 %v1521_v8  ;;  %969 = vmatpush1.bf16.msra.mxu1 %v1563_v15 }
 0x540   :  { %929 = vmatprep.subr.bf16.mxu0 %v1528_v9  ;;  %970 = vmatprep.subr.bf16.mxu1 %v1569_v16 }
 0x543   :  { %930 = vmatpush1.bf16.msra.mxu0 %v1546_v12  ;;  %971 = vmatpush1.bf16.msra.mxu1 %v1587_v19  ;;  %v1230_v19 = vld [vmem:[%s2118_s0 + $0xb8] sm:$0xff] }
 0x544   :  { %931 = vmatprep.subr.bf16.mxu0 %v1551_v13  ;;  %972 = vmatprep.subr.bf16.mxu1 %v1593_v20 }
 0x547   :  { %932 = vmatpush1.bf16.msra.mxu0 %v1575_v17  ;;  %973 = vmatpush1.bf16.msra.mxu1 %v1611_v23 }
 0x548   :  { %933 = vmatprep.subr.bf16.mxu0 %v1581_v18  ;;  %974 = vmatprep.subr.bf16.mxu1 %v1617_v24 }
 0x54b   :  { %934 = vmatpush1.bf16.msra.mxu0 %v1598_v21  ;;  %975 = vmatpush1.bf16.msra.mxu1 %v1635_v27  ;;  %v1229_v21 = vld [vmem:[%s2118_s0 + $0xb0] sm:$0xff] }
 0x54c   :  { %935 = vmatprep.subr.bf16.mxu0 %v1604_v22  ;;  %976 = vmatprep.subr.bf16.mxu1 %v1641_v28 }
 0x54f   :  { %936 = vmatpush1.bf16.msra.mxu0 %v1623_v25  ;;  %977 = vmatpush1.bf16.msra.mxu1 %v1654_v30 }
 0x550   :  { %937 = vmatprep.subr.bf16.mxu0 %v1629_v26  ;;  %978 = vmatprep.subr.bf16.mxu1 %v1660_v31 }
 0x553   :  { %938 = vmatpush1.bf16.msra.mxu0 %v1647_v29  ;;  %979 = vmatpush1.bf16.msra.mxu1 %v1667_v33 }
 0x554   :  { %1041 = vmatprep.subr.bf16.mxu0 %v1428_v2  ;;  %1082 = vmatprep.subr.bf16.mxu1 %v1429_v3  ;;  %v1457_v2 = vld [vmem:[%s2117_s1 + $0xec] ss:$16 sps:$4 sm:$0xff]   ;;  %v1458_v3 = vld [vmem:[%s2117_s1 + $0xe0] ss:$16 sps:$4 sm:$0xff]  }
 0x609   :  { %v839_v7 = vpop.f32.mrb[20].mxu0  ;;  %v880_v8 = vpop.f32.mrb[20].mxu1 }
 0x60a   :  { %v887_v9 = vadd.f32 %v1227_v4, %v839_v7  ;;  %v841_v10 = vpop.f32.mrb[21].mxu0  ;;  %v882_v11 = vpop.f32.mrb[21].mxu1  ;;  %v889_v23 = vadd.f32 %v1229_v21, %v880_v8  ;;  %v1459_v4 = vld [vmem:[%s2117_s1 + $0xe8] ss:$16 sps:$4 sm:$0xff]  }
 0x60b   :  { %v888_v12 = vadd.f32 %v1228_v5, %v841_v10  ;;  %v843_v13 = vpop.f32.mrb[22].mxu0  ;;  %v884_v14 = vpop.f32.mrb[22].mxu1  ;;  %v890_v20 = vadd.f32 %v1230_v19, %v882_v11  ;;  %v1235_v5 = vld [vmem:[%s2118_s0 + $0xc0] sm:$0xff]  ;;  %v1236_v7 = vld [vmem:[%s2118_s0 + $0xc8] sm:$0xff] }
 0x60c   :  { %v1231_v15 = vmul.f32 -1.442695, %v887_v9  ;;  %v844_v16 = vpop.f32.mrb[23].mxu0  ;;  %v885_v17 = vpop.f32.mrb[23].mxu1 }
 0x60d   :  { %v1232_v18 = vmul.f32 -1.442695, %v888_v12  ;;  %v1233_v22 = vmul.f32 -1.442695, %v890_v20  ;;  %v1238_v20 = vld [vmem:[%s2118_s0 + $0xd8] sm:$0xff] }
 0x60e   :  { %1380 = vpow2.f32 %v1231_v15 }
 0x60f   :  { %1382 = vpow2.f32 %v1232_v18 }
 0x610   :  { %1384 = vpow2.f32 %v1233_v22  ;;  %v1237_v22 = vld [vmem:[%s2118_s0 + $0xd0] sm:$0xff] }
 0x611   :  { %1386 = vtanh.f32 %v889_v23 }
 0x618   :  { %v1381_v24 = vpop.eup %1380 }
 0x619   :  { %v1383_v25 = vpop.eup %1382  ;;  %v894_v26 = vadd.f32 1.0, %v1381_v24 }
 0x61a   :  { %v900_v27 = vadd.f32 1.0, %v1383_v25  ;;  %v1385_v28 = vpop.eup %1384 }
 0x61b   :  { %1388 = vrcp.f32 %v894_v26  ;;  %v1387_v29 = vpop.eup %1386  ;;  %v907_v38 = vadd.f32 1.0, %v1385_v28 }
 0x61c   :  { %1390 = vrcp.f32 %v900_v27 }
 0x61d   :  { %1392 = vrcp.f32 %v907_v38 }
 0x625   :  { %v1389_v30 = vpop.eup %1388 }
 0x626   :  { %v1391_v31 = vpop.eup %1390  ;;  %v911_v33 = vmul.f32 %v1389_v30, %v1387_v29 }
 0x627   :  { %v910_v53 = vmul.f32 %v1391_v31, %v1931_v49  ;;  %v1393_v55 = vpop.eup %1392  ;;  %v1452_v49 = vld [vmem:[%s2117_s1 + $0xc4] ss:$16 sps:$4 sm:$0xff]  }
 0x629   :  { %v1988_v54 = vadd.f32 %v911_v33, %v910_v53 }
 0x62b   :  { %1394 = vtanh.f32 %v1988_v54 }
 0x635   :  { %v1395_v56 = vpop.eup %1394 }
 0x636   :  { %v914_v57 = vmul.f32 %v1395_v56, %v1393_v55 }
 0x638   :  { %v915_v58 = vpack.c.bf16 %v914_v57, %v914_v57 }
 0x63a   :  { %1234 = vst [vmem:[%s2119_s2 + $0x14] sm:$0xf] %v915_v58  ;;  %956 = vmatmul.mubr.bf16.vlgmr.msra.gmra.mrb[24].mxu0 %v915_v58  ;;  %997 = vmatmul.mubr.bf16.vlgmr.msra.gmra.mrb[24].mxu1 %v915_v58 }
 0x63b   :  { %1042 = vmatpush1.bf16.msra.mxu0 %v1430_v59  ;;  %1083 = vmatpush1.bf16.msra.mxu1 %v1431_v60 }
 0x63c   :  { %1043 = vmatprep.subr.bf16.mxu0 %v1432_v0  ;;  %1084 = vmatprep.subr.bf16.mxu1 %v1433_v61  ;;  %v1243_v0 = vld [vmem:[%s2118_s0 + $0xe0] sm:$0xff] }
 0x63d   :  { %1073 = vmatprep.mubr.bf16.mxu0 %v1460_v1  ;;  %1114 = vmatprep.mubr.bf16.mxu1 %v1460_v1  ;;  %v1438_v1 = vld [vmem:[%s2117_s1 + $0x40] ss:$16 sps:$4 sm:$0xff]  }
 0x63f   :  { %1044 = vmatpush1.bf16.msra.mxu0 %v1434_v6  ;;  %1085 = vmatpush1.bf16.msra.mxu1 %v1435_v62 }
 0x640   :  { %1045 = vmatprep.subr.bf16.mxu0 %v1436_v63  ;;  %1086 = vmatprep.subr.bf16.mxu1 %v1437_v34 }
 0x643   :  { %1046 = vmatpush1.bf16.msra.mxu0 %v1438_v1  ;;  %1087 = vmatpush1.bf16.msra.mxu1 %v1439_v35 }
 0x644   :  { %1047 = vmatprep.subr.bf16.mxu0 %v1440_v36  ;;  %1088 = vmatprep.subr.bf16.mxu1 %v1441_v37 }
 0x647   :  { %1048 = vmatpush1.bf16.msra.mxu0 %v1442_v39  ;;  %1089 = vmatpush1.bf16.msra.mxu1 %v1443_v40 }
 0x648   :  { %1049 = vmatprep.subr.bf16.mxu0 %v1444_v41  ;;  %1090 = vmatprep.subr.bf16.mxu1 %v1445_v42  ;;  %v1246_v42 = vld [vmem:[%s2118_s0 + $0xf8] sm:$0xff] }
 0x64b   :  { %1050 = vmatpush1.bf16.msra.mxu0 %v1446_v43  ;;  %1091 = vmatpush1.bf16.msra.mxu1 %v1447_v44  ;;  %v1245_v44 = vld [vmem:[%s2118_s0 + $0xf0] sm:$0xff] }
 0x64c   :  { %1051 = vmatprep.subr.bf16.mxu0 %v1448_v45  ;;  %1092 = vmatprep.subr.bf16.mxu1 %v1449_v46 }
 0x64f   :  { %1052 = vmatpush1.bf16.msra.mxu0 %v1450_v47  ;;  %1093 = vmatpush1.bf16.msra.mxu1 %v1451_v48 }
 0x650   :  { %1053 = vmatprep.subr.bf16.mxu0 %v1452_v49  ;;  %1094 = vmatprep.subr.bf16.mxu1 %v1453_v50 }
 0x653   :  { %1054 = vmatpush1.bf16.msra.mxu0 %v1454_v32  ;;  %1095 = vmatpush1.bf16.msra.mxu1 %v1455_v51 }
 0x654   :  { %1055 = vmatprep.subr.bf16.mxu0 %v1456_v52  ;;  %1096 = vmatprep.subr.bf16.mxu1 %v1457_v2 }
 0x657   :  { %1056 = vmatpush1.bf16.msra.mxu0 %v1458_v3  ;;  %1097 = vmatpush1.bf16.msra.mxu1 %v1459_v4 }
 0x70d   :  { %v957_v8 = vpop.f32.mrb[24].mxu0  ;;  %v998_v9 = vpop.f32.mrb[24].mxu1 }
 0x70e   :  { %v1005_v10 = vadd.f32 %v1235_v5, %v957_v8  ;;  %v959_v11 = vpop.f32.mrb[25].mxu0  ;;  %v1000_v12 = vpop.f32.mrb[25].mxu1  ;;  %v1007_v24 = vadd.f32 %v1237_v22, %v998_v9 }
 0x70f   :  { %v1006_v13 = vadd.f32 %v1236_v7, %v959_v11  ;;  %v961_v14 = vpop.f32.mrb[26].mxu0  ;;  %v1002_v15 = vpop.f32.mrb[26].mxu1  ;;  %v1008_v21 = vadd.f32 %v1238_v20, %v1000_v12 }
 0x710   :  { %v1239_v16 = vmul.f32 -1.442695, %v1005_v10  ;;  %v962_v17 = vpop.f32.mrb[27].mxu0  ;;  %v1003_v18 = vpop.f32.mrb[27].mxu1 }
 0x711   :  { %v1240_v19 = vmul.f32 -1.442695, %v1006_v13  ;;  %v1241_v23 = vmul.f32 -1.442695, %v1008_v21 }
 0x712   :  { %1396 = vpow2.f32 %v1239_v16 }
 0x713   :  { %1398 = vpow2.f32 %v1240_v19 }
 0x714   :  { %1400 = vpow2.f32 %v1241_v23 }
 0x715   :  { %1402 = vtanh.f32 %v1007_v24 }
 0x71c   :  { %v1397_v25 = vpop.eup %1396 }
 0x71d   :  { %v1399_v26 = vpop.eup %1398  ;;  %v1012_v27 = vadd.f32 1.0, %v1397_v25 }
 0x71e   :  { %v1018_v28 = vadd.f32 1.0, %v1399_v26  ;;  %v1401_v29 = vpop.eup %1400 }
 0x71f   :  { %1404 = vrcp.f32 %v1012_v27  ;;  %v1403_v30 = vpop.eup %1402  ;;  %v1025_v53 = vadd.f32 1.0, %v1401_v29 }
 0x720   :  { %1406 = vrcp.f32 %v1018_v28 }
 0x721   :  { %1408 = vrcp.f32 %v1025_v53 }
 0x729   :  { %v1405_v31 = vpop.eup %1404 }
 0x72a   :  { %v1407_v33 = vpop.eup %1406  ;;  %v1029_v38 = vmul.f32 %v1405_v31, %v1403_v30 }
 0x72b   :  { %v1028_v55 = vmul.f32 %v1407_v33, %v1988_v54  ;;  %v1409_v57 = vpop.eup %1408  ;;  %v1244_v54 = vld [vmem:[%s2118_s0 + $0xe8] sm:$0xff] }
 0x72d   :  { %v1030_v56 = vadd.f32 %v1029_v38, %v1028_v55 }
 0x72f   :  { %1410 = vtanh.f32 %v1030_v56 }
 0x739   :  { %v1411_v58 = vpop.eup %1410 }
 0x73a   :  { %v1032_v59 = vmul.f32 %v1411_v58, %v1409_v57 }
 0x73c   :  { %v1033_v60 = vpack.c.bf16 %v1032_v59, %v1032_v59 }
 0x73e   :  { %1242 = vst [vmem:[%s2119_s2 + $0x18] sm:$0xf] %v1033_v60  ;;  %1074 = vmatmul.mubr.bf16.vlgmr.msra.gmra.mrb[28].mxu0 %v1033_v60  ;;  %1115 = vmatmul.mubr.bf16.vlgmr.msra.gmra.mrb[28].mxu1 %v1033_v60 }
 0x811   :  { %v1075_v61 = vpop.f32.mrb[28].mxu0  ;;  %v1116_v6 = vpop.f32.mrb[28].mxu1 }
 0x812   :  { %v1123_v62 = vadd.f32 %v1243_v0, %v1075_v61  ;;  %v1077_v63 = vpop.f32.mrb[29].mxu0  ;;  %v1118_v34 = vpop.f32.mrb[29].mxu1  ;;  %v1125_v46 = vadd.f32 %v1245_v44, %v1116_v6 }
 0x813   :  { %v1124_v1 = vadd.f32 %v1244_v54, %v1077_v63  ;;  %v1079_v35 = vpop.f32.mrb[30].mxu0  ;;  %v1120_v36 = vpop.f32.mrb[30].mxu1  ;;  %v1126_v43 = vadd.f32 %v1246_v42, %v1118_v34 }
 0x814   :  { %v1247_v37 = vmul.f32 -1.442695, %v1123_v62  ;;  %v1080_v39 = vpop.f32.mrb[31].mxu0  ;;  %v1121_v40 = vpop.f32.mrb[31].mxu1 }
 0x815   :  { %v1248_v41 = vmul.f32 -1.442695, %v1124_v1  ;;  %v1249_v45 = vmul.f32 -1.442695, %v1126_v43 }
 0x816   :  { %1412 = vpow2.f32 %v1247_v37 }
 0x817   :  { %1414 = vpow2.f32 %v1248_v41 }
 0x818   :  { %1416 = vpow2.f32 %v1249_v45 }
 0x819   :  { %1418 = vtanh.f32 %v1125_v46 }
 0x820   :  { %v1413_v47 = vpop.eup %1412 }
 0x821   :  { %v1415_v48 = vpop.eup %1414  ;;  %v1130_v49 = vadd.f32 1.0, %v1413_v47 }
 0x822   :  { %v1136_v50 = vadd.f32 1.0, %v1415_v48  ;;  %v1417_v32 = vpop.eup %1416 }
 0x823   :  { %1420 = vrcp.f32 %v1130_v49  ;;  %v1419_v51 = vpop.eup %1418  ;;  %v1143_v4 = vadd.f32 1.0, %v1417_v32 }
 0x824   :  { %1422 = vrcp.f32 %v1136_v50 }
 0x825   :  { %1424 = vrcp.f32 %v1143_v4 }
 0x82d   :  { %v1421_v52 = vpop.eup %1420 }
 0x82e   :  { %v1423_v2 = vpop.eup %1422  ;;  %v1147_v3 = vmul.f32 %v1421_v52, %v1419_v51 }
 0x82f   :  { %v1146_v5 = vmul.f32 %v1423_v2, %v1030_v56  ;;  %v1425_v8 = vpop.eup %1424 }
 0x831   :  { %v1148_v7 = vadd.f32 %v1147_v3, %v1146_v5 }
 0x833   :  { %1426 = vtanh.f32 %v1148_v7 }
 0x83d   :  { %v1427_v9 = vpop.eup %1426 }
 0x83e   :  { %v1150_v10 = vmul.f32 %v1427_v9, %v1425_v8 }
 0x840   :  { %v1151_v11 = vpack.c.bf16 %v1150_v10, %v1150_v10 }
 0x842   :  { %1250 = vst [vmem:[%s2119_s2 + $0x1c] sm:$0xf] %v1151_v11  ;;  %1154 = vst [vmem:[#allocation2] sm:$0xf] %v1151_v11 }

</bundles_post_ra>
